<compile_context>
chip_gen: v5e
topology: v5e:2x2
jax: 0.10.0
libtpu: 0.0.40
codegen_flags: <defaults>
</compile_context>

<pallas_src>
import functools
import math

import jax
import jax.numpy as jnp
from jax.experimental import pallas as pl
from jax.experimental.pallas import tpu as pltpu


# ----------------------------- kernel helpers --------------------------------


def _layer_norm(x, gamma, beta, eps=1e-12):
    mu = jnp.mean(x, axis=-1, keepdims=True)
    var = jnp.mean((x - mu) ** 2, axis=-1, keepdims=True)
    return (x - mu) * jax.lax.rsqrt(var + eps) * gamma + beta


def _softmax_last(x):
    m = jnp.max(x, axis=-1, keepdims=True)
    e = jnp.exp(x - m)
    denom = jnp.sum(e, axis=-1, keepdims=True)
    # EUP reciprocal instead of a VPU divide on the [nh, TQ, S] tensor.
    return e * pl.reciprocal(denom, approx=True)


# ----------------------------- Pallas kernel ---------------------------------


def bert_layer_kernel(
    x_ref, rel_ref, tab_ref, mask_ref,
    wq_ref, bq_ref, wk_ref, bk_ref, wv_ref, bv_ref,
    wo_ref, bo_ref, ln1g_ref, ln1b_ref,
    wi_ref, bi_ref, wo2_ref, bo2_ref, ln2g_ref, ln2b_ref,
    out_ref,
    xfull_sc, k_sc, v_sc,
    *, num_heads, head_dim, q_tile, ffn_chunk,
):
    S = x_ref.shape[1]
    H = num_heads * head_dim
    V = tab_ref.shape[0]
    I = wi_ref.shape[1]

    # ---- once per batch element (t == 0): rel-emb gather + full-seq K/V -----
    # Scratch persists across the inner ("arbitrary") query-tile grid axis.
    @pl.when(pl.program_id(1) == 0)
    def _():
        # Exact gather via one-hot matmul against the tiny [V, H] table.
        rel_idx = rel_ref[0]                                      # [1, S] int32
        iota_vs = jax.lax.broadcasted_iota(jnp.int32, (V, S), 0)  # [V, S]
        onehot = (iota_vs == rel_idx).astype(tab_ref.dtype)       # [V, S]
        relemb = jax.lax.dot_general(                             # [S, H] f32
            onehot, tab_ref[...],
            (((0,), (0,)), ((), ())),
            preferred_element_type=jnp.float32)

        x_full = x_ref[0].astype(jnp.float32) + relemb            # [S, H] f32
        x_bf = x_full.astype(jnp.bfloat16)
        xfull_sc[...] = x_bf                                      # residual/Q source

        # Full-sequence K/V (bf16 operands, f32 accumulation), stored head-major
        # so the per-tile attention einsums need no K/V relayout.
        k = jnp.dot(x_bf, wk_ref[...], preferred_element_type=jnp.float32) + bk_ref[...]
        v = jnp.dot(x_bf, wv_ref[...], preferred_element_type=jnp.float32) + bv_ref[...]
        k_sc[...] = k.astype(jnp.bfloat16).reshape(S, num_heads, head_dim).transpose(1, 0, 2)
        v_sc[...] = v.astype(jnp.bfloat16).reshape(S, num_heads, head_dim).transpose(1, 0, 2)

    # ---- per query tile ------------------------------------------------------
    q_start = pl.multiple_of(pl.program_id(1) * q_tile, q_tile)
    x_q_bf = xfull_sc[pl.ds(q_start, q_tile), :]                  # [TQ, H] bf16
    mask2 = mask_ref[0].astype(jnp.float32)                       # [1, S] additive

    # Q projection; fold the 1/sqrt(head_dim) scale into q (scales q.k exactly).
    q = jnp.dot(x_q_bf, wq_ref[...], preferred_element_type=jnp.float32) + bq_ref[...]
    q = q * (1.0 / math.sqrt(head_dim))
    q3 = q.astype(jnp.bfloat16).reshape(q_tile, num_heads, head_dim).transpose(1, 0, 2)

    # Batched multi-head attention against the cached head-major K/V scratch.
    scores = jnp.einsum("nqd,nkd->nqk", q3, k_sc[...],
                        preferred_element_type=jnp.float32)       # [nh, TQ, S]
    scores = scores + mask2[None, :, :]
    probs = _softmax_last(scores)
    ctx = jnp.einsum("nqk,nkd->nqd", probs.astype(jnp.bfloat16), v_sc[...],
                     preferred_element_type=jnp.float32)          # [nh, TQ, hd]
    ctx = ctx.transpose(1, 0, 2).reshape(q_tile, H)

    # Attention output projection + residual + LayerNorm (f32 stats).
    attn_out = jnp.dot(ctx.astype(jnp.bfloat16), wo_ref[...],
                       preferred_element_type=jnp.float32) + bo_ref[...]
    h1 = _layer_norm(attn_out + x_q_bf.astype(jnp.float32), ln1g_ref[...], ln1b_ref[...])
    h1_bf = h1.astype(jnp.bfloat16)

    # Feed-forward, chunked over the intermediate dimension to bound the live
    # `inter` tensor (static chunk offsets -> zero-cost ref views).
    # TODO(synk): at production sizes, DMA wi/wo2 chunk-wise (extra grid axis or
    # manual double-buffering) and single-buffer invariant weights
    # (pipeline_mode=pl.Buffered(1)) to shrink VMEM further, esp. on v7x.
    ffn = jnp.zeros((q_tile, H), jnp.float32)
    for c0 in range(0, I, ffn_chunk):
        inter = jnp.dot(h1_bf, wi_ref[:, c0:c0 + ffn_chunk],
                        preferred_element_type=jnp.float32) + bi_ref[:, c0:c0 + ffn_chunk]
        # TODO(synk): tanh GELU (EUP-friendly); HF/PyTorch BERT default is erf GELU.
        inter = jax.nn.gelu(inter, approximate=True)
        ffn = ffn + jnp.dot(inter.astype(jnp.bfloat16), wo2_ref[c0:c0 + ffn_chunk, :],
                            preferred_element_type=jnp.float32)
    ffn = ffn + bo2_ref[...]

    out = _layer_norm(ffn + h1, ln2g_ref[...], ln2b_ref[...])
    out_ref[0] = out.astype(out_ref.dtype)


# --------------------------- per-layer pallas_call ----------------------------


def _pick_q_tile(S, num_heads):
    """Cap the query tile so the f32 scores tensor (nh*TQ*S*4B) stays ~<= 4 MB."""
    if S <= 256:
        return S
    budget = 4 * 1024 * 1024
    cap = max(8, budget // (4 * num_heads * S))
    for t in (512, 256, 128, 64, 32, 16, 8):
        if t <= cap and S % t == 0:
            return t
    return S  # fall back to one full-S tile for awkward sequence lengths


def _pick_ffn_chunk(I):
    if I <= 512:
        return I
    for c in (512, 384, 256, 128):
        if I % c == 0:
            return c
    return I


def bert_layer(hidden_states, rel_plus1, rel_table, add_mask, p, *,
               num_heads, q_tile=None):
    """hidden_states [B,S,H] bf16, rel_plus1 [B,1,S] int32, rel_table [V,H] bf16,
    add_mask [B,1,S] f32 (additive)."""
    B, S, H = hidden_states.shape
    I = p["wi"].shape[1]
    V = rel_table.shape[0]
    head_dim = H // num_heads

    if q_tile is None:
        q_tile = _pick_q_tile(S, num_heads)
    n_qt = S // q_tile
    ffn_chunk = _pick_ffn_chunk(I)

    const2d = lambda shape: pl.BlockSpec(shape, lambda b, t: (0, 0))
    in_specs = [
        pl.BlockSpec((1, S, H), lambda b, t: (b, 0, 0)),    # x (full S; K/V need all keys)
        pl.BlockSpec((1, 1, S), lambda b, t: (b, 0, 0)),    # rel indices (int32)
        const2d((V, H)),                                    # rel embedding table
        pl.BlockSpec((1, 1, S), lambda b, t: (b, 0, 0)),    # additive attention mask
        const2d((H, H)), const2d((1, H)),                   # wq, bq
        const2d((H, H)), const2d((1, H)),                   # wk, bk
        const2d((H, H)), const2d((1, H)),                   # wv, bv
        const2d((H, H)), const2d((1, H)),                   # wo, bo
        const2d((1, H)), const2d((1, H)),                   # ln1 gamma, beta
        const2d((H, I)), const2d((1, I)),                   # wi, bi
        const2d((I, H)), const2d((1, H)),                   # wo2, bo2
        const2d((1, H)), const2d((1, H)),                   # ln2 gamma, beta
    ]
    out_spec = pl.BlockSpec((1, q_tile, H), lambda b, t: (b, t, 0))

    scratch_shapes = [
        pltpu.VMEM((S, H), jnp.bfloat16),                       # x + relemb
        pltpu.VMEM((num_heads, S, head_dim), jnp.bfloat16),     # K (head-major)
        pltpu.VMEM((num_heads, S, head_dim), jnp.bfloat16),     # V (head-major)
    ]

    kernel = functools.partial(bert_layer_kernel, num_heads=num_heads,
                               head_dim=head_dim, q_tile=q_tile,
                               ffn_chunk=ffn_chunk)

    args = (
        hidden_states, rel_plus1, rel_table, add_mask,
        p["wq"], p["bq"], p["wk"], p["bk"], p["wv"], p["bv"],
        p["wo"], p["bo"], p["ln1_g"], p["ln1_b"],
        p["wi"], p["bi"], p["wo2"], p["bo2"], p["ln2_g"], p["ln2_b"],
    )

    # Advisory cost estimate for XLA scheduling around the custom call.
    flops = int(B * (8 * S * H * H        # Q/K/V/out projections
                     + 4 * S * S * H      # attention matmuls
                     + 4 * S * H * I      # FFN
                     + 2 * S * V * H))    # rel-emb one-hot gather
    transcendentals = int(B * (num_heads * S * S + S * I))
    bytes_accessed = int(sum(a.size * a.dtype.itemsize for a in args)
                         + B * S * H * jnp.dtype(jnp.bfloat16).itemsize)

    return pl.pallas_call(
        kernel,
        out_shape=jax.ShapeDtypeStruct((B, S, H), jnp.bfloat16),
        grid_spec=pltpu.PrefetchScalarGridSpec(
            num_scalar_prefetch=0,
            grid=(B, n_qt),                      # q-tile axis innermost: scratch reuse
            in_specs=in_specs,
            out_specs=out_spec,
            scratch_shapes=scratch_shapes,
        ),
        compiler_params=pltpu.CompilerParams(
            dimension_semantics=("parallel", "arbitrary"),
            vmem_limit_bytes=56 * 1024 * 1024),
        cost_estimate=pl.CostEstimate(flops=flops,
                                      transcendentals=transcendentals,
                                      bytes_accessed=bytes_accessed),
    )(*args)


# --------------------------- encoder forward (glue) ---------------------------


def bert_encoder_forward(hidden_states, attention_mask, rel, params, *, num_heads):
    """Mirrors BertEncoder.forward (eval mode, returns last hidden state)."""
    # TODO(synk): gradient checkpointing, head_mask, cross-attention,
    # past_key_values/use_cache and output_attentions/hidden_states branches are
    # training/inspection-only and are not translated.
    B, S, H = hidden_states.shape
    in_dtype = hidden_states.dtype

    if rel is not None:
        rel_plus1 = (rel + 1).astype(jnp.int32).reshape(B, 1, S)   # `rel += 1`
    else:
        # Index 0 is the zero padding row (padding_idx=0) -> gather adds zero,
        # matching the PyTorch branch that skips the add when rel is None.
        rel_plus1 = jnp.zeros((B, 1, S), jnp.int32)

    if attention_mask is None:
        add_mask = jnp.zeros((B, 1, S), jnp.float32)
    elif attention_mask.ndim == 2:
        # [B, S] 0/1 keep-mask -> HF-style additive mask, broadcast over queries.
        add_mask = ((1.0 - attention_mask.astype(jnp.float32)) * -10000.0).reshape(B, 1, S)
    else:
        # Already-extended additive mask (e.g. [B,1,1,S]); no per-query masking.
        add_mask = attention_mask.astype(jnp.float32).reshape(B, 1, S)

    # bf16 residual stream between layers (LayerNorm/softmax stats stay f32 in-kernel).
    x = hidden_states.astype(jnp.bfloat16)
    for i, layer_p in enumerate(params["layers"]):
        x = bert_layer(x, rel_plus1, params["rel_emb"][i], add_mask, layer_p,
                       num_heads=num_heads)
    return x.astype(in_dtype)


# ------------------------------ parameter init --------------------------------


def init_params(key, *, num_layers, hidden, intermediate, rel_vocab):
    # Weight matrices stored in bf16 (halves HBM->VMEM DMA bytes; MXU-native).
    def dense(k, shape):
        return (jax.random.normal(k, shape, jnp.float32) * 0.02).astype(jnp.bfloat16)

    layers = []
    rel_embs = []
    for i in range(num_layers):
        ks = jax.random.split(jax.random.fold_in(key, i), 8)
        layers.append(dict(
            wq=dense(ks[0], (hidden, hidden)), bq=jnp.zeros((1, hidden), jnp.float32),
            wk=dense(ks[1], (hidden, hidden)), bk=jnp.zeros((1, hidden), jnp.float32),
            wv=dense(ks[2], (hidden, hidden)), bv=jnp.zeros((1, hidden), jnp.float32),
            wo=dense(ks[3], (hidden, hidden)), bo=jnp.zeros((1, hidden), jnp.float32),
            ln1_g=jnp.ones((1, hidden), jnp.float32), ln1_b=jnp.zeros((1, hidden), jnp.float32),
            wi=dense(ks[4], (hidden, intermediate)), bi=jnp.zeros((1, intermediate), jnp.float32),
            wo2=dense(ks[5], (intermediate, hidden)), bo2=jnp.zeros((1, hidden), jnp.float32),
            ln2_g=jnp.ones((1, hidden), jnp.float32), ln2_b=jnp.zeros((1, hidden), jnp.float32),
        ))
        tab = jax.random.normal(ks[6], (rel_vocab, hidden), jnp.float32) * 0.02
        tab = tab.at[0].set(0.0)  # padding_idx = 0
        rel_embs.append(tab.astype(jnp.bfloat16))
    return {"layers": layers, "rel_emb": rel_embs}


# ----------------------------------- main --------------------------------------


if __name__ == "__main__":
    # Small, shape-consistent config (original uses hidden=768, 12 layers).
    B, S, H = 2, 8, 32
    NUM_HEADS = 4
    INTERMEDIATE = 64
    NUM_LAYERS = 2
    REL_SIZE, REL_TOKEN_NUM = 3, 2
    REL_VOCAB = REL_SIZE * REL_TOKEN_NUM + 1  # +1 for the padding row

    key = jax.random.PRNGKey(0)
    k_x, k_rel, k_p = jax.random.split(key, 3)

    hidden_states = jax.random.normal(k_x, (B, S, H), jnp.float32)
    attention_mask = jnp.ones((B, S), jnp.float32)
    rel = jax.random.randint(k_rel, (B, S), 0, REL_SIZE * REL_TOKEN_NUM, jnp.int32)

    params = init_params(k_p, num_layers=NUM_LAYERS, hidden=H,
                         intermediate=INTERMEDIATE, rel_vocab=REL_VOCAB)

    fwd = jax.jit(functools.partial(bert_encoder_forward, num_heads=NUM_HEADS))
    out = fwd(hidden_states, attention_mask, rel, params)
    jax.block_until_ready(out)
    assert out.shape == (B, S, H)
    print("KERNEL_OK")
</pallas_src>

<mosaic_0001>
module attributes {stable_mosaic.version = 11 : i64} {
  func.func @bert_layer_kernel(%arg0: i32, %arg1: i32, %arg2: memref<1x8x32xbf16, #tpu.memory_space<vmem>>, %arg3: memref<1x1x8xi32, #tpu.memory_space<vmem>>, %arg4: memref<7x32xbf16, #tpu.memory_space<vmem>>, %arg5: memref<1x1x8xf32, #tpu.memory_space<vmem>>, %arg6: memref<32x32xbf16, #tpu.memory_space<vmem>>, %arg7: memref<1x32xf32, #tpu.memory_space<vmem>>, %arg8: memref<32x32xbf16, #tpu.memory_space<vmem>>, %arg9: memref<1x32xf32, #tpu.memory_space<vmem>>, %arg10: memref<32x32xbf16, #tpu.memory_space<vmem>>, %arg11: memref<1x32xf32, #tpu.memory_space<vmem>>, %arg12: memref<32x32xbf16, #tpu.memory_space<vmem>>, %arg13: memref<1x32xf32, #tpu.memory_space<vmem>>, %arg14: memref<1x32xf32, #tpu.memory_space<vmem>>, %arg15: memref<1x32xf32, #tpu.memory_space<vmem>>, %arg16: memref<32x64xbf16, #tpu.memory_space<vmem>>, %arg17: memref<1x64xf32, #tpu.memory_space<vmem>>, %arg18: memref<64x32xbf16, #tpu.memory_space<vmem>>, %arg19: memref<1x32xf32, #tpu.memory_space<vmem>>, %arg20: memref<1x32xf32, #tpu.memory_space<vmem>>, %arg21: memref<1x32xf32, #tpu.memory_space<vmem>>, %arg22: memref<1x8x32xbf16, #tpu.memory_space<vmem>>, %arg23: memref<8x32xbf16, #tpu.memory_space<vmem>>, %arg24: memref<4x8x8xbf16, #tpu.memory_space<vmem>>, %arg25: memref<4x8x8xbf16, #tpu.memory_space<vmem>>) attributes {dimension_semantics = [#tpu.dimension_semantics<parallel>, #tpu.dimension_semantics<arbitrary>], iteration_bounds = array<i64: 2, 1>, scalar_prefetch = 0 : i64, scratch_operands = 3 : i64, tpu.core_type = #tpu.core_type<tc>, window_params = [{transform_indices = @transform_0, window_bounds = array<i64: 1, 8, 32>}, {transform_indices = @transform_1, window_bounds = array<i64: 1, 1, 8>}, {pipeline_mode = #tpu.pipeline_mode<synchronous>, transform_indices = @transform_2, window_bounds = array<i64: 7, 32>}, {transform_indices = @transform_3, window_bounds = array<i64: 1, 1, 8>}, {pipeline_mode = #tpu.pipeline_mode<synchronous>, transform_indices = @transform_4, window_bounds = array<i64: 32, 32>}, {pipeline_mode = #tpu.pipeline_mode<synchronous>, transform_indices = @transform_5, window_bounds = array<i64: 1, 32>}, {pipeline_mode = #tpu.pipeline_mode<synchronous>, transform_indices = @transform_6, window_bounds = array<i64: 32, 32>}, {pipeline_mode = #tpu.pipeline_mode<synchronous>, transform_indices = @transform_7, window_bounds = array<i64: 1, 32>}, {pipeline_mode = #tpu.pipeline_mode<synchronous>, transform_indices = @transform_8, window_bounds = array<i64: 32, 32>}, {pipeline_mode = #tpu.pipeline_mode<synchronous>, transform_indices = @transform_9, window_bounds = array<i64: 1, 32>}, {pipeline_mode = #tpu.pipeline_mode<synchronous>, transform_indices = @transform_10, window_bounds = array<i64: 32, 32>}, {pipeline_mode = #tpu.pipeline_mode<synchronous>, transform_indices = @transform_11, window_bounds = array<i64: 1, 32>}, {pipeline_mode = #tpu.pipeline_mode<synchronous>, transform_indices = @transform_12, window_bounds = array<i64: 1, 32>}, {pipeline_mode = #tpu.pipeline_mode<synchronous>, transform_indices = @transform_13, window_bounds = array<i64: 1, 32>}, {pipeline_mode = #tpu.pipeline_mode<synchronous>, transform_indices = @transform_14, window_bounds = array<i64: 32, 64>}, {pipeline_mode = #tpu.pipeline_mode<synchronous>, transform_indices = @transform_15, window_bounds = array<i64: 1, 64>}, {pipeline_mode = #tpu.pipeline_mode<synchronous>, transform_indices = @transform_16, window_bounds = array<i64: 64, 32>}, {pipeline_mode = #tpu.pipeline_mode<synchronous>, transform_indices = @transform_17, window_bounds = array<i64: 1, 32>}, {pipeline_mode = #tpu.pipeline_mode<synchronous>, transform_indices = @transform_18, window_bounds = array<i64: 1, 32>}, {pipeline_mode = #tpu.pipeline_mode<synchronous>, transform_indices = @transform_19, window_bounds = array<i64: 1, 32>}, {transform_indices = @transform_20, window_bounds = array<i64: 1, 8, 32>}]} {
    %c0_i32 = arith.constant 0 : i32
    %0 = arith.cmpi eq, %arg1, %c0_i32 : i32
    %1 = arith.extui %0 : i1 to i32
    %c0_i32_0 = arith.constant 0 : i32
    %2 = arith.cmpi ne, %1, %c0_i32_0 : i32
    scf.if %2 {
      %c0_60 = arith.constant 0 : index
      %c0_61 = arith.constant 0 : index
      %c0_62 = arith.constant 0 : index
      %127 = vector.load %arg3[%c0_60, %c0_61, %c0_62] : memref<1x1x8xi32, #tpu.memory_space<vmem>>, vector<1x1x8xi32>
      %128 = vector.shape_cast %127 : vector<1x1x8xi32> to vector<1x8xi32>
      %129 = tpu.iota {dimensions = array<i32: 0>} : vector<7x8xi32>
      %130 = vector.broadcast %128 : vector<1x8xi32> to vector<7x8xi32>
      %131 = arith.cmpi eq, %129, %130 : vector<7x8xi32>
      %132 = arith.extui %131 : vector<7x8xi1> to vector<7x8xi32>
      %133 = arith.sitofp %132 : vector<7x8xi32> to vector<7x8xf32>
      %134 = arith.truncf %133 : vector<7x8xf32> to vector<7x8xbf16>
      %c0_63 = arith.constant 0 : index
      %c0_64 = arith.constant 0 : index
      %135 = vector.load %arg4[%c0_63, %c0_64] : memref<7x32xbf16, #tpu.memory_space<vmem>>, vector<7x32xbf16>
      %cst_65 = arith.constant dense<0.000000e+00> : vector<8x32xf32>
      %136 = tpu.matmul %134, %135, %cst_65 {dimension_numbers = #tpu.dot_dimension_numbers<[0], [0], [1], [1], [0, 1, 1, 1], [], []>} : vector<7x8xbf16>, vector<7x32xbf16>, vector<8x32xf32> -> vector<8x32xf32>
      %c0_66 = arith.constant 0 : index
      %c0_67 = arith.constant 0 : index
      %c0_68 = arith.constant 0 : index
      %137 = vector.load %arg2[%c0_66, %c0_67, %c0_68] : memref<1x8x32xbf16, #tpu.memory_space<vmem>>, vector<1x8x32xbf16>
      %138 = vector.shape_cast %137 : vector<1x8x32xbf16> to vector<8x32xbf16>
      %139 = arith.extf %138 : vector<8x32xbf16> to vector<8x32xf32>
      %140 = arith.addf %139, %136 : vector<8x32xf32>
      %141 = arith.truncf %140 : vector<8x32xf32> to vector<8x32xbf16>
      %c0_69 = arith.constant 0 : index
      %c0_70 = arith.constant 0 : index
      %142 = vector.load %arg23[%c0_69, %c0_70] : memref<8x32xbf16, #tpu.memory_space<vmem>>, vector<8x32xbf16>
      tpu.vector_store %arg23[%c0_69, %c0_70], %141 {strides = array<i32>} : memref<8x32xbf16, #tpu.memory_space<vmem>>, vector<8x32xbf16>,
      %c0_71 = arith.constant 0 : index
      %c0_72 = arith.constant 0 : index
      %143 = vector.load %arg8[%c0_71, %c0_72] : memref<32x32xbf16, #tpu.memory_space<vmem>>, vector<32x32xbf16>
      %cst_73 = arith.constant dense<0.000000e+00> : vector<8x32xf32>
      %144 = tpu.matmul %141, %143, %cst_73 {dimension_numbers = #tpu.dot_dimension_numbers<[1], [0], [0], [1], [0, 0, 1, 1], [], []>} : vector<8x32xbf16>, vector<32x32xbf16>, vector<8x32xf32> -> vector<8x32xf32>
      %c0_74 = arith.constant 0 : index
      %c0_75 = arith.constant 0 : index
      %145 = vector.load %arg9[%c0_74, %c0_75] : memref<1x32xf32, #tpu.memory_space<vmem>>, vector<1x32xf32>
      %146 = vector.broadcast %145 : vector<1x32xf32> to vector<8x32xf32>
      %147 = arith.addf %144, %146 : vector<8x32xf32>
      %c0_76 = arith.constant 0 : index
      %c0_77 = arith.constant 0 : index
      %148 = vector.load %arg10[%c0_76, %c0_77] : memref<32x32xbf16, #tpu.memory_space<vmem>>, vector<32x32xbf16>
      %cst_78 = arith.constant dense<0.000000e+00> : vector<8x32xf32>
      %149 = tpu.matmul %141, %148, %cst_78 {dimension_numbers = #tpu.dot_dimension_numbers<[1], [0], [0], [1], [0, 0, 1, 1], [], []>} : vector<8x32xbf16>, vector<32x32xbf16>, vector<8x32xf32> -> vector<8x32xf32>
      %c0_79 = arith.constant 0 : index
      %c0_80 = arith.constant 0 : index
      %150 = vector.load %arg11[%c0_79, %c0_80] : memref<1x32xf32, #tpu.memory_space<vmem>>, vector<1x32xf32>
      %151 = vector.broadcast %150 : vector<1x32xf32> to vector<8x32xf32>
      %152 = arith.addf %149, %151 : vector<8x32xf32>
      %153 = arith.truncf %147 : vector<8x32xf32> to vector<8x32xbf16>
      %154 = vector.shape_cast %153 : vector<8x32xbf16> to vector<8x4x8xbf16>
      %155 = tpu.transpose %154, [1, 0, 2] : vector<8x4x8xbf16> -> vector<4x8x8xbf16>
      %c0_81 = arith.constant 0 : index
      %c0_82 = arith.constant 0 : index
      %c0_83 = arith.constant 0 : index
      %156 = vector.load %arg24[%c0_81, %c0_82, %c0_83] : memref<4x8x8xbf16, #tpu.memory_space<vmem>>, vector<4x8x8xbf16>
      tpu.vector_store %arg24[%c0_81, %c0_82, %c0_83], %155 {strides = array<i32>} : memref<4x8x8xbf16, #tpu.memory_space<vmem>>, vector<4x8x8xbf16>,
      %157 = arith.truncf %152 : vector<8x32xf32> to vector<8x32xbf16>
      %158 = vector.shape_cast %157 : vector<8x32xbf16> to vector<8x4x8xbf16>
      %159 = tpu.transpose %158, [1, 0, 2] : vector<8x4x8xbf16> -> vector<4x8x8xbf16>
      %c0_84 = arith.constant 0 : index
      %c0_85 = arith.constant 0 : index
      %c0_86 = arith.constant 0 : index
      %160 = vector.load %arg25[%c0_84, %c0_85, %c0_86] : memref<4x8x8xbf16, #tpu.memory_space<vmem>>, vector<4x8x8xbf16>
      tpu.vector_store %arg25[%c0_84, %c0_85, %c0_86], %159 {strides = array<i32>} : memref<4x8x8xbf16, #tpu.memory_space<vmem>>, vector<4x8x8xbf16>,
    } else {
    }
    %c8_i32 = arith.constant 8 : i32
    %3 = arith.muli %arg1, %c8_i32 : i32
    %4 = tpu.assume_multiple %3, 8 : i32
    %5 = arith.index_cast %4 : i32 to index
    %c0 = arith.constant 0 : index
    %6 = vector.load %arg23[%5, %c0] : memref<8x32xbf16, #tpu.memory_space<vmem>>, vector<8x32xbf16>
    %c0_1 = arith.constant 0 : index
    %c0_2 = arith.constant 0 : index
    %c0_3 = arith.constant 0 : index
    %7 = vector.load %arg5[%c0_1, %c0_2, %c0_3] : memref<1x1x8xf32, #tpu.memory_space<vmem>>, vector<1x1x8xf32>
    %8 = vector.shape_cast %7 : vector<1x1x8xf32> to vector<1x8xf32>
    %c0_4 = arith.constant 0 : index
    %c0_5 = arith.constant 0 : index
    %9 = vector.load %arg6[%c0_4, %c0_5] : memref<32x32xbf16, #tpu.memory_space<vmem>>, vector<32x32xbf16>
    %cst = arith.constant dense<0.000000e+00> : vector<8x32xf32>
    %10 = tpu.matmul %6, %9, %cst {dimension_numbers = #tpu.dot_dimension_numbers<[1], [0], [0], [1], [0, 0, 1, 1], [], []>} : vector<8x32xbf16>, vector<32x32xbf16>, vector<8x32xf32> -> vector<8x32xf32>
    %c0_6 = arith.constant 0 : index
    %c0_7 = arith.constant 0 : index
    %11 = vector.load %arg7[%c0_6, %c0_7] : memref<1x32xf32, #tpu.memory_space<vmem>>, vector<1x32xf32>
    %12 = vector.broadcast %11 : vector<1x32xf32> to vector<8x32xf32>
    %13 = arith.addf %10, %12 : vector<8x32xf32>
    %cst_8 = arith.constant 0.353553385 : f32
    %14 = vector.broadcast %cst_8 : f32 to vector<8x32xf32>
    %15 = arith.mulf %13, %14 : vector<8x32xf32>
    %16 = arith.truncf %15 : vector<8x32xf32> to vector<8x32xbf16>
    %17 = vector.shape_cast %16 : vector<8x32xbf16> to vector<8x4x8xbf16>
    %18 = tpu.transpose %17, [1, 0, 2] : vector<8x4x8xbf16> -> vector<4x8x8xbf16>
    %c0_9 = arith.constant 0 : index
    %c0_10 = arith.constant 0 : index
    %c0_11 = arith.constant 0 : index
    %19 = vector.load %arg24[%c0_9, %c0_10, %c0_11] : memref<4x8x8xbf16, #tpu.memory_space<vmem>>, vector<4x8x8xbf16>
    "tpu.trace_start"() <{level = 10 : i32, message = "nqd,nkd->nqk"}> : () -> ()
    %cst_12 = arith.constant dense<0.000000e+00> : vector<4x8x8xf32>
    %20 = tpu.matmul %18, %19, %cst_12 {dimension_numbers = #tpu.dot_dimension_numbers<[2], [2], [1], [1], [0, 0, 0, 1, 1, 1], [0], [0]>} : vector<4x8x8xbf16>, vector<4x8x8xbf16>, vector<4x8x8xf32> -> vector<4x8x8xf32>
    "tpu.trace_stop"() : () -> ()
    %21 = vector.shape_cast %8 : vector<1x8xf32> to vector<1x1x8xf32>
    %22 = vector.broadcast %21 : vector<1x1x8xf32> to vector<4x8x8xf32>
    %23 = arith.addf %20, %22 : vector<4x8x8xf32>
    %cst_13 = arith.constant dense<0xFF800000> : vector<4x8xf32>
    %24 = vector.multi_reduction <maximumf>, %23, %cst_13 [2] : vector<4x8x8xf32> to vector<4x8xf32>
    %25 = vector.shape_cast %24 : vector<4x8xf32> to vector<4x8x1xf32>
    %26 = vector.broadcast %25 : vector<4x8x1xf32> to vector<4x8x8xf32>
    %27 = arith.subf %23, %26 : vector<4x8x8xf32>
    %28 = math.exp %27 : vector<4x8x8xf32>
    %cst_14 = arith.constant dense<0.000000e+00> : vector<4x8xf32>
    %29 = vector.multi_reduction <add>, %28, %cst_14 [2] : vector<4x8x8xf32> to vector<4x8xf32>
    %30 = vector.shape_cast %29 : vector<4x8xf32> to vector<4x8x1xf32>
    %31 = tpu.reciprocal %30 {approx = true} : vector<4x8x1xf32> -> vector<4x8x1xf32>
    %32 = vector.broadcast %31 : vector<4x8x1xf32> to vector<4x8x8xf32>
    %33 = arith.mulf %28, %32 : vector<4x8x8xf32>
    %34 = arith.truncf %33 : vector<4x8x8xf32> to vector<4x8x8xbf16>
    %c0_15 = arith.constant 0 : index
    %c0_16 = arith.constant 0 : index
    %c0_17 = arith.constant 0 : index
    %35 = vector.load %arg25[%c0_15, %c0_16, %c0_17] : memref<4x8x8xbf16, #tpu.memory_space<vmem>>, vector<4x8x8xbf16>
    "tpu.trace_start"() <{level = 10 : i32, message = "nqk,nkd->nqd"}> : () -> ()
    %cst_18 = arith.constant dense<0.000000e+00> : vector<4x8x8xf32>
    %36 = tpu.matmul %34, %35, %cst_18 {dimension_numbers = #tpu.dot_dimension_numbers<[2], [1], [1], [2], [0, 0, 0, 1, 1, 2], [0], [0]>} : vector<4x8x8xbf16>, vector<4x8x8xbf16>, vector<4x8x8xf32> -> vector<4x8x8xf32>
    "tpu.trace_stop"() : () -> ()
    %37 = tpu.transpose %36, [1, 0, 2] : vector<4x8x8xf32> -> vector<8x4x8xf32>
    %38 = vector.shape_cast %37 : vector<8x4x8xf32> to vector<8x32xf32>
    %39 = arith.truncf %38 : vector<8x32xf32> to vector<8x32xbf16>
    %c0_19 = arith.constant 0 : index
    %c0_20 = arith.constant 0 : index
    %40 = vector.load %arg12[%c0_19, %c0_20] : memref<32x32xbf16, #tpu.memory_space<vmem>>, vector<32x32xbf16>
    %cst_21 = arith.constant dense<0.000000e+00> : vector<8x32xf32>
    %41 = tpu.matmul %39, %40, %cst_21 {dimension_numbers = #tpu.dot_dimension_numbers<[1], [0], [0], [1], [0, 0, 1, 1], [], []>} : vector<8x32xbf16>, vector<32x32xbf16>, vector<8x32xf32> -> vector<8x32xf32>
    %c0_22 = arith.constant 0 : index
    %c0_23 = arith.constant 0 : index
    %42 = vector.load %arg13[%c0_22, %c0_23] : memref<1x32xf32, #tpu.memory_space<vmem>>, vector<1x32xf32>
    %43 = vector.broadcast %42 : vector<1x32xf32> to vector<8x32xf32>
    %44 = arith.addf %41, %43 : vector<8x32xf32>
    %45 = arith.extf %6 : vector<8x32xbf16> to vector<8x32xf32>
    %46 = arith.addf %44, %45 : vector<8x32xf32>
    %c0_24 = arith.constant 0 : index
    %c0_25 = arith.constant 0 : index
    %47 = vector.load %arg14[%c0_24, %c0_25] : memref<1x32xf32, #tpu.memory_space<vmem>>, vector<1x32xf32>
    %c0_26 = arith.constant 0 : index
    %c0_27 = arith.constant 0 : index
    %48 = vector.load %arg15[%c0_26, %c0_27] : memref<1x32xf32, #tpu.memory_space<vmem>>, vector<1x32xf32>
    %cst_28 = arith.constant dense<0.000000e+00> : vector<8xf32>
    %49 = vector.multi_reduction <add>, %46, %cst_28 [1] : vector<8x32xf32> to vector<8xf32>
    %50 = vector.shape_cast %49 : vector<8xf32> to vector<8x1xf32>
    %cst_29 = arith.constant 3.200000e+01 : f32
    %51 = vector.broadcast %cst_29 : f32 to vector<8x1xf32>
    %52 = arith.divf %50, %51 : vector<8x1xf32>
    %53 = vector.broadcast %52 : vector<8x1xf32> to vector<8x32xf32>
    %54 = arith.subf %46, %53 : vector<8x32xf32>
    %55 = arith.mulf %54, %54 : vector<8x32xf32>
    %cst_30 = arith.constant dense<0.000000e+00> : vector<8xf32>
    %56 = vector.multi_reduction <add>, %55, %cst_30 [1] : vector<8x32xf32> to vector<8xf32>
    %57 = vector.shape_cast %56 : vector<8xf32> to vector<8x1xf32>
    %cst_31 = arith.constant 3.200000e+01 : f32
    %58 = vector.broadcast %cst_31 : f32 to vector<8x1xf32>
    %59 = arith.divf %57, %58 : vector<8x1xf32>
    %60 = vector.broadcast %52 : vector<8x1xf32> to vector<8x32xf32>
    %61 = arith.subf %46, %60 : vector<8x32xf32>
    %cst_32 = arith.constant 9.99999996E-13 : f32
    %62 = vector.broadcast %cst_32 : f32 to vector<8x1xf32>
    %63 = arith.addf %59, %62 : vector<8x1xf32>
    %64 = math.rsqrt %63 : vector<8x1xf32>
    %65 = vector.broadcast %64 : vector<8x1xf32> to vector<8x32xf32>
    %66 = arith.mulf %61, %65 : vector<8x32xf32>
    %67 = vector.broadcast %47 : vector<1x32xf32> to vector<8x32xf32>
    %68 = arith.mulf %66, %67 : vector<8x32xf32>
    %69 = vector.broadcast %48 : vector<1x32xf32> to vector<8x32xf32>
    %70 = arith.addf %68, %69 : vector<8x32xf32>
    %71 = arith.truncf %70 : vector<8x32xf32> to vector<8x32xbf16>
    %cst_33 = arith.constant 0.000000e+00 : f32
    %72 = vector.broadcast %cst_33 : f32 to vector<8x32xf32>
    %c0_34 = arith.constant 0 : index
    %c0_35 = arith.constant 0 : index
    %73 = vector.load %arg16[%c0_34, %c0_35] : memref<32x64xbf16, #tpu.memory_space<vmem>>, vector<32x64xbf16>
    %cst_36 = arith.constant dense<0.000000e+00> : vector<8x64xf32>
    %74 = tpu.matmul %71, %73, %cst_36 {dimension_numbers = #tpu.dot_dimension_numbers<[1], [0], [0], [1], [0, 0, 1, 1], [], []>} : vector<8x32xbf16>, vector<32x64xbf16>, vector<8x64xf32> -> vector<8x64xf32>
    %c0_37 = arith.constant 0 : index
    %c0_38 = arith.constant 0 : index
    %75 = vector.load %arg17[%c0_37, %c0_38] : memref<1x64xf32, #tpu.memory_space<vmem>>, vector<1x64xf32>
    %76 = vector.broadcast %75 : vector<1x64xf32> to vector<8x64xf32>
    %77 = arith.addf %74, %76 : vector<8x64xf32>
    %78 = arith.mulf %77, %77 : vector<8x64xf32>
    %79 = arith.mulf %77, %78 : vector<8x64xf32>
    %cst_39 = arith.constant 4.471500e-02 : f32
    %80 = vector.broadcast %cst_39 : f32 to vector<8x64xf32>
    %81 = arith.mulf %80, %79 : vector<8x64xf32>
    %82 = arith.addf %77, %81 : vector<8x64xf32>
    %cst_40 = arith.constant 0.797884583 : f32
    %83 = vector.broadcast %cst_40 : f32 to vector<8x64xf32>
    %84 = arith.mulf %83, %82 : vector<8x64xf32>
    %85 = math.tanh %84 : vector<8x64xf32>
    %cst_41 = arith.constant 1.000000e+00 : f32
    %86 = vector.broadcast %cst_41 : f32 to vector<8x64xf32>
    %87 = arith.addf %86, %85 : vector<8x64xf32>
    %cst_42 = arith.constant 5.000000e-01 : f32
    %88 = vector.broadcast %cst_42 : f32 to vector<8x64xf32>
    %89 = arith.mulf %88, %87 : vector<8x64xf32>
    %90 = arith.mulf %77, %89 : vector<8x64xf32>
    %91 = arith.truncf %90 : vector<8x64xf32> to vector<8x64xbf16>
    %c0_43 = arith.constant 0 : index
    %c0_44 = arith.constant 0 : index
    %92 = vector.load %arg18[%c0_43, %c0_44] : memref<64x32xbf16, #tpu.memory_space<vmem>>, vector<64x32xbf16>
    %cst_45 = arith.constant dense<0.000000e+00> : vector<8x32xf32>
    %93 = tpu.matmul %91, %92, %cst_45 {dimension_numbers = #tpu.dot_dimension_numbers<[1], [0], [0], [1], [0, 0, 1, 1], [], []>} : vector<8x64xbf16>, vector<64x32xbf16>, vector<8x32xf32> -> vector<8x32xf32>
    %94 = arith.addf %72, %93 : vector<8x32xf32>
    %c0_46 = arith.constant 0 : index
    %c0_47 = arith.constant 0 : index
    %95 = vector.load %arg19[%c0_46, %c0_47] : memref<1x32xf32, #tpu.memory_space<vmem>>, vector<1x32xf32>
    %96 = vector.broadcast %95 : vector<1x32xf32> to vector<8x32xf32>
    %97 = arith.addf %94, %96 : vector<8x32xf32>
    %98 = arith.addf %97, %70 : vector<8x32xf32>
    %c0_48 = arith.constant 0 : index
    %c0_49 = arith.constant 0 : index
    %99 = vector.load %arg20[%c0_48, %c0_49] : memref<1x32xf32, #tpu.memory_space<vmem>>, vector<1x32xf32>
    %c0_50 = arith.constant 0 : index
    %c0_51 = arith.constant 0 : index
    %100 = vector.load %arg21[%c0_50, %c0_51] : memref<1x32xf32, #tpu.memory_space<vmem>>, vector<1x32xf32>
    %cst_52 = arith.constant dense<0.000000e+00> : vector<8xf32>
    %101 = vector.multi_reduction <add>, %98, %cst_52 [1] : vector<8x32xf32> to vector<8xf32>
    %102 = vector.shape_cast %101 : vector<8xf32> to vector<8x1xf32>
    %cst_53 = arith.constant 3.200000e+01 : f32
    %103 = vector.broadcast %cst_53 : f32 to vector<8x1xf32>
    %104 = arith.divf %102, %103 : vector<8x1xf32>
    %105 = vector.broadcast %104 : vector<8x1xf32> to vector<8x32xf32>
    %106 = arith.subf %98, %105 : vector<8x32xf32>
    %107 = arith.mulf %106, %106 : vector<8x32xf32>
    %cst_54 = arith.constant dense<0.000000e+00> : vector<8xf32>
    %108 = vector.multi_reduction <add>, %107, %cst_54 [1] : vector<8x32xf32> to vector<8xf32>
    %109 = vector.shape_cast %108 : vector<8xf32> to vector<8x1xf32>
    %cst_55 = arith.constant 3.200000e+01 : f32
    %110 = vector.broadcast %cst_55 : f32 to vector<8x1xf32>
    %111 = arith.divf %109, %110 : vector<8x1xf32>
    %112 = vector.broadcast %104 : vector<8x1xf32> to vector<8x32xf32>
    %113 = arith.subf %98, %112 : vector<8x32xf32>
    %cst_56 = arith.constant 9.99999996E-13 : f32
    %114 = vector.broadcast %cst_56 : f32 to vector<8x1xf32>
    %115 = arith.addf %111, %114 : vector<8x1xf32>
    %116 = math.rsqrt %115 : vector<8x1xf32>
    %117 = vector.broadcast %116 : vector<8x1xf32> to vector<8x32xf32>
    %118 = arith.mulf %113, %117 : vector<8x32xf32>
    %119 = vector.broadcast %99 : vector<1x32xf32> to vector<8x32xf32>
    %120 = arith.mulf %118, %119 : vector<8x32xf32>
    %121 = vector.broadcast %100 : vector<1x32xf32> to vector<8x32xf32>
    %122 = arith.addf %120, %121 : vector<8x32xf32>
    %123 = arith.truncf %122 : vector<8x32xf32> to vector<8x32xbf16>
    %c0_57 = arith.constant 0 : index
    %c0_58 = arith.constant 0 : index
    %c0_59 = arith.constant 0 : index
    %124 = vector.load %arg22[%c0_57, %c0_58, %c0_59] : memref<1x8x32xbf16, #tpu.memory_space<vmem>>, vector<1x8x32xbf16>
    %125 = vector.shape_cast %124 : vector<1x8x32xbf16> to vector<8x32xbf16>
    %126 = vector.shape_cast %123 : vector<8x32xbf16> to vector<1x8x32xbf16>
    tpu.vector_store %arg22[%c0_57, %c0_58, %c0_59], %126 {strides = array<i32>} : memref<1x8x32xbf16, #tpu.memory_space<vmem>>, vector<1x8x32xbf16>,
    return
  }
  func.func @transform_0(%arg0: i32, %arg1: i32) -> (i32, i32, i32) {
    %c0_i32 = arith.constant 0 : i32
    %c0_i32_0 = arith.constant 0 : i32
    %c0_i32_1 = arith.constant 0 : i32
    return %arg0, %c0_i32, %c0_i32_0 : i32, i32, i32
  }
  func.func @transform_1(%arg0: i32, %arg1: i32) -> (i32, i32, i32) {
    %c0_i32 = arith.constant 0 : i32
    %c0_i32_0 = arith.constant 0 : i32
    %c0_i32_1 = arith.constant 0 : i32
    return %arg0, %c0_i32, %c0_i32_0 : i32, i32, i32
  }
  func.func @transform_2(%arg0: i32, %arg1: i32) -> (i32, i32) {
    %c0_i32 = arith.constant 0 : i32
    %c0_i32_0 = arith.constant 0 : i32
    %c0_i32_1 = arith.constant 0 : i32
    return %c0_i32, %c0_i32_0 : i32, i32
  }
  func.func @transform_3(%arg0: i32, %arg1: i32) -> (i32, i32, i32) {
    %c0_i32 = arith.constant 0 : i32
    %c0_i32_0 = arith.constant 0 : i32
    %c0_i32_1 = arith.constant 0 : i32
    return %arg0, %c0_i32, %c0_i32_0 : i32, i32, i32
  }
  func.func @transform_4(%arg0: i32, %arg1: i32) -> (i32, i32) {
    %c0_i32 = arith.constant 0 : i32
    %c0_i32_0 = arith.constant 0 : i32
    %c0_i32_1 = arith.constant 0 : i32
    return %c0_i32, %c0_i32_0 : i32, i32
  }
  func.func @transform_5(%arg0: i32, %arg1: i32) -> (i32, i32) {
    %c0_i32 = arith.constant 0 : i32
    %c0_i32_0 = arith.constant 0 : i32
    %c0_i32_1 = arith.constant 0 : i32
    return %c0_i32, %c0_i32_0 : i32, i32
  }
  func.func @transform_6(%arg0: i32, %arg1: i32) -> (i32, i32) {
    %c0_i32 = arith.constant 0 : i32
    %c0_i32_0 = arith.constant 0 : i32
    %c0_i32_1 = arith.constant 0 : i32
    return %c0_i32, %c0_i32_0 : i32, i32
  }
  func.func @transform_7(%arg0: i32, %arg1: i32) -> (i32, i32) {
    %c0_i32 = arith.constant 0 : i32
    %c0_i32_0 = arith.constant 0 : i32
    %c0_i32_1 = arith.constant 0 : i32
    return %c0_i32, %c0_i32_0 : i32, i32
  }
  func.func @transform_8(%arg0: i32, %arg1: i32) -> (i32, i32) {
    %c0_i32 = arith.constant 0 : i32
    %c0_i32_0 = arith.constant 0 : i32
    %c0_i32_1 = arith.constant 0 : i32
    return %c0_i32, %c0_i32_0 : i32, i32
  }
  func.func @transform_9(%arg0: i32, %arg1: i32) -> (i32, i32) {
    %c0_i32 = arith.constant 0 : i32
    %c0_i32_0 = arith.constant 0 : i32
    %c0_i32_1 = arith.constant 0 : i32
    return %c0_i32, %c0_i32_0 : i32, i32
  }
  func.func @transform_10(%arg0: i32, %arg1: i32) -> (i32, i32) {
    %c0_i32 = arith.constant 0 : i32
    %c0_i32_0 = arith.constant 0 : i32
    %c0_i32_1 = arith.constant 0 : i32
    return %c0_i32, %c0_i32_0 : i32, i32
  }
  func.func @transform_11(%arg0: i32, %arg1: i32) -> (i32, i32) {
    %c0_i32 = arith.constant 0 : i32
    %c0_i32_0 = arith.constant 0 : i32
    %c0_i32_1 = arith.constant 0 : i32
    return %c0_i32, %c0_i32_0 : i32, i32
  }
  func.func @transform_12(%arg0: i32, %arg1: i32) -> (i32, i32) {
    %c0_i32 = arith.constant 0 : i32
    %c0_i32_0 = arith.constant 0 : i32
    %c0_i32_1 = arith.constant 0 : i32
    return %c0_i32, %c0_i32_0 : i32, i32
  }
  func.func @transform_13(%arg0: i32, %arg1: i32) -> (i32, i32) {
    %c0_i32 = arith.constant 0 : i32
    %c0_i32_0 = arith.constant 0 : i32
    %c0_i32_1 = arith.constant 0 : i32
    return %c0_i32, %c0_i32_0 : i32, i32
  }
  func.func @transform_14(%arg0: i32, %arg1: i32) -> (i32, i32) {
    %c0_i32 = arith.constant 0 : i32
    %c0_i32_0 = arith.constant 0 : i32
    %c0_i32_1 = arith.constant 0 : i32
    return %c0_i32, %c0_i32_0 : i32, i32
  }
  func.func @transform_15(%arg0: i32, %arg1: i32) -> (i32, i32) {
    %c0_i32 = arith.constant 0 : i32
    %c0_i32_0 = arith.constant 0 : i32
    %c0_i32_1 = arith.constant 0 : i32
    return %c0_i32, %c0_i32_0 : i32, i32
  }
  func.func @transform_16(%arg0: i32, %arg1: i32) -> (i32, i32) {
    %c0_i32 = arith.constant 0 : i32
    %c0_i32_0 = arith.constant 0 : i32
    %c0_i32_1 = arith.constant 0 : i32
    return %c0_i32, %c0_i32_0 : i32, i32
  }
  func.func @transform_17(%arg0: i32, %arg1: i32) -> (i32, i32) {
    %c0_i32 = arith.constant 0 : i32
    %c0_i32_0 = arith.constant 0 : i32
    %c0_i32_1 = arith.constant 0 : i32
    return %c0_i32, %c0_i32_0 : i32, i32
  }
  func.func @transform_18(%arg0: i32, %arg1: i32) -> (i32, i32) {
    %c0_i32 = arith.constant 0 : i32
    %c0_i32_0 = arith.constant 0 : i32
    %c0_i32_1 = arith.constant 0 : i32
    return %c0_i32, %c0_i32_0 : i32, i32
  }
  func.func @transform_19(%arg0: i32, %arg1: i32) -> (i32, i32) {
    %c0_i32 = arith.constant 0 : i32
    %c0_i32_0 = arith.constant 0 : i32
    %c0_i32_1 = arith.constant 0 : i32
    return %c0_i32, %c0_i32_0 : i32, i32
  }
  func.func @transform_20(%arg0: i32, %arg1: i32) -> (i32, i32, i32) {
    %c0_i32 = arith.constant 0 : i32
    %c0_i32_0 = arith.constant 0 : i32
    return %arg0, %arg1, %c0_i32 : i32, i32, i32
  }
}

module attributes {stable_mosaic.version = 11 : i64} {
  func.func @bert_layer_kernel(%arg0: i32, %arg1: i32, %arg2: memref<1x8x32xbf16, #tpu.memory_space<vmem>>, %arg3: memref<1x1x8xi32, #tpu.memory_space<vmem>>, %arg4: memref<7x32xbf16, #tpu.memory_space<vmem>>, %arg5: memref<1x1x8xf32, #tpu.memory_space<vmem>>, %arg6: memref<32x32xbf16, #tpu.memory_space<vmem>>, %arg7: memref<1x32xf32, #tpu.memory_space<vmem>>, %arg8: memref<32x32xbf16, #tpu.memory_space<vmem>>, %arg9: memref<1x32xf32, #tpu.memory_space<vmem>>, %arg10: memref<32x32xbf16, #tpu.memory_space<vmem>>, %arg11: memref<1x32xf32, #tpu.memory_space<vmem>>, %arg12: memref<32x32xbf16, #tpu.memory_space<vmem>>, %arg13: memref<1x32xf32, #tpu.memory_space<vmem>>, %arg14: memref<1x32xf32, #tpu.memory_space<vmem>>, %arg15: memref<1x32xf32, #tpu.memory_space<vmem>>, %arg16: memref<32x64xbf16, #tpu.memory_space<vmem>>, %arg17: memref<1x64xf32, #tpu.memory_space<vmem>>, %arg18: memref<64x32xbf16, #tpu.memory_space<vmem>>, %arg19: memref<1x32xf32, #tpu.memory_space<vmem>>, %arg20: memref<1x32xf32, #tpu.memory_space<vmem>>, %arg21: memref<1x32xf32, #tpu.memory_space<vmem>>, %arg22: memref<1x8x32xbf16, #tpu.memory_space<vmem>>, %arg23: memref<8x32xbf16, #tpu.memory_space<vmem>>, %arg24: memref<4x8x8xbf16, #tpu.memory_space<vmem>>, %arg25: memref<4x8x8xbf16, #tpu.memory_space<vmem>>) attributes {dimension_semantics = [#tpu.dimension_semantics<parallel>, #tpu.dimension_semantics<arbitrary>], iteration_bounds = array<i64: 2, 1>, scalar_prefetch = 0 : i64, scratch_operands = 3 : i64, tpu.core_type = #tpu.core_type<tc>, window_params = [{transform_indices = @transform_0, window_bounds = array<i64: 1, 8, 32>}, {transform_indices = @transform_1, window_bounds = array<i64: 1, 1, 8>}, {pipeline_mode = #tpu.pipeline_mode<synchronous>, transform_indices = @transform_2, window_bounds = array<i64: 7, 32>}, {transform_indices = @transform_3, window_bounds = array<i64: 1, 1, 8>}, {pipeline_mode = #tpu.pipeline_mode<synchronous>, transform_indices = @transform_4, window_bounds = array<i64: 32, 32>}, {pipeline_mode = #tpu.pipeline_mode<synchronous>, transform_indices = @transform_5, window_bounds = array<i64: 1, 32>}, {pipeline_mode = #tpu.pipeline_mode<synchronous>, transform_indices = @transform_6, window_bounds = array<i64: 32, 32>}, {pipeline_mode = #tpu.pipeline_mode<synchronous>, transform_indices = @transform_7, window_bounds = array<i64: 1, 32>}, {pipeline_mode = #tpu.pipeline_mode<synchronous>, transform_indices = @transform_8, window_bounds = array<i64: 32, 32>}, {pipeline_mode = #tpu.pipeline_mode<synchronous>, transform_indices = @transform_9, window_bounds = array<i64: 1, 32>}, {pipeline_mode = #tpu.pipeline_mode<synchronous>, transform_indices = @transform_10, window_bounds = array<i64: 32, 32>}, {pipeline_mode = #tpu.pipeline_mode<synchronous>, transform_indices = @transform_11, window_bounds = array<i64: 1, 32>}, {pipeline_mode = #tpu.pipeline_mode<synchronous>, transform_indices = @transform_12, window_bounds = array<i64: 1, 32>}, {pipeline_mode = #tpu.pipeline_mode<synchronous>, transform_indices = @transform_13, window_bounds = array<i64: 1, 32>}, {pipeline_mode = #tpu.pipeline_mode<synchronous>, transform_indices = @transform_14, window_bounds = array<i64: 32, 64>}, {pipeline_mode = #tpu.pipeline_mode<synchronous>, transform_indices = @transform_15, window_bounds = array<i64: 1, 64>}, {pipeline_mode = #tpu.pipeline_mode<synchronous>, transform_indices = @transform_16, window_bounds = array<i64: 64, 32>}, {pipeline_mode = #tpu.pipeline_mode<synchronous>, transform_indices = @transform_17, window_bounds = array<i64: 1, 32>}, {pipeline_mode = #tpu.pipeline_mode<synchronous>, transform_indices = @transform_18, window_bounds = array<i64: 1, 32>}, {pipeline_mode = #tpu.pipeline_mode<synchronous>, transform_indices = @transform_19, window_bounds = array<i64: 1, 32>}, {transform_indices = @transform_20, window_bounds = array<i64: 1, 8, 32>}]} {
    %c0_i32 = arith.constant 0 : i32
    %0 = arith.cmpi eq, %arg1, %c0_i32 : i32
    %1 = arith.extui %0 : i1 to i32
    %c0_i32_0 = arith.constant 0 : i32
    %2 = arith.cmpi ne, %1, %c0_i32_0 : i32
    scf.if %2 {
      %c0_60 = arith.constant 0 : index
      %c0_61 = arith.constant 0 : index
      %c0_62 = arith.constant 0 : index
      %127 = vector.load %arg3[%c0_60, %c0_61, %c0_62] : memref<1x1x8xi32, #tpu.memory_space<vmem>>, vector<1x1x8xi32>
      %128 = vector.shape_cast %127 : vector<1x1x8xi32> to vector<1x8xi32>
      %129 = tpu.iota {dimensions = array<i32: 0>} : vector<7x8xi32>
      %130 = vector.broadcast %128 : vector<1x8xi32> to vector<7x8xi32>
      %131 = arith.cmpi eq, %129, %130 : vector<7x8xi32>
      %132 = arith.extui %131 : vector<7x8xi1> to vector<7x8xi32>
      %133 = arith.sitofp %132 : vector<7x8xi32> to vector<7x8xf32>
      %134 = arith.truncf %133 : vector<7x8xf32> to vector<7x8xbf16>
      %c0_63 = arith.constant 0 : index
      %c0_64 = arith.constant 0 : index
      %135 = vector.load %arg4[%c0_63, %c0_64] : memref<7x32xbf16, #tpu.memory_space<vmem>>, vector<7x32xbf16>
      %cst_65 = arith.constant dense<0.000000e+00> : vector<8x32xf32>
      %136 = tpu.matmul %134, %135, %cst_65 {dimension_numbers = #tpu.dot_dimension_numbers<[0], [0], [1], [1], [0, 1, 1, 1], [], []>} : vector<7x8xbf16>, vector<7x32xbf16>, vector<8x32xf32> -> vector<8x32xf32>
      %c0_66 = arith.constant 0 : index
      %c0_67 = arith.constant 0 : index
      %c0_68 = arith.constant 0 : index
      %137 = vector.load %arg2[%c0_66, %c0_67, %c0_68] : memref<1x8x32xbf16, #tpu.memory_space<vmem>>, vector<1x8x32xbf16>
      %138 = vector.shape_cast %137 : vector<1x8x32xbf16> to vector<8x32xbf16>
      %139 = arith.extf %138 : vector<8x32xbf16> to vector<8x32xf32>
      %140 = arith.addf %139, %136 : vector<8x32xf32>
      %141 = arith.truncf %140 : vector<8x32xf32> to vector<8x32xbf16>
      %c0_69 = arith.constant 0 : index
      %c0_70 = arith.constant 0 : index
      %142 = vector.load %arg23[%c0_69, %c0_70] : memref<8x32xbf16, #tpu.memory_space<vmem>>, vector<8x32xbf16>
      tpu.vector_store %arg23[%c0_69, %c0_70], %141 {strides = array<i32>} : memref<8x32xbf16, #tpu.memory_space<vmem>>, vector<8x32xbf16>,
      %c0_71 = arith.constant 0 : index
      %c0_72 = arith.constant 0 : index
      %143 = vector.load %arg8[%c0_71, %c0_72] : memref<32x32xbf16, #tpu.memory_space<vmem>>, vector<32x32xbf16>
      %cst_73 = arith.constant dense<0.000000e+00> : vector<8x32xf32>
      %144 = tpu.matmul %141, %143, %cst_73 {dimension_numbers = #tpu.dot_dimension_numbers<[1], [0], [0], [1], [0, 0, 1, 1], [], []>} : vector<8x32xbf16>, vector<32x32xbf16>, vector<8x32xf32> -> vector<8x32xf32>
      %c0_74 = arith.constant 0 : index
      %c0_75 = arith.constant 0 : index
      %145 = vector.load %arg9[%c0_74, %c0_75] : memref<1x32xf32, #tpu.memory_space<vmem>>, vector<1x32xf32>
      %146 = vector.broadcast %145 : vector<1x32xf32> to vector<8x32xf32>
      %147 = arith.addf %144, %146 : vector<8x32xf32>
      %c0_76 = arith.constant 0 : index
      %c0_77 = arith.constant 0 : index
      %148 = vector.load %arg10[%c0_76, %c0_77] : memref<32x32xbf16, #tpu.memory_space<vmem>>, vector<32x32xbf16>
      %cst_78 = arith.constant dense<0.000000e+00> : vector<8x32xf32>
      %149 = tpu.matmul %141, %148, %cst_78 {dimension_numbers = #tpu.dot_dimension_numbers<[1], [0], [0], [1], [0, 0, 1, 1], [], []>} : vector<8x32xbf16>, vector<32x32xbf16>, vector<8x32xf32> -> vector<8x32xf32>
      %c0_79 = arith.constant 0 : index
      %c0_80 = arith.constant 0 : index
      %150 = vector.load %arg11[%c0_79, %c0_80] : memref<1x32xf32, #tpu.memory_space<vmem>>, vector<1x32xf32>
      %151 = vector.broadcast %150 : vector<1x32xf32> to vector<8x32xf32>
      %152 = arith.addf %149, %151 : vector<8x32xf32>
      %153 = arith.truncf %147 : vector<8x32xf32> to vector<8x32xbf16>
      %154 = vector.shape_cast %153 : vector<8x32xbf16> to vector<8x4x8xbf16>
      %155 = tpu.transpose %154, [1, 0, 2] : vector<8x4x8xbf16> -> vector<4x8x8xbf16>
      %c0_81 = arith.constant 0 : index
      %c0_82 = arith.constant 0 : index
      %c0_83 = arith.constant 0 : index
      %156 = vector.load %arg24[%c0_81, %c0_82, %c0_83] : memref<4x8x8xbf16, #tpu.memory_space<vmem>>, vector<4x8x8xbf16>
      tpu.vector_store %arg24[%c0_81, %c0_82, %c0_83], %155 {strides = array<i32>} : memref<4x8x8xbf16, #tpu.memory_space<vmem>>, vector<4x8x8xbf16>,
      %157 = arith.truncf %152 : vector<8x32xf32> to vector<8x32xbf16>
      %158 = vector.shape_cast %157 : vector<8x32xbf16> to vector<8x4x8xbf16>
      %159 = tpu.transpose %158, [1, 0, 2] : vector<8x4x8xbf16> -> vector<4x8x8xbf16>
      %c0_84 = arith.constant 0 : index
      %c0_85 = arith.constant 0 : index
      %c0_86 = arith.constant 0 : index
      %160 = vector.load %arg25[%c0_84, %c0_85, %c0_86] : memref<4x8x8xbf16, #tpu.memory_space<vmem>>, vector<4x8x8xbf16>
      tpu.vector_store %arg25[%c0_84, %c0_85, %c0_86], %159 {strides = array<i32>} : memref<4x8x8xbf16, #tpu.memory_space<vmem>>, vector<4x8x8xbf16>,
    } else {
    }
    %c8_i32 = arith.constant 8 : i32
    %3 = arith.muli %arg1, %c8_i32 : i32
    %4 = tpu.assume_multiple %3, 8 : i32
    %5 = arith.index_cast %4 : i32 to index
    %c0 = arith.constant 0 : index
    %6 = vector.load %arg23[%5, %c0] : memref<8x32xbf16, #tpu.memory_space<vmem>>, vector<8x32xbf16>
    %c0_1 = arith.constant 0 : index
    %c0_2 = arith.constant 0 : index
    %c0_3 = arith.constant 0 : index
    %7 = vector.load %arg5[%c0_1, %c0_2, %c0_3] : memref<1x1x8xf32, #tpu.memory_space<vmem>>, vector<1x1x8xf32>
    %8 = vector.shape_cast %7 : vector<1x1x8xf32> to vector<1x8xf32>
    %c0_4 = arith.constant 0 : index
    %c0_5 = arith.constant 0 : index
    %9 = vector.load %arg6[%c0_4, %c0_5] : memref<32x32xbf16, #tpu.memory_space<vmem>>, vector<32x32xbf16>
    %cst = arith.constant dense<0.000000e+00> : vector<8x32xf32>
    %10 = tpu.matmul %6, %9, %cst {dimension_numbers = #tpu.dot_dimension_numbers<[1], [0], [0], [1], [0, 0, 1, 1], [], []>} : vector<8x32xbf16>, vector<32x32xbf16>, vector<8x32xf32> -> vector<8x32xf32>
    %c0_6 = arith.constant 0 : index
    %c0_7 = arith.constant 0 : index
    %11 = vector.load %arg7[%c0_6, %c0_7] : memref<1x32xf32, #tpu.memory_space<vmem>>, vector<1x32xf32>
    %12 = vector.broadcast %11 : vector<1x32xf32> to vector<8x32xf32>
    %13 = arith.addf %10, %12 : vector<8x32xf32>
    %cst_8 = arith.constant 0.353553385 : f32
    %14 = vector.broadcast %cst_8 : f32 to vector<8x32xf32>
    %15 = arith.mulf %13, %14 : vector<8x32xf32>
    %16 = arith.truncf %15 : vector<8x32xf32> to vector<8x32xbf16>
    %17 = vector.shape_cast %16 : vector<8x32xbf16> to vector<8x4x8xbf16>
    %18 = tpu.transpose %17, [1, 0, 2] : vector<8x4x8xbf16> -> vector<4x8x8xbf16>
    %c0_9 = arith.constant 0 : index
    %c0_10 = arith.constant 0 : index
    %c0_11 = arith.constant 0 : index
    %19 = vector.load %arg24[%c0_9, %c0_10, %c0_11] : memref<4x8x8xbf16, #tpu.memory_space<vmem>>, vector<4x8x8xbf16>
    "tpu.trace_start"() <{level = 10 : i32, message = "nqd,nkd->nqk"}> : () -> ()
    %cst_12 = arith.constant dense<0.000000e+00> : vector<4x8x8xf32>
    %20 = tpu.matmul %18, %19, %cst_12 {dimension_numbers = #tpu.dot_dimension_numbers<[2], [2], [1], [1], [0, 0, 0, 1, 1, 1], [0], [0]>} : vector<4x8x8xbf16>, vector<4x8x8xbf16>, vector<4x8x8xf32> -> vector<4x8x8xf32>
    "tpu.trace_stop"() : () -> ()
    %21 = vector.shape_cast %8 : vector<1x8xf32> to vector<1x1x8xf32>
    %22 = vector.broadcast %21 : vector<1x1x8xf32> to vector<4x8x8xf32>
    %23 = arith.addf %20, %22 : vector<4x8x8xf32>
    %cst_13 = arith.constant dense<0xFF800000> : vector<4x8xf32>
    %24 = vector.multi_reduction <maximumf>, %23, %cst_13 [2] : vector<4x8x8xf32> to vector<4x8xf32>
    %25 = vector.shape_cast %24 : vector<4x8xf32> to vector<4x8x1xf32>
    %26 = vector.broadcast %25 : vector<4x8x1xf32> to vector<4x8x8xf32>
    %27 = arith.subf %23, %26 : vector<4x8x8xf32>
    %28 = math.exp %27 : vector<4x8x8xf32>
    %cst_14 = arith.constant dense<0.000000e+00> : vector<4x8xf32>
    %29 = vector.multi_reduction <add>, %28, %cst_14 [2] : vector<4x8x8xf32> to vector<4x8xf32>
    %30 = vector.shape_cast %29 : vector<4x8xf32> to vector<4x8x1xf32>
    %31 = tpu.reciprocal %30 {approx = true} : vector<4x8x1xf32> -> vector<4x8x1xf32>
    %32 = vector.broadcast %31 : vector<4x8x1xf32> to vector<4x8x8xf32>
    %33 = arith.mulf %28, %32 : vector<4x8x8xf32>
    %34 = arith.truncf %33 : vector<4x8x8xf32> to vector<4x8x8xbf16>
    %c0_15 = arith.constant 0 : index
    %c0_16 = arith.constant 0 : index
    %c0_17 = arith.constant 0 : index
    %35 = vector.load %arg25[%c0_15, %c0_16, %c0_17] : memref<4x8x8xbf16, #tpu.memory_space<vmem>>, vector<4x8x8xbf16>
    "tpu.trace_start"() <{level = 10 : i32, message = "nqk,nkd->nqd"}> : () -> ()
    %cst_18 = arith.constant dense<0.000000e+00> : vector<4x8x8xf32>
    %36 = tpu.matmul %34, %35, %cst_18 {dimension_numbers = #tpu.dot_dimension_numbers<[2], [1], [1], [2], [0, 0, 0, 1, 1, 2], [0], [0]>} : vector<4x8x8xbf16>, vector<4x8x8xbf16>, vector<4x8x8xf32> -> vector<4x8x8xf32>
    "tpu.trace_stop"() : () -> ()
    %37 = tpu.transpose %36, [1, 0, 2] : vector<4x8x8xf32> -> vector<8x4x8xf32>
    %38 = vector.shape_cast %37 : vector<8x4x8xf32> to vector<8x32xf32>
    %39 = arith.truncf %38 : vector<8x32xf32> to vector<8x32xbf16>
    %c0_19 = arith.constant 0 : index
    %c0_20 = arith.constant 0 : index
    %40 = vector.load %arg12[%c0_19, %c0_20] : memref<32x32xbf16, #tpu.memory_space<vmem>>, vector<32x32xbf16>
    %cst_21 = arith.constant dense<0.000000e+00> : vector<8x32xf32>
    %41 = tpu.matmul %39, %40, %cst_21 {dimension_numbers = #tpu.dot_dimension_numbers<[1], [0], [0], [1], [0, 0, 1, 1], [], []>} : vector<8x32xbf16>, vector<32x32xbf16>, vector<8x32xf32> -> vector<8x32xf32>
    %c0_22 = arith.constant 0 : index
    %c0_23 = arith.constant 0 : index
    %42 = vector.load %arg13[%c0_22, %c0_23] : memref<1x32xf32, #tpu.memory_space<vmem>>, vector<1x32xf32>
    %43 = vector.broadcast %42 : vector<1x32xf32> to vector<8x32xf32>
    %44 = arith.addf %41, %43 : vector<8x32xf32>
    %45 = arith.extf %6 : vector<8x32xbf16> to vector<8x32xf32>
    %46 = arith.addf %44, %45 : vector<8x32xf32>
    %c0_24 = arith.constant 0 : index
    %c0_25 = arith.constant 0 : index
    %47 = vector.load %arg14[%c0_24, %c0_25] : memref<1x32xf32, #tpu.memory_space<vmem>>, vector<1x32xf32>
    %c0_26 = arith.constant 0 : index
    %c0_27 = arith.constant 0 : index
    %48 = vector.load %arg15[%c0_26, %c0_27] : memref<1x32xf32, #tpu.memory_space<vmem>>, vector<1x32xf32>
    %cst_28 = arith.constant dense<0.000000e+00> : vector<8xf32>
    %49 = vector.multi_reduction <add>, %46, %cst_28 [1] : vector<8x32xf32> to vector<8xf32>
    %50 = vector.shape_cast %49 : vector<8xf32> to vector<8x1xf32>
    %cst_29 = arith.constant 3.200000e+01 : f32
    %51 = vector.broadcast %cst_29 : f32 to vector<8x1xf32>
    %52 = arith.divf %50, %51 : vector<8x1xf32>
    %53 = vector.broadcast %52 : vector<8x1xf32> to vector<8x32xf32>
    %54 = arith.subf %46, %53 : vector<8x32xf32>
    %55 = arith.mulf %54, %54 : vector<8x32xf32>
    %cst_30 = arith.constant dense<0.000000e+00> : vector<8xf32>
    %56 = vector.multi_reduction <add>, %55, %cst_30 [1] : vector<8x32xf32> to vector<8xf32>
    %57 = vector.shape_cast %56 : vector<8xf32> to vector<8x1xf32>
    %cst_31 = arith.constant 3.200000e+01 : f32
    %58 = vector.broadcast %cst_31 : f32 to vector<8x1xf32>
    %59 = arith.divf %57, %58 : vector<8x1xf32>
    %60 = vector.broadcast %52 : vector<8x1xf32> to vector<8x32xf32>
    %61 = arith.subf %46, %60 : vector<8x32xf32>
    %cst_32 = arith.constant 9.99999996E-13 : f32
    %62 = vector.broadcast %cst_32 : f32 to vector<8x1xf32>
    %63 = arith.addf %59, %62 : vector<8x1xf32>
    %64 = math.rsqrt %63 : vector<8x1xf32>
    %65 = vector.broadcast %64 : vector<8x1xf32> to vector<8x32xf32>
    %66 = arith.mulf %61, %65 : vector<8x32xf32>
    %67 = vector.broadcast %47 : vector<1x32xf32> to vector<8x32xf32>
    %68 = arith.mulf %66, %67 : vector<8x32xf32>
    %69 = vector.broadcast %48 : vector<1x32xf32> to vector<8x32xf32>
    %70 = arith.addf %68, %69 : vector<8x32xf32>
    %71 = arith.truncf %70 : vector<8x32xf32> to vector<8x32xbf16>
    %cst_33 = arith.constant 0.000000e+00 : f32
    %72 = vector.broadcast %cst_33 : f32 to vector<8x32xf32>
    %c0_34 = arith.constant 0 : index
    %c0_35 = arith.constant 0 : index
    %73 = vector.load %arg16[%c0_34, %c0_35] : memref<32x64xbf16, #tpu.memory_space<vmem>>, vector<32x64xbf16>
    %cst_36 = arith.constant dense<0.000000e+00> : vector<8x64xf32>
    %74 = tpu.matmul %71, %73, %cst_36 {dimension_numbers = #tpu.dot_dimension_numbers<[1], [0], [0], [1], [0, 0, 1, 1], [], []>} : vector<8x32xbf16>, vector<32x64xbf16>, vector<8x64xf32> -> vector<8x64xf32>
    %c0_37 = arith.constant 0 : index
    %c0_38 = arith.constant 0 : index
    %75 = vector.load %arg17[%c0_37, %c0_38] : memref<1x64xf32, #tpu.memory_space<vmem>>, vector<1x64xf32>
    %76 = vector.broadcast %75 : vector<1x64xf32> to vector<8x64xf32>
    %77 = arith.addf %74, %76 : vector<8x64xf32>
    %78 = arith.mulf %77, %77 : vector<8x64xf32>
    %79 = arith.mulf %77, %78 : vector<8x64xf32>
    %cst_39 = arith.constant 4.471500e-02 : f32
    %80 = vector.broadcast %cst_39 : f32 to vector<8x64xf32>
    %81 = arith.mulf %80, %79 : vector<8x64xf32>
    %82 = arith.addf %77, %81 : vector<8x64xf32>
    %cst_40 = arith.constant 0.797884583 : f32
    %83 = vector.broadcast %cst_40 : f32 to vector<8x64xf32>
    %84 = arith.mulf %83, %82 : vector<8x64xf32>
    %85 = math.tanh %84 : vector<8x64xf32>
    %cst_41 = arith.constant 1.000000e+00 : f32
    %86 = vector.broadcast %cst_41 : f32 to vector<8x64xf32>
    %87 = arith.addf %86, %85 : vector<8x64xf32>
    %cst_42 = arith.constant 5.000000e-01 : f32
    %88 = vector.broadcast %cst_42 : f32 to vector<8x64xf32>
    %89 = arith.mulf %88, %87 : vector<8x64xf32>
    %90 = arith.mulf %77, %89 : vector<8x64xf32>
    %91 = arith.truncf %90 : vector<8x64xf32> to vector<8x64xbf16>
    %c0_43 = arith.constant 0 : index
    %c0_44 = arith.constant 0 : index
    %92 = vector.load %arg18[%c0_43, %c0_44] : memref<64x32xbf16, #tpu.memory_space<vmem>>, vector<64x32xbf16>
    %cst_45 = arith.constant dense<0.000000e+00> : vector<8x32xf32>
    %93 = tpu.matmul %91, %92, %cst_45 {dimension_numbers = #tpu.dot_dimension_numbers<[1], [0], [0], [1], [0, 0, 1, 1], [], []>} : vector<8x64xbf16>, vector<64x32xbf16>, vector<8x32xf32> -> vector<8x32xf32>
    %94 = arith.addf %72, %93 : vector<8x32xf32>
    %c0_46 = arith.constant 0 : index
    %c0_47 = arith.constant 0 : index
    %95 = vector.load %arg19[%c0_46, %c0_47] : memref<1x32xf32, #tpu.memory_space<vmem>>, vector<1x32xf32>
    %96 = vector.broadcast %95 : vector<1x32xf32> to vector<8x32xf32>
    %97 = arith.addf %94, %96 : vector<8x32xf32>
    %98 = arith.addf %97, %70 : vector<8x32xf32>
    %c0_48 = arith.constant 0 : index
    %c0_49 = arith.constant 0 : index
    %99 = vector.load %arg20[%c0_48, %c0_49] : memref<1x32xf32, #tpu.memory_space<vmem>>, vector<1x32xf32>
    %c0_50 = arith.constant 0 : index
    %c0_51 = arith.constant 0 : index
    %100 = vector.load %arg21[%c0_50, %c0_51] : memref<1x32xf32, #tpu.memory_space<vmem>>, vector<1x32xf32>
    %cst_52 = arith.constant dense<0.000000e+00> : vector<8xf32>
    %101 = vector.multi_reduction <add>, %98, %cst_52 [1] : vector<8x32xf32> to vector<8xf32>
    %102 = vector.shape_cast %101 : vector<8xf32> to vector<8x1xf32>
    %cst_53 = arith.constant 3.200000e+01 : f32
    %103 = vector.broadcast %cst_53 : f32 to vector<8x1xf32>
    %104 = arith.divf %102, %103 : vector<8x1xf32>
    %105 = vector.broadcast %104 : vector<8x1xf32> to vector<8x32xf32>
    %106 = arith.subf %98, %105 : vector<8x32xf32>
    %107 = arith.mulf %106, %106 : vector<8x32xf32>
    %cst_54 = arith.constant dense<0.000000e+00> : vector<8xf32>
    %108 = vector.multi_reduction <add>, %107, %cst_54 [1] : vector<8x32xf32> to vector<8xf32>
    %109 = vector.shape_cast %108 : vector<8xf32> to vector<8x1xf32>
    %cst_55 = arith.constant 3.200000e+01 : f32
    %110 = vector.broadcast %cst_55 : f32 to vector<8x1xf32>
    %111 = arith.divf %109, %110 : vector<8x1xf32>
    %112 = vector.broadcast %104 : vector<8x1xf32> to vector<8x32xf32>
    %113 = arith.subf %98, %112 : vector<8x32xf32>
    %cst_56 = arith.constant 9.99999996E-13 : f32
    %114 = vector.broadcast %cst_56 : f32 to vector<8x1xf32>
    %115 = arith.addf %111, %114 : vector<8x1xf32>
    %116 = math.rsqrt %115 : vector<8x1xf32>
    %117 = vector.broadcast %116 : vector<8x1xf32> to vector<8x32xf32>
    %118 = arith.mulf %113, %117 : vector<8x32xf32>
    %119 = vector.broadcast %99 : vector<1x32xf32> to vector<8x32xf32>
    %120 = arith.mulf %118, %119 : vector<8x32xf32>
    %121 = vector.broadcast %100 : vector<1x32xf32> to vector<8x32xf32>
    %122 = arith.addf %120, %121 : vector<8x32xf32>
    %123 = arith.truncf %122 : vector<8x32xf32> to vector<8x32xbf16>
    %c0_57 = arith.constant 0 : index
    %c0_58 = arith.constant 0 : index
    %c0_59 = arith.constant 0 : index
    %124 = vector.load %arg22[%c0_57, %c0_58, %c0_59] : memref<1x8x32xbf16, #tpu.memory_space<vmem>>, vector<1x8x32xbf16>
    %125 = vector.shape_cast %124 : vector<1x8x32xbf16> to vector<8x32xbf16>
    %126 = vector.shape_cast %123 : vector<8x32xbf16> to vector<1x8x32xbf16>
    tpu.vector_store %arg22[%c0_57, %c0_58, %c0_59], %126 {strides = array<i32>} : memref<1x8x32xbf16, #tpu.memory_space<vmem>>, vector<1x8x32xbf16>,
    return
  }
  func.func @transform_0(%arg0: i32, %arg1: i32) -> (i32, i32, i32) {
    %c0_i32 = arith.constant 0 : i32
    %c0_i32_0 = arith.constant 0 : i32
    %c0_i32_1 = arith.constant 0 : i32
    return %arg0, %c0_i32, %c0_i32_0 : i32, i32, i32
  }
  func.func @transform_1(%arg0: i32, %arg1: i32) -> (i32, i32, i32) {
    %c0_i32 = arith.constant 0 : i32
    %c0_i32_0 = arith.constant 0 : i32
    %c0_i32_1 = arith.constant 0 : i32
    return %arg0, %c0_i32, %c0_i32_0 : i32, i32, i32
  }
  func.func @transform_2(%arg0: i32, %arg1: i32) -> (i32, i32) {
    %c0_i32 = arith.constant 0 : i32
    %c0_i32_0 = arith.constant 0 : i32
    %c0_i32_1 = arith.constant 0 : i32
    return %c0_i32, %c0_i32_0 : i32, i32
  }
  func.func @transform_3(%arg0: i32, %arg1: i32) -> (i32, i32, i32) {
    %c0_i32 = arith.constant 0 : i32
    %c0_i32_0 = arith.constant 0 : i32
    %c0_i32_1 = arith.constant 0 : i32
    return %arg0, %c0_i32, %c0_i32_0 : i32, i32, i32
  }
  func.func @transform_4(%arg0: i32, %arg1: i32) -> (i32, i32) {
    %c0_i32 = arith.constant 0 : i32
    %c0_i32_0 = arith.constant 0 : i32
    %c0_i32_1 = arith.constant 0 : i32
    return %c0_i32, %c0_i32_0 : i32, i32
  }
  func.func @transform_5(%arg0: i32, %arg1: i32) -> (i32, i32) {
    %c0_i32 = arith.constant 0 : i32
    %c0_i32_0 = arith.constant 0 : i32
    %c0_i32_1 = arith.constant 0 : i32
    return %c0_i32, %c0_i32_0 : i32, i32
  }
  func.func @transform_6(%arg0: i32, %arg1: i32) -> (i32, i32) {
    %c0_i32 = arith.constant 0 : i32
    %c0_i32_0 = arith.constant 0 : i32
    %c0_i32_1 = arith.constant 0 : i32
    return %c0_i32, %c0_i32_0 : i32, i32
  }
  func.func @transform_7(%arg0: i32, %arg1: i32) -> (i32, i32) {
    %c0_i32 = arith.constant 0 : i32
    %c0_i32_0 = arith.constant 0 : i32
    %c0_i32_1 = arith.constant 0 : i32
    return %c0_i32, %c0_i32_0 : i32, i32
  }
  func.func @transform_8(%arg0: i32, %arg1: i32) -> (i32, i32) {
    %c0_i32 = arith.constant 0 : i32
    %c0_i32_0 = arith.constant 0 : i32
    %c0_i32_1 = arith.constant 0 : i32
    return %c0_i32, %c0_i32_0 : i32, i32
  }
  func.func @transform_9(%arg0: i32, %arg1: i32) -> (i32, i32) {
    %c0_i32 = arith.constant 0 : i32
    %c0_i32_0 = arith.constant 0 : i32
    %c0_i32_1 = arith.constant 0 : i32
    return %c0_i32, %c0_i32_0 : i32, i32
  }
  func.func @transform_10(%arg0: i32, %arg1: i32) -> (i32, i32) {
    %c0_i32 = arith.constant 0 : i32
    %c0_i32_0 = arith.constant 0 : i32
    %c0_i32_1 = arith.constant 0 : i32
    return %c0_i32, %c0_i32_0 : i32, i32
  }
  func.func @transform_11(%arg0: i32, %arg1: i32) -> (i32, i32) {
    %c0_i32 = arith.constant 0 : i32
    %c0_i32_0 = arith.constant 0 : i32
    %c0_i32_1 = arith.constant 0 : i32
    return %c0_i32, %c0_i32_0 : i32, i32
  }
  func.func @transform_12(%arg0: i32, %arg1: i32) -> (i32, i32) {
    %c0_i32 = arith.constant 0 : i32
    %c0_i32_0 = arith.constant 0 : i32
    %c0_i32_1 = arith.constant 0 : i32
    return %c0_i32, %c0_i32_0 : i32, i32
  }
  func.func @transform_13(%arg0: i32, %arg1: i32) -> (i32, i32) {
    %c0_i32 = arith.constant 0 : i32
    %c0_i32_0 = arith.constant 0 : i32
    %c0_i32_1 = arith.constant 0 : i32
    return %c0_i32, %c0_i32_0 : i32, i32
  }
  func.func @transform_14(%arg0: i32, %arg1: i32) -> (i32, i32) {
    %c0_i32 = arith.constant 0 : i32
    %c0_i32_0 = arith.constant 0 : i32
    %c0_i32_1 = arith.constant 0 : i32
    return %c0_i32, %c0_i32_0 : i32, i32
  }
  func.func @transform_15(%arg0: i32, %arg1: i32) -> (i32, i32) {
    %c0_i32 = arith.constant 0 : i32
    %c0_i32_0 = arith.constant 0 : i32
    %c0_i32_1 = arith.constant 0 : i32
    return %c0_i32, %c0_i32_0 : i32, i32
  }
  func.func @transform_16(%arg0: i32, %arg1: i32) -> (i32, i32) {
    %c0_i32 = arith.constant 0 : i32
    %c0_i32_0 = arith.constant 0 : i32
    %c0_i32_1 = arith.constant 0 : i32
    return %c0_i32, %c0_i32_0 : i32, i32
  }
  func.func @transform_17(%arg0: i32, %arg1: i32) -> (i32, i32) {
    %c0_i32 = arith.constant 0 : i32
    %c0_i32_0 = arith.constant 0 : i32
    %c0_i32_1 = arith.constant 0 : i32
    return %c0_i32, %c0_i32_0 : i32, i32
  }
  func.func @transform_18(%arg0: i32, %arg1: i32) -> (i32, i32) {
    %c0_i32 = arith.constant 0 : i32
    %c0_i32_0 = arith.constant 0 : i32
    %c0_i32_1 = arith.constant 0 : i32
    return %c0_i32, %c0_i32_0 : i32, i32
  }
  func.func @transform_19(%arg0: i32, %arg1: i32) -> (i32, i32) {
    %c0_i32 = arith.constant 0 : i32
    %c0_i32_0 = arith.constant 0 : i32
    %c0_i32_1 = arith.constant 0 : i32
    return %c0_i32, %c0_i32_0 : i32, i32
  }
  func.func @transform_20(%arg0: i32, %arg1: i32) -> (i32, i32, i32) {
    %c0_i32 = arith.constant 0 : i32
    %c0_i32_0 = arith.constant 0 : i32
    return %arg0, %arg1, %c0_i32 : i32, i32, i32
  }
}

</mosaic_0001>

<bundles_post_ra>
// kernel: bert_encoder_forward.2
= control target key start
LH: loop header
LB: loop body
LE: loop exit
PB: predicated region body
PF: predicated region fallthrough
CT: control target
= control target key end

     0   :  { %s3370_s0 = inlined_call_operand.vmem [shape: bf16[2,8,32], index: 0, kind: input, shape index: {}]   ;;  %s3371_s1 = inlined_call_operand.vmem [shape: s32[2,1,8], index: 1, kind: input, shape index: {}]   ;;  %s3372_s2 = inlined_call_operand.vmem [shape: bf16[7,32], index: 2, kind: input, shape index: {}]   ;;  %s3373_s3 = inlined_call_operand.vmem [shape: f32[2,1,8], index: 3, kind: input, shape index: {}]   ;;  %s3374_s4 = inlined_call_operand.vmem [shape: bf16[32,32], index: 4, kind: input, shape index: {}]   ;;  %s3375_s5 = inlined_call_operand.hbm [shape: f32[1,32], index: 5, kind: input, shape index: {}]   ;;  %s3376_s6 = inlined_call_operand.vmem [shape: bf16[32,32], index: 6, kind: input, shape index: {}]   ;;  %s3377_s7 = inlined_call_operand.hbm [shape: f32[1,32], index: 7, kind: input, shape index: {}]   ;;  %s3378_s8 = inlined_call_operand.vmem [shape: bf16[32,32], index: 8, kind: input, shape index: {}]   ;;  %s3379_s9 = inlined_call_operand.hbm [shape: f32[1,32], index: 9, kind: input, shape index: {}]   ;;  %s3380_s10 = inlined_call_operand.vmem [shape: bf16[32,32], index: 10, kind: input, shape index: {}]   ;;  %s3381_s11 = inlined_call_operand.hbm [shape: f32[1,32], index: 11, kind: input, shape index: {}]   ;;  %s3382_s12 = inlined_call_operand.hbm [shape: f32[1,32], index: 12, kind: input, shape index: {}]   ;;  %s3383_s13 = inlined_call_operand.hbm [shape: f32[1,32], index: 13, kind: input, shape index: {}]   ;;  %s3384_s14 = inlined_call_operand.hbm [shape: bf16[32,64], index: 14, kind: input, shape index: {}]   ;;  %s3385_s15 = inlined_call_operand.hbm [shape: f32[1,64], index: 15, kind: input, shape index: {}]   ;;  %s3386_s16 = inlined_call_operand.vmem [shape: bf16[64,32], index: 16, kind: input, shape index: {}]   ;;  %s3387_s17 = inlined_call_operand.hbm [shape: f32[1,32], index: 17, kind: input, shape index: {}]   ;;  %s3388_s18 = inlined_call_operand.hbm [shape: f32[1,32], index: 18, kind: input, shape index: {}]   ;;  %s3389_s19 = inlined_call_operand.hbm [shape: f32[1,32], index: 19, kind: input, shape index: {}]   ;;  %s3390_s20 = inlined_call_operand.vmem [shape: bf16[2,8,32], index: 20, kind: output, shape index: {}]  }
   0x1   :  { %3394 = sst [smem:[#allocation29_spill]] %s3370_s0 }
   0x2   :  { %3395 = sst [smem:[#allocation30_spill]] %s3371_s1 }
   0x3   :  { %3396 = sst [smem:[#allocation31_spill]] %s3372_s2 }
   0x4   :  { %3397 = sst [smem:[#allocation32_spill]] %s3373_s3 }
   0x5   :  { %3398 = sst [smem:[#allocation33_spill]] %s3374_s4 }
   0x6   :  { %3399 = sst [smem:[#allocation34_spill]] %s3375_s5 }
   0x7   :  { %3400 = sst [smem:[#allocation35_spill]] %s3377_s7 }
   0x8   :  { %3401 = sst [smem:[#allocation36_spill]] %s3381_s11 }
   0x9   :  { %3402 = sst [smem:[#allocation37_spill]] %s3383_s13 }
   0xa   :  { %3403 = sst [smem:[#allocation38_spill]] %s3390_s20 }
   0xb   :  { %25 = vsyncpa [#allocation6], 0 }
   0xc   :  { %26 = vsyncpa [#allocation8], 0 }
   0xd   :  { %27 = vsyncpa [#allocation11], 0 }
   0xe   :  { %28 = vsyncpa [#allocation14], 0 }
   0xf   :  { %29 = vsyncpa [#allocation17], 0 }
  0x10   :  { %30 = vsyncpa [#allocation20], 0  ;;  %s2958_s1 = smov 0   ;;  %s2960_s22 = smov 0  }
  0x11   :  { %s2962_s23 = smov 0  }
  0x12 LB: > { %3404 = sst [smem:[#allocation28_spill]] %s2827_s23  ;;  %s2149_s3 = sadd.s32 4294967295, %s2827_s23   ;;  %s2827_s23 = sphi %s2962_s23, %s36_s23   ;;  %s2823_s22 = sphi %s2960_s22, %s3420_s22   ;;  %s2819_s1 = sphi %s2958_s1, %s3419_s1  }
  0x13   : > { %s3405_s7 = sld [smem:[#allocation35_spill]]  ;;  %p2151_p0 = scmp.ge.s32.totalorder %s2827_s23, 1 }
  0x14   : > { %p516_p1 = scmp.lt.s32.totalorder %s2827_s23, 3  ;;  %p2979_p2 = scmp.eq.s32.totalorder %s2149_s3, 0 }
  0x15   : > { %s2829_s28 = smov [#allocation7]   ;;  %s3408_s11 = sld [smem:[#allocation36_spill]] }
  0x16   : > { %p2983_p3 = pnand %p2151_p0, %p516_p1  ;;  %s551_s4 = sshll.u32 %s2829_s28, 4  ;;  %s552_s4 = int_to_ptr.vmem [resolvable:$true] %s551_s4 }
  0x17   : > { %s3409_s13 = sld [smem:[#allocation37_spill]]  ;;  %s2830_s28 = smov [#allocation10]  }
  0x18   : > { %p2310_p4 = pneg %p2983_p3  ;;  %s2831_s29 = smov [#allocation13]  }
  0x19   : > { %s549_s25 = sshll.u32 %s3405_s7, 4  ;;  %s581_s7 = sshll.u32 %s2830_s28, 4  ;;  %s550_s25 = int_to_ptr.hbm [resolvable:$true] %s549_s25  ;;  %s582_s7 = int_to_ptr.vmem [resolvable:$true] %s581_s7 }
  0x1a   : > { %p2997_p5 = pnand %p2979_p2, %p2310_p4  ;;  %s605_s30 = sshll.u32 %s2831_s29, 4  ;;  %s606_s30 = int_to_ptr.vmem [resolvable:$true] %s605_s30 }
  0x1b   : > { %s579_s0 = sshll.u32 %s3408_s11, 4  ;;  %s629_s11 = sshll.u32 %s3385_s15, 4  ;;  %s580_s0 = int_to_ptr.hbm [resolvable:$true] %s579_s0  ;;  %s630_s11 = int_to_ptr.hbm [resolvable:$true] %s629_s11 }
  0x1c   : > { %2316 = dma.hbm_to_vmem [thread:$0]  (!%p2997_p5), %s550_s25, 16, %s552_s4, [#allocation8]  }
  0x1d   : > { %s603_s2 = sshll.u32 %s3409_s13, 4  ;;  %s656_s23 = sshll.u32 %s3388_s18, 4  ;;  %s604_s2 = int_to_ptr.hbm [resolvable:$true] %s603_s2  ;;  %s657_s23 = int_to_ptr.hbm [resolvable:$true] %s656_s23 }
  0x1e   : > { %2322 = dma.hbm_to_vmem [thread:$0]  (!%p2997_p5), %s580_s0, 16, %s582_s7, [#allocation11]  }
  0x1f   : > { %2328 = dma.hbm_to_vmem [thread:$0]  (!%p2997_p5), %s604_s2, 16, %s606_s30, [#allocation14]  }
  0x20   : > { %s2832_s20 = smov [#allocation16]   ;;  %s2833_s7 = smov [#allocation19]  }
  0x21   : > { %s631_s25 = sshll.u32 %s2832_s20, 4  ;;  %s658_s4 = sshll.u32 %s2833_s7, 4  ;;  %s632_s25 = int_to_ptr.vmem [resolvable:$true] %s631_s25  ;;  %s659_s4 = int_to_ptr.vmem [resolvable:$true] %s658_s4 }
  0x22   : > { %2334 = dma.hbm_to_vmem [thread:$0]  (!%p2997_p5), %s630_s11, 16, %s632_s25, [#allocation17]  }
  0x23   : > { %2340 = dma.hbm_to_vmem [thread:$0]  (!%p2997_p5), %s657_s23, 16, %s659_s4, [#allocation20]  }
  0x24   : > { %s48_s0 = sadd.s32 1, %s2823_s22  ;;  %s3411_s5 = sld [smem:[#allocation34_spill]] }
  0x25   : > { %p50_p6 = scmp.ge.s32.totalorder %s48_s0, 2  ;;  %s564_s30 = sshll.u32 %s3379_s9, 4  ;;  %s565_s30 = int_to_ptr.hbm [resolvable:$true] %s564_s30 }
  0x26   : > { %s2834_s11 = smov [#allocation5]   ;;  %s2835_s23 = smov [#allocation9]  }
  0x27   : > { %s3422_s0 = smov (%p50_p6, %s48_s0), 0  ;;  %s536_s24 = sshll.u32 %s2834_s11, 4  ;;  %s537_s24 = int_to_ptr.vmem [resolvable:$true] %s536_s24 }
  0x28   : > { %s566_s28 = sshll.u32 %s2835_s23, 4  ;;  %s591_s4 = sshll.u32 %s3382_s12, 4  ;;  %s567_s28 = int_to_ptr.vmem [resolvable:$true] %s566_s28  ;;  %s592_s4 = int_to_ptr.hbm [resolvable:$true] %s591_s4 }
  0x29   : > { %2319 = dma.hbm_to_vmem [thread:$0]  (!%p2997_p5), %s565_s30, 16, %s567_s28, [#allocation8]  }
  0x2a   : > { %s534_s2 = sshll.u32 %s3411_s5, 4  ;;  %s614_s13 = sshll.u32 %s3384_s14, 4  ;;  %s535_s2 = int_to_ptr.hbm [resolvable:$true] %s534_s2  ;;  %s615_s13 = int_to_ptr.hbm [resolvable:$true] %s614_s13 }
  0x2b   : > { %2313 = dma.hbm_to_vmem [thread:$0]  (!%p2997_p5), %s535_s2, 16, %s537_s24, [#allocation6]  }
  0x2c   : > { %s2836_s20 = smov [#allocation12]   ;;  %s2837_s2 = smov [#allocation15]  }
  0x2d   : > { %s593_s11 = sshll.u32 %s2836_s20, 4  ;;  %s616_s24 = sshll.u32 %s2837_s2, 4  ;;  %s594_s11 = int_to_ptr.vmem [resolvable:$true] %s593_s11  ;;  %s617_s24 = int_to_ptr.vmem [resolvable:$true] %s616_s24 }
  0x2e   : > { %2325 = dma.hbm_to_vmem [thread:$0]  (!%p2997_p5), %s592_s4, 16, %s594_s11, [#allocation11]  }
  0x2f   : > { %s2838_s23 = smov 64   ;;  %s2839_s25 = smov 4  }
  0x30   : > { %2331 = dma.hbm_to_vmem [thread:$0]  (!%p2997_p5), %s615_s13, 256, %s617_s24, [#allocation14], %s2838_s23, %s2838_s23, %s2839_s25  }
  0x31   : > { %s644_s7 = sshll.u32 %s3387_s17, 4  ;;  %s2840_s29 = smov [#allocation18]   ;;  %s645_s7 = int_to_ptr.hbm [resolvable:$true] %s644_s7 }
  0x32   : > { %s646_s21 = sshll.u32 %s2840_s29, 4  ;;  %s668_s4 = sshll.u32 %s3389_s19, 4  ;;  %s647_s21 = int_to_ptr.vmem [resolvable:$true] %s646_s21  ;;  %s669_s4 = int_to_ptr.hbm [resolvable:$true] %s668_s4 }
  0x33   : > { %2337 = dma.hbm_to_vmem [thread:$0]  (!%p2997_p5), %s645_s7, 16, %s647_s21, [#allocation17]  }
  0x34   : > { %s2841_s11 = smov [#allocation21]   ;;  %702 = sbr.rel (%p2983_p3) target bundleno = 2315 (0x90b), region = 100 }
  0x35   : > { %s670_s2 = sshll.u32 %s2841_s11, 4  ;;  %s671_s2 = int_to_ptr.vmem [resolvable:$true] %s670_s2 }
  0x36   : > { %2343 = dma.hbm_to_vmem [thread:$0]  (!%p2997_p5), %s669_s4, 16, %s671_s2, [#allocation20]  }
  0x39   : > { %2794 = dma.done.wait (%p2979_p2), [#allocation6], 16  }
  0x3a   : > { %2796 = vsyncadd (%p2979_p2), [#allocation6], 4294967280 }
  0x3b   : > { %2798 = dma.done.wait (%p2979_p2), [#allocation8], 32  }
  0x3c   : > { %2800 = vsyncadd (%p2979_p2), [#allocation8], 4294967264 }
  0x3d   : > { %2802 = dma.done.wait (%p2979_p2), [#allocation11], 32  }
  0x3e   : > { %2804 = vsyncadd (%p2979_p2), [#allocation11], 4294967264 }
  0x3f   : > { %2806 = dma.done.wait (%p2979_p2), [#allocation14], 272  }
  0x40   : > { %2808 = vsyncadd (%p2979_p2), [#allocation14], 4294967024 }
  0x41   : > { %2810 = dma.done.wait (%p2979_p2), [#allocation17], 32  }
  0x42   : > { %2812 = vsyncadd (%p2979_p2), [#allocation17], 4294967264 }
  0x43   : > { %2814 = dma.done.wait (%p2979_p2), [#allocation20], 32  }
  0x44   : > { %2816 = vsyncadd (%p2979_p2), [#allocation20], 4294967264  ;;  %p818_p7 = scmp.lt.s32.totalorder %s2819_s1, 1  ;;  %vm869_vm0 = vcmask 1042432   ;;  %v841_v0 = vlaneseq  ;;  %vm870_vm1 = vcmask 1043456   ;;  %v2842_v1 = vmov 65535  }
  0x45   : > { %v871_v2 = vsel %vm869_vm0, 4294967295, %v2842_v1  ;;  %s3412_s3 = sld [smem:[#allocation30_spill]]  ;;  %v2843_v8 = vmov 0.0   ;;  %v2253_v11 = vld [vmem:[%s3376_s6 + $0x8] sm:$0xff]  ;;  %vm865_vm3 = vcmask 56320   ;;  %v2252_v14 = vld [vmem:[%s3376_s6] sm:$0xff] }
  0x46   : > { %s3424_s1 = smov (!%p818_p7, %s2819_s1), 1  ;;  %v842_v3 = vshrl.u32 %v841_v0, 7  ;;  %v872_v4 = vsel %vm870_vm1, %v871_v2, 0  ;;  %s3413_s23 = sld [smem:[#allocation31_spill]]  ;;  %v2255_v12 = vld [vmem:[%s3378_s8 + $0x8] sm:$0xff]  ;;  %925 = vmatpush.bf16.msra.mxu1 %v2253_v11  ;;  %v2254_v15 = vld [vmem:[%s3378_s8] sm:$0xff] }
  0x47   : > { %958 = vmatpush.bf16.msra.mxu2 %v2255_v12  ;;  %s3414_s5 = sld [smem:[#allocation33_spill]]  ;;  %vm893_vm4 = vcmask 257024   ;;  %vm915_vm5 = vcmask 261120   ;;  %v2416_v25 = vld [vmem:[#allocation7] ss:$0 sm:$0xff]  ;;  %s2844_s30 = smov 112  }
  0x48   : > { %s2845_s28 = smov 120   ;;  %v2418_v31 = vld [vmem:[#allocation5] ss:$0 sm:$0xff]  ;;  %s2846_s7 = smov 104   ;;  %v2417_v36 = vld [vmem:[#allocation9] ss:$0 sm:$0xff] }
  0x49   : > { %s3416_s20 = sld [smem:[#allocation32_spill]]  ;;  %v2847_v43 = vmov 1983009808   ;;  %v2848_v51 = vmov 1934713408   ;;  %vm996_vm6 = vcmask 1047556  }
  0x4a   : > { %926 = vmatpush.bf16.msra.mxu1 %v2252_v14  ;;  %v987_v44 = vunpack.c.l.s4 %v2847_v43  ;;  %v1001_v52 = vunpack.c.l.s4 %v2848_v51  ;;  %vm1092_vm7 = vcmask 60416   ;;  %vm1402_vm8 = vcmask 64512   ;;  %s2849_s27 = smov 24   ;;  %s2851_s26 = smov 8  }
  0x4b   : > { %s824_s13 = scalar_lea.vmem %s3412_s3, %s3424_s1  ;;  %959 = vmatpush.bf16.msra.mxu2 %v2254_v15  ;;  %s2850_s3 = smov 16   ;;  %vm1732_vm9 = vcmask 130048   ;;  %vm1734_vm10 = vcmask 195584   ;;  %vm1897_vm15 = vcmask 523264  }
  0x4c   : > { %v2415_v5 = vld [vmem:[%s824_s13] ss:$0 sm:$0xff]  ;;  %s2176_s13 = sshll.u32 %s3424_s1, 2  ;;  %v3130_v49 = vunpack.c.0.s8 %v987_v44  ;;  %v3134_v61 = vunpack.c.0.s8 %v1001_v52  ;;  %s3417_s24 = sld [smem:[#allocation38_spill]] }
  0x4d   : > { %v848_v6 = vld [vmem:[%s3413_s23] sm:$0xf]  ;;  %vm844_vm2 = vcmp.eq.s32.totalorder %v842_v3, %v2415_v5  ;;  %v2257_v16 = vld [vmem:[%s3414_s5 + $0x8] sm:$0xff]  ;;  %s3415_s23 = sld [smem:[#allocation29_spill]] }
  0x4e   : > { %v874_v7 = vand.u32 %v872_v4, %v848_v6  ;;  %v2178_v9 = vsel %vm844_vm2, 1.0, %v2843_v8  ;;  %1264 = vmatpush.bf16.msra.mxu3 %v2257_v16  ;;  %v2256_v17 = vld [vmem:[%s3414_s5] sm:$0xff] }
  0x4f   : > { %v847_v10 = vpack.c.bf16 %v2178_v9, %v2178_v9  ;;  %s827_s4 = scalar_lea.vmem %s3416_s20, %s3424_s1 }
  0x50   : > { %883 = vmatpush.bf16.msra.mxu0 %v874_v7 }
  0x51   : > { %849 = vxpose.xlu0.c.b16.start.end [1/1] (short) (narrow) %v847_v10, 16 }
  0x52   : > { %1265 = vmatpush.bf16.msra.mxu3 %v2256_v17 }
  0x53   : > { %s821_s25 = scalar_lea.vmem %s3415_s23, %s2176_s13  ;;  %s834_s23 = scalar_lea.vmem %s3417_s24, %s2176_s13 }
  0x54   : > { %v889_v18 = vld [vmem:[%s821_s25] sm:$0xf] }
  0x55   : > { %v890_v19 = vunpack.c.l.bf16 %v889_v18 }
  0xfd   : > { %v857_v13 = vpop.trf.xlu0 }
  0xfe   : > { %2179 = vmatmul.msk.bf16.vlgmr.msra.gmra.mxu0 %vm865_vm3, %v857_v13 }
 0x17b   : > { %v885_v20 = vpop.f32.mrf.mxu0 }
 0x17c   : > { %v891_v21 = vadd.f32 %v890_v19, %v885_v20 }
 0x17e   : > { %v892_v22 = vpack.c.bf16 %v891_v21, %v891_v21 }
 0x180   : > { %894 = vst.msk [vmem:[#allocation2] sm:$0xf] %vm893_vm4, %v892_v22  ;;  %2188 = vmatmul.msk.bf16.vlgmr.msra.gmra.mxu1 %vm915_vm5, %v892_v22  ;;  %2197 = vmatmul.msk.bf16.vlgmr.msra.gmra.mxu2 %vm915_vm5, %v892_v22 }
 0x183   : > { %v887_v23 = vpop.f32.mrf.mxu0 }
 0x187   : > { %v3115_v24 = vld [vmem:[#allocation2] sm:$0xf] }
 0x188   : > { %2206 = vmatmul.msk.bf16.vlgmr.msra.gmra.mxu3 %vm915_vm5, %v3115_v24 }
 0x1fd   : > { %v928_v26 = vpop.f32.mrf.mxu1 }
 0x1fe   : > { %v929_v27 = vadd.f32 %v2416_v25, %v928_v26 }
 0x200   : > { %v965_v28 = vpack.c.bf16 %v929_v27, %v929_v27 }
 0x202   : > { %969 = vrot.lane.b32.xlu1 %v965_v28, %s2844_s30  ;;  %967 = vrot.lane.b32.xlu0 %v965_v28, %s2845_s28  ;;  %v976_v47 = vshrl.u32 %v965_v28, 16 }
 0x203   : > { %v961_v29 = vpop.f32.mrf.mxu2 }
 0x204   : > { %v962_v39 = vadd.f32 %v2417_v36, %v961_v29 }
 0x205   : > { %v930_v30 = vpop.f32.mrf.mxu1 }
 0x206   : > { %v3122_v40 = vpack.c.bf16 %v962_v39, %v962_v39 }
 0x20a   : > { %971 = vrot.lane.b32.xlu1 %v965_v28, %s2846_s7 }
 0x20b   : > { %v963_v32 = vpop.f32.mrf.mxu2  ;;  %v1267_v33 = vpop.f32.mrf.mxu3 }
 0x20c   : > { %v1268_v34 = vadd.f32 %v2418_v31, %v1267_v33 }
 0x20e   : > { %v1271_v35 = vmul.f32 0.35355338, %v1268_v34 }
 0x210   : > { %v1272_v37 = vpack.c.bf16 %v1271_v35, %v1271_v35 }
 0x212   : > { %1278 = vrot.lane.b32.xlu1 %v1272_v37, %s2846_s7  ;;  %1274 = vrot.lane.b32.xlu2 %v1272_v37, %s2845_s28  ;;  %v1283_v60 = vshrl.u32 %v1272_v37, 16 }
 0x213   : > { %v1269_v38 = vpop.f32.mrf.mxu3 }
 0x21a   : > { %1099 = vrot.lane.b32.xlu1 %v3122_v40, %s2845_s28  ;;  %1276 = vrot.lane.b32.xlu2 %v1272_v37, %s2844_s30 }
 0x26c   : > { %v1275_v48 = vpop.permute.xlu2 %1274 }
 0x26d   : > { %v1284_v54 = vshrl.u32 %v1275_v48, 16  ;;  %v1282_v62 = vpack.i.b16 %v1275_v48, %v1272_v37 }
 0x26f   : > { %v1285_v2 = vpack.i.b16 %v1284_v54, %v1283_v60  ;;  %v1296_v9 = vperm.slane %v1282_v62, %v3130_v49 }
 0x271   : > { %v1323_v13 = vperm.slane %v1285_v2, %v3130_v49  ;;  %v1305_v27 = vrot.slane %v1296_v9, 4 }
 0x273   : > { %v1331_v31 = vrot.slane %v1323_v13, 4 }
 0x274   : > { %v970_v41 = vpop.permute.xlu1 %969  ;;  %v968_v42 = vpop.permute.xlu0 %967 }
 0x275   : > { %v977_v45 = vshrl.u32 %v968_v42, 16  ;;  %v975_v46 = vpack.i.b16 %v968_v42, %v965_v28  ;;  %v982_v56 = vshrl.u32 %v970_v41, 16  ;;  %v1277_v7 = vpop.permute.xlu2 %1276 }
 0x276   : > { %v1289_v18 = vshrl.u32 %v1277_v7, 16 }
 0x277   : > { %v978_v50 = vpack.i.b16 %v977_v45, %v976_v47  ;;  %v989_v53 = vperm.slane %v975_v46, %v3130_v49 }
 0x279   : > { %v1016_v57 = vperm.slane %v978_v50, %v3130_v49  ;;  %v998_v63 = vrot.slane %v989_v53, 4 }
 0x27b   : > { %v1024_v3 = vrot.slane %v1016_v57, 4 }
 0x27c   : > { %v972_v55 = vpop.permute.xlu1 %971 }
 0x27d   : > { %v981_v58 = vpack.i.b16 %v972_v55, %v970_v41  ;;  %v983_v59 = vshrl.u32 %v972_v55, 16 }
 0x27f   : > { %v984_v0 = vpack.i.b16 %v983_v59, %v982_v56  ;;  %v994_v1 = vperm.slane %v981_v58, %v3130_v49 }
 0x281   : > { %v995_v4 = vrot.slane %v994_v1, 4  ;;  %v999_v5 = vsel %vm996_vm6, %v994_v1, %v998_v63  ;;  %v1021_v6 = vperm.slane %v984_v0, %v3130_v49 }
 0x282   : > { %v1007_v8 = vperm.slane %v999_v5, %v3134_v61 }
 0x283   : > { %v997_v10 = vsel %vm996_vm6, %v995_v4, %v989_v53  ;;  %v1022_v11 = vrot.slane %v1021_v6, 4  ;;  %v1025_v12 = vsel %vm996_vm6, %v1021_v6, %v1024_v3 }
 0x284   : > { %v1003_v14 = vperm.slane %v997_v10, %v3134_v61  ;;  %v1010_v15 = vrot.slane %v1007_v8, 4  ;;  %v1033_v16 = vperm.slane %v1025_v12, %v3134_v61  ;;  %v1279_v17 = vpop.permute.xlu1 %1278 }
 0x285   : > { %v1023_v19 = vsel %vm996_vm6, %v1022_v11, %v1016_v57  ;;  %v1288_v20 = vpack.i.b16 %v1279_v17, %v1277_v7  ;;  %v1290_v21 = vshrl.u32 %v1279_v17, 16 }
 0x286   : > { %v1008_v22 = vrot.slane %v1003_v14, 4  ;;  %v1011_v23 = vsel %vm996_vm6, 0, %v1010_v15  ;;  %v1029_v25 = vperm.slane %v1023_v19, %v3134_v61  ;;  %v1036_v26 = vrot.slane %v1033_v16, 4 }
 0x287   : > { %v1043_v28 = vrot.slane %v1011_v23, 4  ;;  %v1291_v29 = vpack.i.b16 %v1290_v21, %v1289_v18  ;;  %v1301_v30 = vperm.slane %v1288_v20, %v3130_v49  ;;  %v1038_v35 = vsel %vm996_vm6, %v1010_v15, %v1003_v14 }
 0x288   : > { %v1009_v32 = vsel %vm996_vm6, 0, %v1008_v22  ;;  %v1034_v33 = vrot.slane %v1029_v25, 4  ;;  %v1037_v34 = vsel %vm996_vm6, 0, %v1036_v26  ;;  %v1057_v42 = vsel %vm996_vm6, %v1036_v26, %v1029_v25 }
 0x289   : > { %v1044_v36 = vsel %vm996_vm6, %v1043_v28, %v1009_v32  ;;  %v1062_v37 = vrot.slane %v1037_v34, 4  ;;  %v1302_v38 = vrot.slane %v1301_v30, 4  ;;  %v1306_v43 = vsel %vm996_vm6, %v1301_v30, %v1305_v27 }
 0x28a   : > { %v1035_v39 = vsel %vm996_vm6, 0, %v1034_v33  ;;  %v1048_v41 = vperm.slane %v1044_v36, %v3130_v49  ;;  %v1314_v46 = vperm.slane %v1306_v43, %v3134_v61  ;;  %v1328_v47 = vperm.slane %v1291_v29, %v3130_v49 }
 0x28b   : > { %v1063_v44 = vsel %vm996_vm6, %v1062_v37, %v1035_v39  ;;  %v1304_v45 = vsel %vm996_vm6, %v1302_v38, %v1296_v9  ;;  %v1042_v48 = vperm.slane %v1038_v35, %v3130_v49  ;;  %v1061_v53 = vperm.slane %v1057_v42, %v3130_v49 }
 0x28c   : > { %v1049_v50 = vrot.slane %v1048_v41, 4  ;;  %v1067_v51 = vperm.slane %v1063_v44, %v3130_v49  ;;  %v1310_v52 = vperm.slane %v1304_v45, %v3134_v61  ;;  %v1317_v54 = vrot.slane %v1314_v46, 4 }
 0x28d   : > { %v1329_v55 = vrot.slane %v1328_v47, 4  ;;  %v1332_v56 = vsel %vm996_vm6, %v1328_v47, %v1331_v31 }
 0x28e   : > { %v1050_v57 = vsel %vm996_vm6, %v1049_v50, %v1042_v48  ;;  %v1068_v58 = vrot.slane %v1067_v51, 4  ;;  %v1315_v59 = vrot.slane %v1310_v52, 4  ;;  %v1340_v60 = vperm.slane %v1332_v56, %v3134_v61 }
 0x28f   : > { %v1054_v62 = vperm.slane %v1050_v57, %v3134_v61  ;;  %v1318_v63 = vsel %vm996_vm6, 0, %v1317_v54  ;;  %v1330_v0 = vsel %vm996_vm6, %v1329_v55, %v1323_v13  ;;  %v1345_v16 = vsel %vm996_vm6, %v1317_v54, %v1310_v52 }
 0x290   : > { %v1069_v1 = vsel %vm996_vm6, %v1068_v58, %v1061_v53  ;;  %v1336_v2 = vperm.slane %v1330_v0, %v3134_v61  ;;  %v1343_v3 = vrot.slane %v1340_v60, 4  ;;  %v1316_v6 = vsel %vm996_vm6, 0, %v1315_v59  ;;  %v2419_v60 = vld [vmem:[%s827_s4] ss:$0 sm:$0xff] }
 0x291   : > { %v1055_v4 = vrot.slane %v1054_v62, 4  ;;  %v1073_v5 = vperm.slane %v1069_v1, %v3134_v61  ;;  %v1080_v7 = vshrl.u32 %v1054_v62, 16  ;;  %v1350_v10 = vrot.slane %v1318_v63, 4 }
 0x292   : > { %v1341_v8 = vrot.slane %v1336_v2, 4  ;;  %v1344_v9 = vsel %vm996_vm6, 0, %v1343_v3  ;;  %v1349_v26 = vperm.slane %v1345_v16, %v3130_v49  ;;  %v1364_v27 = vsel %vm996_vm6, %v1343_v3, %v1336_v2  ;;  %v1100_v16 = vpop.permute.xlu1 %1099 }
 0x293   : > { %v1056_v11 = vsel %vm996_vm6, 0, %v1055_v4  ;;  %v1074_v12 = vrot.slane %v1073_v5, 4  ;;  %v1078_v13 = vpack.i.b16 %v1073_v5, %v1054_v62  ;;  %v1081_v14 = vshrl.u32 %v1073_v5, 16 }
 0x294   : > { %v1342_v15 = vsel %vm996_vm6, 0, %v1341_v8  ;;  %v1351_v17 = vsel %vm996_vm6, %v1350_v10, %v1316_v6  ;;  %v1369_v21 = vrot.slane %v1344_v9, 4  ;;  %v1088_v23 = vshrl.u32 %v1056_v11, 16 }
 0x295   : > { %v1075_v18 = vsel %vm996_vm6, 0, %v1074_v12  ;;  %v1082_v19 = vpack.i.b16 %v1081_v14, %v1080_v7  ;;  %1093 = vst.msk [vmem:[#allocation3] sm:$0xf] %vm1092_vm7, %v1078_v13  ;;  %v1355_v20 = vperm.slane %v1351_v17, %v3130_v49  ;;  %v1368_v33 = vperm.slane %v1364_v27, %v3130_v49 }
 0x296   : > { %v1086_v22 = vpack.i.b16 %v1075_v18, %v1056_v11  ;;  %v1089_v25 = vshrl.u32 %v1075_v18, 16  ;;  %v1370_v28 = vsel %vm996_vm6, %v1369_v21, %v1342_v15 }
 0x297   : > { %1094 = vst.msk [vmem:[#allocation3 + $0x4] sm:$0xf] %vm1092_vm7, %v1082_v19  ;;  %v1356_v29 = vrot.slane %v1355_v20, 4  ;;  %v1374_v31 = vperm.slane %v1370_v28, %v3130_v49 }
 0x298   : > { %v1090_v30 = vpack.i.b16 %v1089_v25, %v1088_v23  ;;  %1095 = vst.msk [vmem:[#allocation3 + $0x8] sm:$0xf] %vm1092_vm7, %v1086_v22 }
 0x299   : > { %v1357_v32 = vsel %vm996_vm6, %v1356_v29, %v1349_v26  ;;  %v1375_v34 = vrot.slane %v1374_v31, 4 }
 0x29a   : > { %1096 = vst.msk [vmem:[#allocation3 + $0xc] sm:$0xf] %vm1092_vm7, %v1090_v30  ;;  %v1361_v35 = vperm.slane %v1357_v32, %v3134_v61 }
 0x29b   : > { %v1376_v37 = vsel %vm996_vm6, %v1375_v34, %v1368_v33  ;;  %v1109_v33 = vshrl.u32 %v1100_v16, 16 }
 0x29c   : > { %v1395_v36 = vld [vmem:[#allocation3] sm:$0xf]  ;;  %v1380_v39 = vperm.slane %v1376_v37, %v3134_v61  ;;  %v1362_v44 = vrot.slane %v1361_v35, 4  ;;  %v1386_v53 = vshrl.u32 %v1361_v35, 16 }
 0x29d   : > { %v1407_v38 = vsel %vm1402_vm8, %v1395_v36, 0  ;;  %v1107_v36 = vpack.i.b16 %v1100_v16, %v3122_v40 }
 0x29e   : > { %1416 = vmatpush.bf16.xpose.msrb.mxu0 %v1407_v38  ;;  %v1396_v41 = vld [vmem:[#allocation3 + $0x4] sm:$0xf]  ;;  %v1381_v45 = vrot.slane %v1380_v39, 4  ;;  %v1387_v48 = vshrl.u32 %v1380_v39, 16  ;;  %v1385_v52 = vpack.i.b16 %v1380_v39, %v1361_v35  ;;  %v1363_v54 = vsel %vm996_vm6, 0, %v1362_v44 }
 0x29f   : > { %v1426_v42 = vsel %vm1402_vm8, %v1396_v41, 0  ;;  %v1397_v43 = vld [vmem:[#allocation3 + $0x8] sm:$0xf]  ;;  %v1392_v58 = vshrl.u32 %v1363_v54, 16  ;;  %v1108_v35 = vshrl.u32 %v3122_v40, 16  ;;  %v1121_v41 = vperm.slane %v1107_v36, %v3130_v49 }
 0x2a0   : > { %1435 = vmatpush.bf16.xpose.msrb.mxu1 %v1426_v42  ;;  %v1445_v46 = vsel %vm1402_vm8, %v1397_v43, 0  ;;  %v1382_v50 = vsel %vm996_vm6, 0, %v1381_v45  ;;  %v1388_v56 = vpack.i.b16 %v1387_v48, %v1386_v53 }
 0x2a1   : > { %1454 = vmatpush.bf16.xpose.msrb.mxu2 %v1445_v46  ;;  %v1398_v47 = vld [vmem:[#allocation3 + $0xc] sm:$0xf]  ;;  %v1393_v55 = vshrl.u32 %v1382_v50, 16  ;;  %v1391_v57 = vpack.i.b16 %v1382_v50, %v1363_v54  ;;  %v1110_v37 = vpack.i.b16 %v1109_v33, %v1108_v35  ;;  %v1129_v48 = vrot.slane %v1121_v41, 4 }
 0x2a2   : > { %v1464_v51 = vsel %vm1402_vm8, %v1398_v47, 0 }
 0x2a3   : > { %1473 = vmatpush.bf16.xpose.msrb.mxu3 %v1464_v51  ;;  %v1394_v59 = vpack.i.b16 %v1393_v55, %v1392_v58  ;;  %v1147_v42 = vperm.slane %v1110_v37, %v3130_v49 }
 0x2a5   : > { %2207 = vmatmul.msk.bf16.vlgmr.msrb.gmra.mxu0 %vm1402_vm8, %v1385_v52  ;;  %v1155_v51 = vrot.slane %v1147_v42, 4 }
 0x2a7   : > { %2208 = vmatmul.msk.bf16.vlgmr.msrb.gmra.mxu1 %vm1402_vm8, %v1388_v56 }
 0x2a8   : > { %2209 = vmatmul.msk.bf16.vlgmr.msrb.gmra.mxu2 %vm1402_vm8, %v1391_v57 }
 0x2aa   : > { %2210 = vmatmul.msk.bf16.vlgmr.msrb.gmra.mxu3 %vm1402_vm8, %v1394_v59 }
 0x322   : > { %v1418_v62 = vpop.f32.mrf.mxu0 }
 0x323   : > { %v1419_v63 = vadd.f32 %v2419_v60, %v1418_v62 }
 0x324   : > { %v1437_v0 = vpop.f32.mrf.mxu1 }
 0x325   : > { %v1479_v1 = vsel %vm1402_vm8, %v1419_v63, -inf  ;;  %v1438_v2 = vadd.f32 %v2419_v60, %v1437_v0 }
 0x326   : > { %1480 = vmax.xlane.f32.xlu2 %v1479_v1 }
 0x327   : > { %v1482_v7 = vsel %vm1402_vm8, %v1438_v2, -inf }
 0x32a   : > { %v1420_v3 = vpop.f32.mrf.mxu0 }
 0x32b   : > { %v1456_v4 = vpop.f32.mrf.mxu2 }
 0x32c   : > { %v1439_v5 = vpop.f32.mrf.mxu1  ;;  %v1457_v10 = vadd.f32 %v2419_v60, %v1456_v4 }
 0x32d   : > { %v1475_v6 = vpop.f32.mrf.mxu3 }
 0x32e   : > { %v1476_v8 = vadd.f32 %v2419_v60, %v1475_v6  ;;  %1483 = vmax.xlane.f32.xlu2 %v1482_v7  ;;  %v1485_v13 = vsel %vm1402_vm8, %v1457_v10, -inf }
 0x330   : > { %v1488_v9 = vsel %vm1402_vm8, %v1476_v8, -inf }
 0x331   : > { %1489 = vmax.xlane.f32.xlu1 %v1488_v9 }
 0x333   : > { %v1458_v11 = vpop.f32.mrf.mxu2 }
 0x335   : > { %v1477_v12 = vpop.f32.mrf.mxu3 }
 0x336   : > { %1486 = vmax.xlane.f32.xlu2 %v1485_v13 }
 0x34a   : > { %1103 = vrot.lane.b32.xlu1 %v3122_v40, %s2846_s7 }
 0x34e   : > { %1101 = vrot.lane.b32.xlu2 %v3122_v40, %s2844_s30 }
 0x399   : > { %v1481_v14 = vpop.xlane.xlu2 %1480 }
 0x39a   : > { %v1491_v15 = vsub.f32 %v1419_v63, %v1481_v14 }
 0x39c   : > { %v1495_v17 = vmul.f32 1.442695, %v1491_v15 }
 0x39e   : > { %2427 = vpow2.f32 %v1495_v17 }
 0x3a1   : > { %v1484_v18 = vpop.xlane.xlu2 %1483 }
 0x3a2   : > { %v1492_v27 = vsub.f32 %v1438_v2, %v1484_v18 }
 0x3a4   : > { %v3219_v19 = vpop.eup %2427  ;;  %v1490_v20 = vpop.xlane.xlu1 %1489  ;;  %v1497_v30 = vmul.f32 1.442695, %v1492_v27 }
 0x3a5   : > { %v1494_v21 = vsub.f32 %v1476_v8, %v1490_v20  ;;  %v1503_v22 = vsel %vm1402_vm8, %v3219_v19, 0.0 }
 0x3a6   : > { %1504 = vadd.xlane.f32.xlu0 %v1503_v22 }
 0x3a7   : > { %v1501_v23 = vmul.f32 1.442695, %v1494_v21 }
 0x3a9   : > { %2429 = vpow2.f32 %v1501_v23  ;;  %v1487_v25 = vpop.xlane.xlu2 %1486 }
 0x3aa   : > { %v1493_v26 = vsub.f32 %v1457_v10, %v1487_v25 }
 0x3ac   : > { %v1499_v28 = vmul.f32 1.442695, %v1493_v26 }
 0x3ae   : > { %2431 = vpow2.f32 %v1499_v28 }
 0x3af   : > { %v3223_v29 = vpop.eup %2429  ;;  %2433 = vpow2.f32 %v1497_v30 }
 0x3b0   : > { %v1512_v31 = vsel %vm1402_vm8, %v3223_v29, 0.0 }
 0x3b1   : > { %1513 = vadd.xlane.f32.xlu1 %v1512_v31  ;;  %v1102_v39 = vpop.permute.xlu2 %1101 }
 0x3b2   : > { %v1114_v44 = vshrl.u32 %v1102_v39, 16 }
 0x3b4   : > { %v3227_v32 = vpop.eup %2431 }
 0x3b5   : > { %v1509_v34 = vsel %vm1402_vm8, %v3227_v32, 0.0  ;;  %v3233_v38 = vpop.eup %2433 }
 0x3b6   : > { %1510 = vadd.xlane.f32.xlu2 %v1509_v34  ;;  %v1506_v47 = vsel %vm1402_vm8, %v3233_v38, 0.0 }
 0x3bc   : > { %v1104_v43 = vpop.permute.xlu1 %1103 }
 0x3bd   : > { %v1113_v45 = vpack.i.b16 %v1104_v43, %v1102_v39  ;;  %v1115_v46 = vshrl.u32 %v1104_v43, 16 }
 0x3be   : > { %1507 = vadd.xlane.f32.xlu2 %v1506_v47 }
 0x3bf   : > { %v1116_v50 = vpack.i.b16 %v1115_v46, %v1114_v44  ;;  %v1126_v40 = vperm.slane %v1113_v45, %v3130_v49 }
 0x3c1   : > { %v1127_v52 = vrot.slane %v1126_v40, 4  ;;  %v1130_v53 = vsel %vm996_vm6, %v1126_v40, %v1129_v48  ;;  %v1152_v54 = vperm.slane %v1116_v50, %v3130_v49 }
 0x3c2   : > { %v1138_v55 = vperm.slane %v1130_v53, %v3134_v61 }
 0x3c3   : > { %v1128_v56 = vsel %vm996_vm6, %v1127_v52, %v1121_v41  ;;  %v1153_v57 = vrot.slane %v1152_v54, 4  ;;  %v1156_v58 = vsel %vm996_vm6, %v1152_v54, %v1155_v51 }
 0x3c4   : > { %v1134_v59 = vperm.slane %v1128_v56, %v3134_v61  ;;  %v1141_v60 = vrot.slane %v1138_v55, 4  ;;  %v1164_v62 = vperm.slane %v1156_v58, %v3134_v61 }
 0x3c5   : > { %v1154_v63 = vsel %vm996_vm6, %v1153_v57, %v1147_v42 }
 0x3c6   : > { %v1139_v0 = vrot.slane %v1134_v59, 4  ;;  %v1142_v1 = vsel %vm996_vm6, 0, %v1141_v60  ;;  %v1160_v2 = vperm.slane %v1154_v63, %v3134_v61  ;;  %v1167_v3 = vrot.slane %v1164_v62, 4 }
 0x3c7   : > { %v1174_v4 = vrot.slane %v1142_v1, 4  ;;  %v1169_v8 = vsel %vm996_vm6, %v1141_v60, %v1134_v59 }
 0x3c8   : > { %v1140_v5 = vsel %vm996_vm6, 0, %v1139_v0  ;;  %v1165_v6 = vrot.slane %v1160_v2, 4  ;;  %v1168_v7 = vsel %vm996_vm6, 0, %v1167_v3  ;;  %v1188_v13 = vsel %vm996_vm6, %v1167_v3, %v1160_v2 }
 0x3c9   : > { %v1175_v9 = vsel %vm996_vm6, %v1174_v4, %v1140_v5  ;;  %v1193_v10 = vrot.slane %v1168_v7, 4  ;;  %v1173_v15 = vperm.slane %v1169_v8, %v3130_v49  ;;  %v1192_v20 = vperm.slane %v1188_v13, %v3130_v49 }
 0x3ca   : > { %v1166_v11 = vsel %vm996_vm6, 0, %v1165_v6  ;;  %v1179_v12 = vperm.slane %v1175_v9, %v3130_v49 }
 0x3cb   : > { %v1194_v14 = vsel %vm996_vm6, %v1193_v10, %v1166_v11 }
 0x3cc   : > { %v1180_v16 = vrot.slane %v1179_v12, 4  ;;  %v1198_v17 = vperm.slane %v1194_v14, %v3130_v49 }
 0x3ce   : > { %v1181_v18 = vsel %vm996_vm6, %v1180_v16, %v1173_v15  ;;  %v1199_v21 = vrot.slane %v1198_v17, 4 }
 0x3cf   : > { %v1185_v22 = vperm.slane %v1181_v18, %v3134_v61 }
 0x3d0   : > { %v1200_v23 = vsel %vm996_vm6, %v1199_v21, %v1192_v20 }
 0x3d1   : > { %v1186_v25 = vrot.slane %v1185_v22, 4  ;;  %v1204_v26 = vperm.slane %v1200_v23, %v3134_v61  ;;  %v1211_v27 = vshrl.u32 %v1185_v22, 16 }
 0x3d3   : > { %v1187_v28 = vsel %vm996_vm6, 0, %v1186_v25  ;;  %v1205_v30 = vrot.slane %v1204_v26, 4  ;;  %v1209_v31 = vpack.i.b16 %v1204_v26, %v1185_v22  ;;  %v1212_v33 = vshrl.u32 %v1204_v26, 16 }
 0x3d4   : > { %v1219_v37 = vshrl.u32 %v1187_v28, 16 }
 0x3d5   : > { %v1206_v34 = vsel %vm996_vm6, 0, %v1205_v30  ;;  %v1213_v35 = vpack.i.b16 %v1212_v33, %v1211_v27  ;;  %1223 = vst.msk [vmem:[#allocation4] sm:$0xf] %vm1092_vm7, %v1209_v31 }
 0x3d6   : > { %v1217_v36 = vpack.i.b16 %v1206_v34, %v1187_v28  ;;  %v1220_v39 = vshrl.u32 %v1206_v34, 16 }
 0x3d7   : > { %1224 = vst.msk [vmem:[#allocation4 + $0x4] sm:$0xf] %vm1092_vm7, %v1213_v35 }
 0x3d8   : > { %v1221_v41 = vpack.i.b16 %v1220_v39, %v1219_v37  ;;  %1225 = vst.msk [vmem:[#allocation4 + $0x8] sm:$0xf] %vm1092_vm7, %v1217_v36 }
 0x3da   : > { %1226 = vst.msk [vmem:[#allocation4 + $0xc] sm:$0xf] %vm1092_vm7, %v1221_v41 }
 0x3dc   : > { %v1527_v42 = vld [vmem:[#allocation4] sm:$0xf] }
 0x3dd   : > { %v1536_v43 = vsel %vm870_vm1, %v1527_v42, 0 }
 0x3de   : > { %1545 = vmatpush.bf16.msra.mxu0 %v1536_v43  ;;  %v1528_v44 = vld [vmem:[#allocation4 + $0x4] sm:$0xf] }
 0x3df   : > { %v1555_v45 = vsel %vm870_vm1, %v1528_v44, 0  ;;  %v1529_v46 = vld [vmem:[#allocation4 + $0x8] sm:$0xf] }
 0x3e0   : > { %1564 = vmatpush.bf16.msra.mxu1 %v1555_v45  ;;  %v1574_v47 = vsel %vm870_vm1, %v1529_v46, 0 }
 0x3e1   : > { %1583 = vmatpush.bf16.msra.mxu2 %v1574_v47  ;;  %v1530_v48 = vld [vmem:[#allocation4 + $0xc] sm:$0xf] }
 0x3e2   : > { %v1593_v50 = vsel %vm870_vm1, %v1530_v48, 0 }
 0x3e3   : > { %1602 = vmatpush.bf16.msra.mxu3 %v1593_v50 }
 0x419   : > { %v1505_v40 = vpop.xlane.xlu0 %1504 }
 0x41a   : > { %2435 = vrcp.f32 %v1505_v40 }
 0x420   : > { %v2436_v51 = vpop.eup %2435 }
 0x421   : > { %v1519_v52 = vmul.f32 %v2436_v51, %v3219_v19 }
 0x423   : > { %v1523_v53 = vpack.c.bf16 %v1519_v52, %v1519_v52 }
 0x424   : > { %v1514_v54 = vpop.xlane.xlu1 %1513 }
 0x425   : > { %2437 = vrcp.f32 %v1514_v54  ;;  %2211 = vmatmul.msk.bf16.vlgmr.msra.gmra.mxu0 %vm1402_vm8, %v1523_v53 }
 0x429   : > { %v1511_v55 = vpop.xlane.xlu2 %1510 }
 0x42a   : > { %2439 = vrcp.f32 %v1511_v55 }
 0x42b   : > { %v2438_v56 = vpop.eup %2437 }
 0x42c   : > { %v1522_v57 = vmul.f32 %v2438_v56, %v3223_v29 }
 0x42e   : > { %v1526_v58 = vpack.c.bf16 %v1522_v57, %v1522_v57 }
 0x430   : > { %v2440_v59 = vpop.eup %2439  ;;  %2214 = vmatmul.msk.bf16.vlgmr.msra.gmra.mxu3 %vm1402_vm8, %v1526_v58 }
 0x431   : > { %v1521_v60 = vmul.f32 %v2440_v59, %v3227_v32  ;;  %v1508_v62 = vpop.xlane.xlu2 %1507 }
 0x432   : > { %2441 = vrcp.f32 %v1508_v62 }
 0x433   : > { %v1525_v63 = vpack.c.bf16 %v1521_v60, %v1521_v60 }
 0x435   : > { %2213 = vmatmul.msk.bf16.vlgmr.msra.gmra.mxu2 %vm1402_vm8, %v1525_v63 }
 0x438   : > { %v2442_v19 = vpop.eup %2441 }
 0x439   : > { %v1520_v0 = vmul.f32 %v2442_v19, %v3233_v38 }
 0x43b   : > { %v1524_v1 = vpack.c.bf16 %v1520_v0, %v1520_v0 }
 0x43d   : > { %2212 = vmatmul.msk.bf16.vlgmr.msra.gmra.mxu1 %vm1402_vm8, %v1524_v1 }
 0x4a2   : > { %v1547_v2 = vpop.f32.mrf.mxu0 }
 0x4a3   : > { %v1611_v4 = vrot.slane %v1547_v2, 4 }
 0x4aa   : > { %v1549_v3 = vpop.f32.mrf.mxu0 }
 0x4b3   : > { %v1604_v29 = vpop.f32.mrf.mxu3 }
 0x4b4   : > { %v1621_v6 = vrot.slane %v1604_v29, 4 }
 0x4b8   : > { %v1585_v5 = vpop.f32.mrf.mxu2 }
 0x4b9   : > { %v1608_v7 = vrot.slane %v1585_v5, 4  ;;  %v1612_v32 = vsel %vm996_vm6, %v1585_v5, %v1611_v4 }
 0x4ba   : > { %v1620_v8 = vperm.slane %v1612_v32, %v3130_v49  ;;  %v1566_v9 = vpop.f32.mrf.mxu1 }
 0x4bb   : > { %v1610_v10 = vsel %vm996_vm6, %v1608_v7, %v1547_v2  ;;  %v1622_v11 = vsel %vm996_vm6, %v1621_v6, %v1566_v9  ;;  %v1623_v38 = vrot.slane %v1566_v9, 4  ;;  %v1606_v12 = vpop.f32.mrf.mxu3 }
 0x4bc   : > { %v1616_v13 = vperm.slane %v1610_v10, %v3130_v49  ;;  %v1628_v14 = vperm.slane %v1622_v11, %v3130_v49  ;;  %v1647_v17 = vrot.slane %v1620_v8, 4 }
 0x4bd   : > { %v1624_v15 = vsel %vm996_vm6, %v1604_v29, %v1623_v38 }
 0x4be   : > { %v1635_v16 = vrot.slane %v1616_v13, 4  ;;  %v1632_v18 = vperm.slane %v1624_v15, %v3130_v49  ;;  %v1633_v20 = vrot.slane %v1628_v14, 4  ;;  %v2420_v15 = vld [vmem:[#allocation10] ss:$0 sm:$0xff] }
 0x4c0   : > { %v1634_v21 = vsel %vm996_vm6, %v1633_v20, %v1616_v13  ;;  %v1636_v22 = vsel %vm996_vm6, %v1628_v14, %v1635_v16  ;;  %v1645_v23 = vrot.slane %v1632_v18, 4  ;;  %v1648_v25 = vsel %vm996_vm6, %v1632_v18, %v1647_v17  ;;  %v1587_v26 = vpop.f32.mrf.mxu2 }
 0x4c1   : > { %v1640_v27 = vperm.slane %v1634_v21, %v3134_v61  ;;  %v1644_v28 = vperm.slane %v1636_v22, %v3134_v61  ;;  %v1656_v30 = vperm.slane %v1648_v25, %v3134_v61  ;;  %v1773_v17 = vunpack.c.l.bf16 %v3115_v24 }
 0x4c2   : > { %v1646_v31 = vsel %vm996_vm6, %v1645_v23, %v1620_v8  ;;  %v1568_v33 = vpop.f32.mrf.mxu1  ;;  %v2258_v8 = vld [vmem:[%s3380_s10] sm:$0xff]  ;;  %v2852_v23 = vmov 32.0  }
 0x4c3   : > { %v1652_v34 = vperm.slane %v1646_v31, %v3134_v61  ;;  %v1657_v35 = vrot.slane %v1640_v27, 4  ;;  %v1659_v36 = vrot.slane %v1644_v28, 4  ;;  %v1663_v37 = vrot.slane %v1656_v30, 4 }
 0x4c4   : > { %2443 = vrcp.f32 %v2852_v23 }
 0x4c5   : > { %v1660_v39 = vsel %vm996_vm6, 0.0, %v1659_v36  ;;  %v1661_v41 = vrot.slane %v1652_v34, 4  ;;  %v1664_v42 = vsel %vm996_vm6, 0.0, %v1663_v37  ;;  %v1665_v43 = vsel %vm996_vm6, %v1659_v36, %v1640_v27 }
 0x4c6   : > { %v1670_v44 = vrot.slane %v1660_v39, 4  ;;  %v1681_v45 = vrot.slane %v1664_v42, 4  ;;  %v1676_v46 = vsel %vm996_vm6, %v1663_v37, %v1652_v34  ;;  %v1658_v47 = vsel %vm996_vm6, 0.0, %v1657_v35  ;;  %v2261_v37 = vld [vmem:[#allocation15 + $0x8] sm:$0xff]  ;;  %v2260_v39 = vld [vmem:[#allocation15] sm:$0xff] }
 0x4c7   : > { %v1669_v48 = vperm.slane %v1665_v43, %v3130_v49  ;;  %v1662_v50 = vsel %vm996_vm6, 0.0, %v1661_v41  ;;  %v1680_v40 = vperm.slane %v1676_v46, %v3130_v49  ;;  %1844 = vmatpush.bf16.msrb.mxu1 %v2261_v37 }
 0x4c8   : > { %v1671_v51 = vsel %vm996_vm6, %v1670_v44, %v1658_v47  ;;  %v1682_v52 = vsel %vm996_vm6, %v1681_v45, %v1662_v50 }
 0x4c9   : > { %v1675_v53 = vperm.slane %v1671_v51, %v3130_v49  ;;  %v1686_v54 = vperm.slane %v1682_v52, %v3130_v49  ;;  %v1689_v55 = vrot.slane %v1669_v48, 4  ;;  %v1701_v56 = vrot.slane %v1680_v40, 4  ;;  %v2422_v52 = vld [vmem:[#allocation13] ss:$0 sm:$0xff] }
 0x4ca   : > { %v2444_v25 = vpop.eup %2443 }
 0x4cb   : > { %v1690_v57 = vsel %vm996_vm6, %v1675_v53, %v1689_v55  ;;  %v1702_v58 = vsel %vm996_vm6, %v1686_v54, %v1701_v56  ;;  %v1687_v59 = vrot.slane %v1675_v53, 4  ;;  %v1699_v60 = vrot.slane %v1686_v54, 4  ;;  %1845 = vmatpush.bf16.msrb.mxu1 %v2260_v39 }
 0x4cc   : > { %v1698_v62 = vperm.slane %v1690_v57, %v3134_v61  ;;  %v1710_v63 = vperm.slane %v1702_v58, %v3134_v61  ;;  %v1781_v26 = vmul.f32 32.0, %v2444_v25  ;;  %vm1785_vm11 = vweird.f32 %v2444_v25  ;;  %v2265_v57 = vld [vmem:[%s3386_s16 + $0x18] sm:$0xff]  ;;  %v2264_v58 = vld [vmem:[%s3386_s16 + $0x10] sm:$0xff] }
 0x4cd   : > { %v1688_v19 = vsel %vm996_vm6, %v1687_v59, %v1669_v48  ;;  %v1700_v0 = vsel %vm996_vm6, %v1699_v60, %v1680_v40  ;;  %v2421_v40 = vld [vmem:[#allocation12] ss:$0 sm:$0xff]  ;;  %1905 = vmatpush.bf16.msrb.mxu2 %v2265_v57  ;;  %v2423_v60 = vld [vmem:[#allocation16] ss:$0 sm:$0xff] }
 0x4ce   : > { %v1717_v1 = vrot.slane %v1698_v62, 4  ;;  %v1715_v2 = vrot.slane %v1710_v63, 4  ;;  %v1694_v49 = vperm.slane %v1688_v19, %v3134_v61  ;;  %v1706_v3 = vperm.slane %v1700_v0, %v3134_v61  ;;  %v2259_v61 = vld [vmem:[%s3380_s10 + $0x8] sm:$0xff] }
 0x4cf   : > { %1766 = vmatpush.bf16.msrb.mxu0 %v2259_v61  ;;  %v1782_v27 = vsub.f32 1.0, %v1781_v26  ;;  %v2263_v59 = vld [vmem:[%s3386_s16 + $0x8] sm:$0xff]  ;;  %v2424_v61 = vld [vmem:[#allocation18] ss:$0 sm:$0xff] }
 0x4d0   : > { %v1718_v29 = vsel %vm996_vm6, %v1710_v63, %v1717_v1  ;;  %v1716_v4 = vsel %vm996_vm6, %v1715_v2, %v1698_v62  ;;  %v1711_v5 = vrot.slane %v1706_v3, 4  ;;  %v1713_v6 = vrot.slane %v1694_v49, 4  ;;  %v2262_v62 = vld [vmem:[%s3386_s16] sm:$0xff] }
 0x4d1   : > { %1728 = vrot.lane.b32.xlu0 %v1718_v29, %s2849_s27  ;;  %1724 = vrot.lane.b32.xlu2 %v1716_v4, %s2850_s3  ;;  %v1783_v28 = vmul.f32 %v2444_v25, %v1782_v27 }
 0x4d2   : > { %v1714_v7 = vsel %vm996_vm6, %v1706_v3, %v1713_v6  ;;  %v1712_v32 = vsel %vm996_vm6, %v1711_v5, %v1694_v49  ;;  %1906 = vmatpush.bf16.msrb.mxu2 %v2264_v58 }
 0x4d3   : > { %1720 = vrot.lane.b32.xlu1 %v1714_v7, %s2851_s26  ;;  %1767 = vmatpush.bf16.msrb.mxu0 %v2258_v8  ;;  %v1784_v30 = vadd.f32 %v2444_v25, %v1783_v28  ;;  %v2425_v28 = vld [vmem:[#allocation19] ss:$0 sm:$0xff] }
 0x4d5   : > { %v3333_v31 = vsel %vm1785_vm11, %v2444_v25, %v1784_v30 }
 0x4d6   : > { %1907 = vmatpush.bf16.msrb.mxu2 %v2263_v59 }
 0x4da   : > { %1908 = vmatpush.bf16.msrb.mxu2 %v2262_v62 }
 0x52b   : > { %v1725_v10 = vpop.permute.xlu2 %1724 }
 0x543   : > { %v1729_v38 = vpop.permute.xlu0 %1728 }
 0x545   : > { %v1721_v9 = vpop.permute.xlu1 %1720 }
 0x546   : > { %v1731_v11 = vsel %vm1402_vm8, %v1712_v32, %v1721_v9 }
 0x547   : > { %v1733_v12 = vsel %vm1732_vm9, %v1731_v11, %v1725_v10 }
 0x548   : > { %v1735_v13 = vsel %vm1734_vm10, %v1733_v12, %v1729_v38 }
 0x549   : > { %v1736_v14 = vpack.c.bf16 %v1735_v13, %v1735_v13 }
 0x54b   : > { %2223 = vmatmul.msk.bf16.vlgmr.msrb.gmra.mxu0 %vm915_vm5, %v1736_v14 }
 0x5c8   : > { %v1769_v16 = vpop.f32.mrf.mxu0 }
 0x5c9   : > { %v1770_v18 = vadd.f32 %v2420_v15, %v1769_v16 }
 0x5cb   : > { %v1774_v20 = vadd.f32 %v1773_v17, %v1770_v18 }
 0x5cd   : > { %v1777_v21 = vsel %vm915_vm5, %v1774_v20, 0.0 }
 0x5ce   : > { %1778 = vadd.xlane.f32.xlu1 %v1777_v21 }
 0x5d0   : > { %v1771_v22 = vpop.f32.mrf.mxu0 }
 0x641   : > { %v1779_v33 = vpop.xlane.xlu1 %1778 }
 0x642   : > { %v1787_v34 = vmul.f32 %v3333_v31, %v1779_v33  ;;  %v2426_v33 = vld [vmem:[#allocation21] ss:$0 sm:$0xff] }
 0x644   : > { %v1788_v24 = vsub.f32 %v1774_v20, %v1787_v34 }
 0x646   : > { %v1789_v35 = vmul.f32 %v1788_v24, %v1788_v24 }
 0x648   : > { %v1790_v36 = vsel %vm915_vm5, %v1789_v35, 0.0 }
 0x649   : > { %1791 = vadd.xlane.f32.xlu2 %v1790_v36 }
 0x6bc   : > { %v1792_v41 = vpop.xlane.xlu2 %1791 }
 0x6bd   : > { %v1793_v42 = vmul.f32 %v1792_v41, %v3333_v31 }
 0x6bf   : > { %v1794_v43 = vadd.f32 1e-12, %v1793_v42 }
 0x6c1   : > { %2445 = vrsqrt.f32 %v1794_v43  ;;  %vm1801_vm13 = vweird.f32 %v1794_v43 }
 0x6c7   : > { %v2446_v44 = vpop.eup %2445 }
 0x6c8   : > { %v1796_v45 = vmul.f32 %v2446_v44, %v1794_v43  ;;  %vm1802_vm12 = vweird.f32 %v2446_v44 }
 0x6c9   : > { %vm1803_vm14 = vmor %vm1801_vm13, %vm1802_vm12 }
 0x6ca   : > { %v1797_v46 = vmul.f32 %v2446_v44, %v1796_v45 }
 0x6cc   : > { %v1798_v47 = vmul.f32 0.5, %v1797_v46 }
 0x6ce   : > { %v1799_v48 = vsub.f32 1.5, %v1798_v47 }
 0x6d0   : > { %v1800_v50 = vmul.f32 %v2446_v44, %v1799_v48 }
 0x6d2   : > { %v1804_v51 = vsel %vm1803_vm14, %v2446_v44, %v1800_v50 }
 0x6d3   : > { %v1805_v53 = vmul.f32 %v1804_v51, %v1788_v24 }
 0x6d5   : > { %v1809_v54 = vmul.f32 %v2421_v40, %v1805_v53 }
 0x6d7   : > { %v1813_v55 = vadd.f32 %v2422_v52, %v1809_v54 }
 0x6d9   : > { %v1814_v56 = vpack.c.bf16 %v1813_v55, %v1813_v55 }
 0x6db   : > { %2232 = vmatmul.msk.bf16.vlgmr.msrb.gmra.mxu1 %vm915_vm5, %v1814_v56 }
 0x758   : > { %v1847_v63 = vpop.f32.mrf.mxu1 }
 0x759   : > { %v1848_v19 = vadd.f32 %v2423_v60, %v1847_v63 }
 0x75b   : > { %v1851_v0 = vmul.f32 %v1848_v19, %v1848_v19 }
 0x75d   : > { %v1852_v1 = vmul.f32 %v1851_v0, %v1848_v19 }
 0x75f   : > { %v1853_v2 = vmul.f32 0.044715, %v1852_v1 }
 0x760   : > { %v1849_v49 = vpop.f32.mrf.mxu1 }
 0x761   : > { %v1854_v3 = vadd.f32 %v1853_v2, %v1848_v19 }
 0x763   : > { %v1855_v29 = vmul.f32 0.7978846, %v1854_v3 }
 0x765   : > { %2447 = vtanh.f32 %v1855_v29 }
 0x76b   : > { %v2448_v4 = vpop.eup %2447 }
 0x76c   : > { %v1857_v5 = vadd.f32 1.0, %v2448_v4 }
 0x76e   : > { %v1858_v6 = vmul.f32 0.5, %v1857_v5 }
 0x770   : > { %v1859_v7 = vmul.f32 %v1858_v6, %v1848_v19 }
 0x772   : > { %v1860_v32 = vpack.c.bf16 %v1859_v7, %v1859_v7 }
 0x774   : > { %2249 = vmatmul.msk.bf16.vlgmr.msrb.gmra.mxu2 %vm1897_vm15, %v1860_v32 }
 0x7f7   : > { %v1910_v8 = vpop.f32.mrf.mxu2 }
 0x7f8   : > { %v1911_v9 = vadd.f32 %v2424_v61, %v1910_v8 }
 0x7fa   : > { %v1914_v10 = vadd.f32 %v1911_v9, %v1813_v55 }
 0x7fc   : > { %v1917_v11 = vsel %vm915_vm5, %v1914_v10, 0.0 }
 0x7fd   : > { %1918 = vadd.xlane.f32.xlu0 %v1917_v11 }
 0x7ff   : > { %v1912_v38 = vpop.f32.mrf.mxu2 }
 0x870   : > { %v1919_v12 = vpop.xlane.xlu0 %1918 }
 0x871   : > { %v1920_v13 = vmul.f32 %v1919_v12, %v3333_v31 }
 0x873   : > { %v1921_v14 = vsub.f32 %v1914_v10, %v1920_v13 }
 0x875   : > { %v1922_v15 = vmul.f32 %v1921_v14, %v1921_v14 }
 0x877   : > { %v1923_v16 = vsel %vm915_vm5, %v1922_v15, 0.0 }
 0x878   : > { %1924 = vadd.xlane.f32.xlu1 %v1923_v16 }
 0x8eb   : > { %v1925_v17 = vpop.xlane.xlu1 %1924 }
 0x8ec   : > { %v1926_v18 = vmul.f32 %v1925_v17, %v3333_v31 }
 0x8ee   : > { %v1927_v20 = vadd.f32 1e-12, %v1926_v18 }
 0x8f0   : > { %2449 = vrsqrt.f32 %v1927_v20  ;;  %vm1934_vm1 = vweird.f32 %v1927_v20 }
 0x8f6   : > { %v2450_v21 = vpop.eup %2449 }
 0x8f7   : > { %v1929_v22 = vmul.f32 %v2450_v21, %v1927_v20  ;;  %vm1935_vm0 = vweird.f32 %v2450_v21 }
 0x8f8   : > { %vm1936_vm2 = vmor %vm1934_vm1, %vm1935_vm0 }
 0x8f9   : > { %v1930_v23 = vmul.f32 %v2450_v21, %v1929_v22 }
 0x8fb   : > { %v1931_v25 = vmul.f32 0.5, %v1930_v23 }
 0x8fd   : > { %v1932_v26 = vsub.f32 1.5, %v1931_v25 }
 0x8ff   : > { %v1933_v27 = vmul.f32 %v2450_v21, %v1932_v26 }
 0x901   : > { %v1937_v30 = vsel %vm1936_vm2, %v2450_v21, %v1933_v27 }
 0x902   : > { %v1938_v34 = vmul.f32 %v1937_v30, %v1921_v14 }
 0x904   : > { %v1942_v24 = vmul.f32 %v2425_v28, %v1938_v34 }
 0x906   : > { %v1946_v35 = vadd.f32 %v2426_v33, %v1942_v24 }
 0x908   : > { %v1947_v31 = vpack.c.bf16 %v1946_v35, %v1946_v35 }
 0x90a   : > { %1949 = vst.msk [vmem:[%s834_s23] sm:$0xf] %vm893_vm4, %v1947_v31 }
 0x90b PF: > { %s3418_s25 = sld [smem:[#allocation28_spill]]  ;;  %s3419_s1 = smov %s2823_s22 }
 0x90c   : > { %s3420_s22 = smov %s3422_s0 }
 0x911   : > { %s36_s23 = sadd.s32 1, %s3418_s25  }
 0x912   : > { %p33_p8 = scmp.ge.s32.totalorder %s36_s23, 4  }
 0x914   :  { %35 = sbr.rel (!%p33_p8) target bundleno = 18 (0x12), region = 186 }
 0x919   :  { %1975 = vsyncpa [#allocation6], 1 }
 0x91a   :  { %1977 = vsyncpa [#allocation6 + $0x1], 1 }
 0x91b   :  { %1978 = vsyncpa [#allocation8], 1 }
 0x91c   :  { %1979 = vsyncpa [#allocation11], 1 }
 0x91d   :  { %1980 = vsyncpa [#allocation14], 1 }
 0x91e   :  { %1981 = vsyncpa [#allocation17], 1 }
 0x91f   :  { %1982 = vsyncpa [#allocation20], 1 }

// kernel: bert_encoder_forward.3
= control target key start
LH: loop header
LB: loop body
LE: loop exit
PB: predicated region body
PF: predicated region fallthrough
CT: control target
= control target key end

     0   :  { %s2609_s0 = inlined_call_operand.vmem [shape: bf16[2,8,32], index: 0, kind: input, shape index: {}]   ;;  %s2610_s1 = inlined_call_operand.vmem [shape: s32[2,1,8], index: 1, kind: input, shape index: {}]   ;;  %s2611_s2 = inlined_call_operand.vmem [shape: bf16[7,32], index: 2, kind: input, shape index: {}]   ;;  %s2612_s3 = inlined_call_operand.vmem [shape: f32[2,1,8], index: 3, kind: input, shape index: {}]   ;;  %s2613_s4 = inlined_call_operand.vmem [shape: bf16[32,32], index: 4, kind: input, shape index: {}]   ;;  %s2614_s5 = inlined_call_operand.vmem [shape: f32[1,32], index: 5, kind: input, shape index: {}]   ;;  %s2615_s6 = inlined_call_operand.vmem [shape: bf16[32,32], index: 6, kind: input, shape index: {}]   ;;  %s2616_s7 = inlined_call_operand.vmem [shape: f32[1,32], index: 7, kind: input, shape index: {}]   ;;  %s2617_s8 = inlined_call_operand.vmem [shape: bf16[32,32], index: 8, kind: input, shape index: {}]   ;;  %s2618_s9 = inlined_call_operand.vmem [shape: f32[1,32], index: 9, kind: input, shape index: {}]   ;;  %s2619_s10 = inlined_call_operand.vmem [shape: bf16[32,32], index: 10, kind: input, shape index: {}]   ;;  %s2620_s11 = inlined_call_operand.vmem [shape: f32[1,32], index: 11, kind: input, shape index: {}]   ;;  %s2621_s12 = inlined_call_operand.vmem [shape: f32[1,32], index: 12, kind: input, shape index: {}]   ;;  %s2622_s13 = inlined_call_operand.vmem [shape: f32[1,32], index: 13, kind: input, shape index: {}]   ;;  %s2623_s14 = inlined_call_operand.vmem [shape: bf16[32,64], index: 14, kind: input, shape index: {}]   ;;  %s2624_s15 = inlined_call_operand.hbm [shape: f32[1,64], index: 15, kind: input, shape index: {}]   ;;  %s2625_s16 = inlined_call_operand.vmem [shape: bf16[64,32], index: 16, kind: input, shape index: {}]   ;;  %s2626_s17 = inlined_call_operand.vmem [shape: f32[1,32], index: 17, kind: input, shape index: {}]   ;;  %s2627_s18 = inlined_call_operand.vmem [shape: f32[1,32], index: 18, kind: input, shape index: {}]   ;;  %s2628_s19 = inlined_call_operand.vmem [shape: f32[1,32], index: 19, kind: input, shape index: {}]   ;;  %s2629_s20 = inlined_call_operand.vmem [shape: bf16[2,8,32], index: 20, kind: output, shape index: {}]  }
   0x1   :  { %2632 = sst [smem:[#allocation8_spill]] %s2609_s0 }
   0x2   :  { %2633 = sst [smem:[#allocation9_spill]] %s2610_s1 }
   0x3   :  { %2634 = sst [smem:[#allocation10_spill]] %s2611_s2 }
   0x4   :  { %2635 = sst [smem:[#allocation11_spill]] %s2612_s3 }
   0x5   :  { %2636 = sst [smem:[#allocation12_spill]] %s2613_s4 }
   0x6   :  { %2637 = sst [smem:[#allocation13_spill]] %s2615_s6 }
   0x7   :  { %25 = vsyncpa [#allocation6], 0  ;;  %s2262_s1 = smov 0   ;;  %s2264_s22 = smov 0  }
   0x8   :  { %s2266_s23 = smov 0  }
   0x9 LB: > { %s1907_s24 = sadd.s32 4294967295, %s2143_s23   ;;  %s43_s2 = sadd.s32 1, %s2139_s22  ;;  %s2143_s23 = sphi %s2266_s23, %s31_s23   ;;  %s2139_s22 = sphi %s2264_s22, %s2645_s22   ;;  %s2135_s1 = sphi %s2262_s1, %s2644_s1  }
   0xa   : > { %p45_p0 = scmp.ge.s32.totalorder %s43_s2, 2  ;;  %p1909_p1 = scmp.ge.s32.totalorder %s2143_s23, 1 }
   0xb   : > { %p511_p2 = scmp.lt.s32.totalorder %s2143_s23, 3  ;;  %p2012_p4 = scmp.eq.s32.totalorder %s1907_s24, 0 }
   0xc   : > { %s2647_s2 = smov (%p45_p0, %s43_s2), 0  ;;  %s559_s26 = sshll.u32 %s2624_s15, 4  ;;  %s560_s26 = int_to_ptr.hbm [resolvable:$true] %s559_s26 }
   0xd   : > { %p512_p3 = pnand %p1909_p1, %p511_p2  ;;  %s2145_s27 = smov [#allocation5]  }
   0xe   : > { %s561_s28 = sshll.u32 %s2145_s27, 4  ;;  %s562_s28 = int_to_ptr.vmem [resolvable:$true] %s561_s28 }
   0xf   : > { %p2008_p5 = pneg %p512_p3  ;;  %605 = sbr.rel (%p512_p3) target bundleno = 2268 (0x8dc), region = 100 }
  0x11   : > { %p2009_p6 = pnand %p2012_p4, %p2008_p5 }
  0x13   : > { %2011 = dma.hbm_to_vmem [thread:$0]  (!%p2009_p6), %s560_s26, 16, %s562_s28, [#allocation6]  }
  0x14   : > { %2130 = dma.done.wait (%p2012_p4), [#allocation6], 16  }
  0x15   : > { %2132 = vsyncadd (%p2012_p4), [#allocation6], 4294967280  ;;  %p671_p7 = scmp.lt.s32.totalorder %s2135_s1, 1  ;;  %vm722_vm0 = vcmask 1042432   ;;  %v694_v0 = vlaneseq  ;;  %vm723_vm1 = vcmask 1043456   ;;  %v2146_v1 = vmov 65535  }
  0x16   : > { %v724_v2 = vsel %vm722_vm0, 4294967295, %v2146_v1  ;;  %s2638_s30 = sld [smem:[#allocation9_spill]]  ;;  %v2147_v8 = vmov 0.0   ;;  %v1993_v12 = vld [vmem:[%s2617_s8 + $0x8] sm:$0xff]  ;;  %vm718_vm3 = vcmask 56320   ;;  %v1992_v15 = vld [vmem:[%s2617_s8] sm:$0xff] }
  0x17   : > { %s2649_s1 = smov (!%p671_p7, %s2135_s1), 1  ;;  %v695_v3 = vshrl.u32 %v694_v0, 7  ;;  %v725_v4 = vsel %vm723_vm1, %v724_v2, 0  ;;  %s2639_s25 = sld [smem:[#allocation10_spill]]  ;;  %811 = vmatpush.bf16.msra.mxu2 %v1993_v12  ;;  %vm746_vm4 = vcmask 257024   ;;  %vm768_vm5 = vcmask 261120  }
  0x18   : > { %s2640_s6 = sld [smem:[#allocation13_spill]]  ;;  %s1914_s27 = sshll.u32 %s2649_s1, 2  ;;  %v2052_v25 = vld [vmem:[%s2616_s7] ss:$0 sm:$0xff]  ;;  %v2151_v43 = vmov 1983009808  }
  0x19   : > { %s2642_s29 = sld [smem:[#allocation8_spill]]  ;;  %s2149_s21 = smov 120   ;;  %v2054_v31 = vld [vmem:[%s2614_s5] ss:$0 sm:$0xff]  ;;  %v840_v44 = vunpack.c.l.s4 %v2151_v43  ;;  %v2152_v51 = vmov 1934713408  }
  0x1a   : > { %s2150_s26 = smov 104   ;;  %v2053_v36 = vld [vmem:[%s2618_s9] ss:$0 sm:$0xff]  ;;  %v854_v52 = vunpack.c.l.s4 %v2152_v51  ;;  %vm849_vm6 = vcmask 1047556   ;;  %vm945_vm7 = vcmask 60416   ;;  %vm1255_vm8 = vcmask 64512  }
  0x1b   : > { %812 = vmatpush.bf16.msra.mxu2 %v1992_v15  ;;  %v2345_v49 = vunpack.c.0.s8 %v840_v44  ;;  %s2155_s28 = smov 8   ;;  %vm1585_vm9 = vcmask 130048   ;;  %vm1587_vm10 = vcmask 195584   ;;  %vm1750_vm15 = vcmask 523264  }
  0x1c   : > { %s677_s0 = scalar_lea.vmem %s2638_s30, %s2649_s1  ;;  %v2349_v61 = vunpack.c.0.s8 %v854_v52 }
  0x1d   : > { %v2051_v5 = vld [vmem:[%s677_s0] ss:$0 sm:$0xff]  ;;  %s2148_s0 = smov 112  }
  0x1e   : > { %v701_v6 = vld [vmem:[%s2639_s25] sm:$0xf]  ;;  %vm697_vm2 = vcmp.eq.s32.totalorder %v695_v3, %v2051_v5  ;;  %v1991_v11 = vld [vmem:[%s2640_s6 + $0x8] sm:$0xff]  ;;  %s2641_s25 = sld [smem:[#allocation12_spill]] }
  0x1f   : > { %v727_v7 = vand.u32 %v725_v4, %v701_v6  ;;  %v1916_v9 = vsel %vm697_vm2, 1.0, %v2147_v8  ;;  %778 = vmatpush.bf16.msra.mxu1 %v1991_v11  ;;  %v1990_v14 = vld [vmem:[%s2640_s6] sm:$0xff]  ;;  %s674_s6 = scalar_lea.vmem %s2642_s29, %s1914_s27 }
  0x20   : > { %v700_v10 = vpack.c.bf16 %v1916_v9, %v1916_v9  ;;  %v742_v18 = vld [vmem:[%s674_s6] sm:$0xf]  ;;  %s2643_s6 = sld [smem:[#allocation11_spill]] }
  0x21   : > { %736 = vmatpush.bf16.msra.mxu0 %v727_v7  ;;  %v743_v19 = vunpack.c.l.bf16 %v742_v18 }
  0x22   : > { %702 = vxpose.xlu0.c.b16.start.end [1/1] (short) (narrow) %v700_v10, 16 }
  0x23   : > { %779 = vmatpush.bf16.msra.mxu1 %v1990_v14 }
  0x24   : > { %v1995_v16 = vld [vmem:[%s2641_s25 + $0x8] sm:$0xff]  ;;  %v1994_v17 = vld [vmem:[%s2641_s25] sm:$0xff] }
  0x25   : > { %1117 = vmatpush.bf16.msra.mxu3 %v1995_v16 }
  0x26   : > { %s680_s24 = scalar_lea.vmem %s2643_s6, %s2649_s1 }
  0x29   : > { %1118 = vmatpush.bf16.msra.mxu3 %v1994_v17 }
  0xce   : > { %v710_v13 = vpop.trf.xlu0 }
  0xcf   : > { %1917 = vmatmul.msk.bf16.vlgmr.msra.gmra.mxu0 %vm718_vm3, %v710_v13 }
 0x14c   : > { %v738_v20 = vpop.f32.mrf.mxu0 }
 0x14d   : > { %v744_v21 = vadd.f32 %v743_v19, %v738_v20 }
 0x14f   : > { %v745_v22 = vpack.c.bf16 %v744_v21, %v744_v21 }
 0x151   : > { %747 = vst.msk [vmem:[#allocation2] sm:$0xf] %vm746_vm4, %v745_v22  ;;  %1926 = vmatmul.msk.bf16.vlgmr.msra.gmra.mxu1 %vm768_vm5, %v745_v22  ;;  %1935 = vmatmul.msk.bf16.vlgmr.msra.gmra.mxu2 %vm768_vm5, %v745_v22 }
 0x154   : > { %v740_v23 = vpop.f32.mrf.mxu0 }
 0x158   : > { %v2321_v24 = vld [vmem:[#allocation2] sm:$0xf] }
 0x159   : > { %1944 = vmatmul.msk.bf16.vlgmr.msra.gmra.mxu3 %vm768_vm5, %v2321_v24 }
 0x1ce   : > { %v781_v26 = vpop.f32.mrf.mxu1 }
 0x1cf   : > { %v782_v27 = vadd.f32 %v2052_v25, %v781_v26 }
 0x1d1   : > { %v818_v28 = vpack.c.bf16 %v782_v27, %v782_v27 }
 0x1d3   : > { %822 = vrot.lane.b32.xlu1 %v818_v28, %s2148_s0  ;;  %820 = vrot.lane.b32.xlu0 %v818_v28, %s2149_s21  ;;  %v829_v47 = vshrl.u32 %v818_v28, 16 }
 0x1d4   : > { %v814_v29 = vpop.f32.mrf.mxu2 }
 0x1d5   : > { %v815_v39 = vadd.f32 %v2053_v36, %v814_v29 }
 0x1d6   : > { %v783_v30 = vpop.f32.mrf.mxu1 }
 0x1d7   : > { %v2337_v40 = vpack.c.bf16 %v815_v39, %v815_v39 }
 0x1db   : > { %824 = vrot.lane.b32.xlu1 %v818_v28, %s2150_s26 }
 0x1dc   : > { %v816_v32 = vpop.f32.mrf.mxu2  ;;  %v1120_v33 = vpop.f32.mrf.mxu3 }
 0x1dd   : > { %v1121_v34 = vadd.f32 %v2054_v31, %v1120_v33 }
 0x1df   : > { %v1124_v35 = vmul.f32 0.35355338, %v1121_v34 }
 0x1e1   : > { %v1125_v37 = vpack.c.bf16 %v1124_v35, %v1124_v35 }
 0x1e3   : > { %1131 = vrot.lane.b32.xlu1 %v1125_v37, %s2150_s26  ;;  %1127 = vrot.lane.b32.xlu2 %v1125_v37, %s2149_s21  ;;  %v1136_v60 = vshrl.u32 %v1125_v37, 16 }
 0x1e4   : > { %v1122_v38 = vpop.f32.mrf.mxu3 }
 0x1eb   : > { %952 = vrot.lane.b32.xlu1 %v2337_v40, %s2149_s21  ;;  %1129 = vrot.lane.b32.xlu2 %v1125_v37, %s2148_s0 }
 0x23d   : > { %v1128_v48 = vpop.permute.xlu2 %1127 }
 0x23e   : > { %v1137_v54 = vshrl.u32 %v1128_v48, 16  ;;  %v1135_v62 = vpack.i.b16 %v1128_v48, %v1125_v37 }
 0x240   : > { %v1138_v2 = vpack.i.b16 %v1137_v54, %v1136_v60  ;;  %v1149_v9 = vperm.slane %v1135_v62, %v2345_v49 }
 0x242   : > { %v1176_v13 = vperm.slane %v1138_v2, %v2345_v49  ;;  %v1158_v27 = vrot.slane %v1149_v9, 4 }
 0x244   : > { %v1184_v31 = vrot.slane %v1176_v13, 4 }
 0x245   : > { %v823_v41 = vpop.permute.xlu1 %822  ;;  %v821_v42 = vpop.permute.xlu0 %820 }
 0x246   : > { %v830_v45 = vshrl.u32 %v821_v42, 16  ;;  %v828_v46 = vpack.i.b16 %v821_v42, %v818_v28  ;;  %v835_v56 = vshrl.u32 %v823_v41, 16  ;;  %v1130_v7 = vpop.permute.xlu2 %1129 }
 0x247   : > { %v1142_v18 = vshrl.u32 %v1130_v7, 16 }
 0x248   : > { %v831_v50 = vpack.i.b16 %v830_v45, %v829_v47  ;;  %v842_v53 = vperm.slane %v828_v46, %v2345_v49 }
 0x24a   : > { %v869_v57 = vperm.slane %v831_v50, %v2345_v49  ;;  %v851_v63 = vrot.slane %v842_v53, 4 }
 0x24c   : > { %v877_v3 = vrot.slane %v869_v57, 4 }
 0x24d   : > { %v825_v55 = vpop.permute.xlu1 %824 }
 0x24e   : > { %v834_v58 = vpack.i.b16 %v825_v55, %v823_v41  ;;  %v836_v59 = vshrl.u32 %v825_v55, 16 }
 0x250   : > { %v837_v0 = vpack.i.b16 %v836_v59, %v835_v56  ;;  %v847_v1 = vperm.slane %v834_v58, %v2345_v49 }
 0x252   : > { %v848_v4 = vrot.slane %v847_v1, 4  ;;  %v852_v5 = vsel %vm849_vm6, %v847_v1, %v851_v63  ;;  %v874_v6 = vperm.slane %v837_v0, %v2345_v49 }
 0x253   : > { %v860_v8 = vperm.slane %v852_v5, %v2349_v61 }
 0x254   : > { %v850_v10 = vsel %vm849_vm6, %v848_v4, %v842_v53  ;;  %v875_v11 = vrot.slane %v874_v6, 4  ;;  %v878_v12 = vsel %vm849_vm6, %v874_v6, %v877_v3 }
 0x255   : > { %v856_v14 = vperm.slane %v850_v10, %v2349_v61  ;;  %v863_v15 = vrot.slane %v860_v8, 4  ;;  %v886_v16 = vperm.slane %v878_v12, %v2349_v61  ;;  %v1132_v17 = vpop.permute.xlu1 %1131 }
 0x256   : > { %v876_v19 = vsel %vm849_vm6, %v875_v11, %v869_v57  ;;  %v1141_v20 = vpack.i.b16 %v1132_v17, %v1130_v7  ;;  %v1143_v21 = vshrl.u32 %v1132_v17, 16 }
 0x257   : > { %v861_v22 = vrot.slane %v856_v14, 4  ;;  %v864_v23 = vsel %vm849_vm6, 0, %v863_v15  ;;  %v882_v25 = vperm.slane %v876_v19, %v2349_v61  ;;  %v889_v26 = vrot.slane %v886_v16, 4 }
 0x258   : > { %v896_v28 = vrot.slane %v864_v23, 4  ;;  %v1144_v29 = vpack.i.b16 %v1143_v21, %v1142_v18  ;;  %v1154_v30 = vperm.slane %v1141_v20, %v2345_v49  ;;  %v891_v35 = vsel %vm849_vm6, %v863_v15, %v856_v14 }
 0x259   : > { %v862_v32 = vsel %vm849_vm6, 0, %v861_v22  ;;  %v887_v33 = vrot.slane %v882_v25, 4  ;;  %v890_v34 = vsel %vm849_vm6, 0, %v889_v26  ;;  %v910_v42 = vsel %vm849_vm6, %v889_v26, %v882_v25 }
 0x25a   : > { %v897_v36 = vsel %vm849_vm6, %v896_v28, %v862_v32  ;;  %v915_v37 = vrot.slane %v890_v34, 4  ;;  %v1155_v38 = vrot.slane %v1154_v30, 4  ;;  %v1159_v43 = vsel %vm849_vm6, %v1154_v30, %v1158_v27 }
 0x25b   : > { %v888_v39 = vsel %vm849_vm6, 0, %v887_v33  ;;  %v901_v41 = vperm.slane %v897_v36, %v2345_v49  ;;  %v1167_v46 = vperm.slane %v1159_v43, %v2349_v61  ;;  %v1181_v47 = vperm.slane %v1144_v29, %v2345_v49 }
 0x25c   : > { %v916_v44 = vsel %vm849_vm6, %v915_v37, %v888_v39  ;;  %v1157_v45 = vsel %vm849_vm6, %v1155_v38, %v1149_v9  ;;  %v895_v48 = vperm.slane %v891_v35, %v2345_v49  ;;  %v914_v53 = vperm.slane %v910_v42, %v2345_v49 }
 0x25d   : > { %v902_v50 = vrot.slane %v901_v41, 4  ;;  %v920_v51 = vperm.slane %v916_v44, %v2345_v49  ;;  %v1163_v52 = vperm.slane %v1157_v45, %v2349_v61  ;;  %v1170_v54 = vrot.slane %v1167_v46, 4 }
 0x25e   : > { %v1182_v55 = vrot.slane %v1181_v47, 4  ;;  %v1185_v56 = vsel %vm849_vm6, %v1181_v47, %v1184_v31 }
 0x25f   : > { %v903_v57 = vsel %vm849_vm6, %v902_v50, %v895_v48  ;;  %v921_v58 = vrot.slane %v920_v51, 4  ;;  %v1168_v59 = vrot.slane %v1163_v52, 4  ;;  %v1193_v60 = vperm.slane %v1185_v56, %v2349_v61 }
 0x260   : > { %v907_v62 = vperm.slane %v903_v57, %v2349_v61  ;;  %v1171_v63 = vsel %vm849_vm6, 0, %v1170_v54  ;;  %v1183_v0 = vsel %vm849_vm6, %v1182_v55, %v1176_v13  ;;  %v1198_v16 = vsel %vm849_vm6, %v1170_v54, %v1163_v52 }
 0x261   : > { %v922_v1 = vsel %vm849_vm6, %v921_v58, %v914_v53  ;;  %v1189_v2 = vperm.slane %v1183_v0, %v2349_v61  ;;  %v1196_v3 = vrot.slane %v1193_v60, 4  ;;  %v1169_v6 = vsel %vm849_vm6, 0, %v1168_v59  ;;  %v2055_v60 = vld [vmem:[%s680_s24] ss:$0 sm:$0xff]  ;;  %s687_s24 = scalar_lea.vmem %s2629_s20, %s1914_s27 }
 0x262   : > { %v908_v4 = vrot.slane %v907_v62, 4  ;;  %v926_v5 = vperm.slane %v922_v1, %v2349_v61  ;;  %v933_v7 = vshrl.u32 %v907_v62, 16  ;;  %v1203_v10 = vrot.slane %v1171_v63, 4 }
 0x263   : > { %v1194_v8 = vrot.slane %v1189_v2, 4  ;;  %v1197_v9 = vsel %vm849_vm6, 0, %v1196_v3  ;;  %v1202_v26 = vperm.slane %v1198_v16, %v2345_v49  ;;  %v1217_v27 = vsel %vm849_vm6, %v1196_v3, %v1189_v2  ;;  %v953_v16 = vpop.permute.xlu1 %952 }
 0x264   : > { %v909_v11 = vsel %vm849_vm6, 0, %v908_v4  ;;  %v927_v12 = vrot.slane %v926_v5, 4  ;;  %v931_v13 = vpack.i.b16 %v926_v5, %v907_v62  ;;  %v934_v14 = vshrl.u32 %v926_v5, 16 }
 0x265   : > { %v1195_v15 = vsel %vm849_vm6, 0, %v1194_v8  ;;  %v1204_v17 = vsel %vm849_vm6, %v1203_v10, %v1169_v6  ;;  %v1222_v21 = vrot.slane %v1197_v9, 4  ;;  %v941_v23 = vshrl.u32 %v909_v11, 16 }
 0x266   : > { %v928_v18 = vsel %vm849_vm6, 0, %v927_v12  ;;  %v935_v19 = vpack.i.b16 %v934_v14, %v933_v7  ;;  %946 = vst.msk [vmem:[#allocation3] sm:$0xf] %vm945_vm7, %v931_v13  ;;  %v1208_v20 = vperm.slane %v1204_v17, %v2345_v49  ;;  %v1221_v33 = vperm.slane %v1217_v27, %v2345_v49 }
 0x267   : > { %v939_v22 = vpack.i.b16 %v928_v18, %v909_v11  ;;  %v942_v25 = vshrl.u32 %v928_v18, 16  ;;  %v1223_v28 = vsel %vm849_vm6, %v1222_v21, %v1195_v15 }
 0x268   : > { %947 = vst.msk [vmem:[#allocation3 + $0x4] sm:$0xf] %vm945_vm7, %v935_v19  ;;  %v1209_v29 = vrot.slane %v1208_v20, 4  ;;  %v1227_v31 = vperm.slane %v1223_v28, %v2345_v49 }
 0x269   : > { %v943_v30 = vpack.i.b16 %v942_v25, %v941_v23  ;;  %948 = vst.msk [vmem:[#allocation3 + $0x8] sm:$0xf] %vm945_vm7, %v939_v22 }
 0x26a   : > { %v1210_v32 = vsel %vm849_vm6, %v1209_v29, %v1202_v26  ;;  %v1228_v34 = vrot.slane %v1227_v31, 4 }
 0x26b   : > { %949 = vst.msk [vmem:[#allocation3 + $0xc] sm:$0xf] %vm945_vm7, %v943_v30  ;;  %v1214_v35 = vperm.slane %v1210_v32, %v2349_v61 }
 0x26c   : > { %v1229_v37 = vsel %vm849_vm6, %v1228_v34, %v1221_v33  ;;  %v962_v33 = vshrl.u32 %v953_v16, 16 }
 0x26d   : > { %v1248_v36 = vld [vmem:[#allocation3] sm:$0xf]  ;;  %v1233_v39 = vperm.slane %v1229_v37, %v2349_v61  ;;  %v1215_v44 = vrot.slane %v1214_v35, 4  ;;  %v1239_v53 = vshrl.u32 %v1214_v35, 16 }
 0x26e   : > { %v1260_v38 = vsel %vm1255_vm8, %v1248_v36, 0  ;;  %v960_v36 = vpack.i.b16 %v953_v16, %v2337_v40 }
 0x26f   : > { %1269 = vmatpush.bf16.xpose.msrb.mxu0 %v1260_v38  ;;  %v1249_v41 = vld [vmem:[#allocation3 + $0x4] sm:$0xf]  ;;  %v1234_v45 = vrot.slane %v1233_v39, 4  ;;  %v1240_v48 = vshrl.u32 %v1233_v39, 16  ;;  %v1238_v52 = vpack.i.b16 %v1233_v39, %v1214_v35  ;;  %v1216_v54 = vsel %vm849_vm6, 0, %v1215_v44 }
 0x270   : > { %v1279_v42 = vsel %vm1255_vm8, %v1249_v41, 0  ;;  %v1250_v43 = vld [vmem:[#allocation3 + $0x8] sm:$0xf]  ;;  %v1245_v58 = vshrl.u32 %v1216_v54, 16  ;;  %v961_v35 = vshrl.u32 %v2337_v40, 16  ;;  %v974_v41 = vperm.slane %v960_v36, %v2345_v49 }
 0x271   : > { %1288 = vmatpush.bf16.xpose.msrb.mxu1 %v1279_v42  ;;  %v1298_v46 = vsel %vm1255_vm8, %v1250_v43, 0  ;;  %v1235_v50 = vsel %vm849_vm6, 0, %v1234_v45  ;;  %v1241_v56 = vpack.i.b16 %v1240_v48, %v1239_v53 }
 0x272   : > { %1307 = vmatpush.bf16.xpose.msrb.mxu2 %v1298_v46  ;;  %v1251_v47 = vld [vmem:[#allocation3 + $0xc] sm:$0xf]  ;;  %v1246_v55 = vshrl.u32 %v1235_v50, 16  ;;  %v1244_v57 = vpack.i.b16 %v1235_v50, %v1216_v54  ;;  %v963_v37 = vpack.i.b16 %v962_v33, %v961_v35  ;;  %v982_v48 = vrot.slane %v974_v41, 4 }
 0x273   : > { %v1317_v51 = vsel %vm1255_vm8, %v1251_v47, 0 }
 0x274   : > { %1326 = vmatpush.bf16.xpose.msrb.mxu3 %v1317_v51  ;;  %v1247_v59 = vpack.i.b16 %v1246_v55, %v1245_v58  ;;  %v1000_v42 = vperm.slane %v963_v37, %v2345_v49 }
 0x276   : > { %1945 = vmatmul.msk.bf16.vlgmr.msrb.gmra.mxu0 %vm1255_vm8, %v1238_v52  ;;  %v1008_v51 = vrot.slane %v1000_v42, 4 }
 0x278   : > { %1946 = vmatmul.msk.bf16.vlgmr.msrb.gmra.mxu1 %vm1255_vm8, %v1241_v56 }
 0x279   : > { %1947 = vmatmul.msk.bf16.vlgmr.msrb.gmra.mxu2 %vm1255_vm8, %v1244_v57 }
 0x27b   : > { %1948 = vmatmul.msk.bf16.vlgmr.msrb.gmra.mxu3 %vm1255_vm8, %v1247_v59 }
 0x2f3   : > { %v1271_v62 = vpop.f32.mrf.mxu0 }
 0x2f4   : > { %v1272_v63 = vadd.f32 %v2055_v60, %v1271_v62 }
 0x2f5   : > { %v1290_v0 = vpop.f32.mrf.mxu1 }
 0x2f6   : > { %v1332_v1 = vsel %vm1255_vm8, %v1272_v63, -inf  ;;  %v1291_v2 = vadd.f32 %v2055_v60, %v1290_v0 }
 0x2f7   : > { %1333 = vmax.xlane.f32.xlu2 %v1332_v1 }
 0x2f8   : > { %v1335_v7 = vsel %vm1255_vm8, %v1291_v2, -inf }
 0x2fb   : > { %v1273_v3 = vpop.f32.mrf.mxu0 }
 0x2fc   : > { %v1309_v4 = vpop.f32.mrf.mxu2 }
 0x2fd   : > { %v1292_v5 = vpop.f32.mrf.mxu1  ;;  %v1310_v10 = vadd.f32 %v2055_v60, %v1309_v4 }
 0x2fe   : > { %v1328_v6 = vpop.f32.mrf.mxu3 }
 0x2ff   : > { %v1329_v8 = vadd.f32 %v2055_v60, %v1328_v6  ;;  %1336 = vmax.xlane.f32.xlu2 %v1335_v7  ;;  %v1338_v13 = vsel %vm1255_vm8, %v1310_v10, -inf }
 0x301   : > { %v1341_v9 = vsel %vm1255_vm8, %v1329_v8, -inf }
 0x302   : > { %1342 = vmax.xlane.f32.xlu1 %v1341_v9 }
 0x304   : > { %v1311_v11 = vpop.f32.mrf.mxu2 }
 0x306   : > { %v1330_v12 = vpop.f32.mrf.mxu3 }
 0x307   : > { %1339 = vmax.xlane.f32.xlu2 %v1338_v13 }
 0x31b   : > { %956 = vrot.lane.b32.xlu1 %v2337_v40, %s2150_s26  ;;  %s2154_s26 = smov 16  }
 0x31f   : > { %954 = vrot.lane.b32.xlu2 %v2337_v40, %s2148_s0  ;;  %s2153_s0 = smov 24  }
 0x36a   : > { %v1334_v14 = vpop.xlane.xlu2 %1333 }
 0x36b   : > { %v1344_v15 = vsub.f32 %v1272_v63, %v1334_v14 }
 0x36d   : > { %v1348_v17 = vmul.f32 1.442695, %v1344_v15 }
 0x36f   : > { %2063 = vpow2.f32 %v1348_v17 }
 0x372   : > { %v1337_v18 = vpop.xlane.xlu2 %1336 }
 0x373   : > { %v1345_v27 = vsub.f32 %v1291_v2, %v1337_v18 }
 0x375   : > { %v2434_v19 = vpop.eup %2063  ;;  %v1343_v20 = vpop.xlane.xlu1 %1342  ;;  %v1350_v30 = vmul.f32 1.442695, %v1345_v27 }
 0x376   : > { %v1347_v21 = vsub.f32 %v1329_v8, %v1343_v20  ;;  %v1356_v22 = vsel %vm1255_vm8, %v2434_v19, 0.0 }
 0x377   : > { %1357 = vadd.xlane.f32.xlu0 %v1356_v22 }
 0x378   : > { %v1354_v23 = vmul.f32 1.442695, %v1347_v21 }
 0x37a   : > { %2065 = vpow2.f32 %v1354_v23  ;;  %v1340_v25 = vpop.xlane.xlu2 %1339 }
 0x37b   : > { %v1346_v26 = vsub.f32 %v1310_v10, %v1340_v25 }
 0x37d   : > { %v1352_v28 = vmul.f32 1.442695, %v1346_v26 }
 0x37f   : > { %2067 = vpow2.f32 %v1352_v28 }
 0x380   : > { %v2438_v29 = vpop.eup %2065  ;;  %2069 = vpow2.f32 %v1350_v30 }
 0x381   : > { %v1365_v31 = vsel %vm1255_vm8, %v2438_v29, 0.0 }
 0x382   : > { %1366 = vadd.xlane.f32.xlu1 %v1365_v31  ;;  %v955_v39 = vpop.permute.xlu2 %954 }
 0x383   : > { %v967_v44 = vshrl.u32 %v955_v39, 16 }
 0x385   : > { %v2442_v32 = vpop.eup %2067 }
 0x386   : > { %v1362_v34 = vsel %vm1255_vm8, %v2442_v32, 0.0  ;;  %v2448_v38 = vpop.eup %2069 }
 0x387   : > { %1363 = vadd.xlane.f32.xlu2 %v1362_v34  ;;  %v1359_v47 = vsel %vm1255_vm8, %v2448_v38, 0.0 }
 0x38d   : > { %v957_v43 = vpop.permute.xlu1 %956 }
 0x38e   : > { %v966_v45 = vpack.i.b16 %v957_v43, %v955_v39  ;;  %v968_v46 = vshrl.u32 %v957_v43, 16 }
 0x38f   : > { %1360 = vadd.xlane.f32.xlu2 %v1359_v47 }
 0x390   : > { %v969_v50 = vpack.i.b16 %v968_v46, %v967_v44  ;;  %v979_v40 = vperm.slane %v966_v45, %v2345_v49 }
 0x392   : > { %v980_v52 = vrot.slane %v979_v40, 4  ;;  %v983_v53 = vsel %vm849_vm6, %v979_v40, %v982_v48  ;;  %v1005_v54 = vperm.slane %v969_v50, %v2345_v49 }
 0x393   : > { %v991_v55 = vperm.slane %v983_v53, %v2349_v61 }
 0x394   : > { %v981_v56 = vsel %vm849_vm6, %v980_v52, %v974_v41  ;;  %v1006_v57 = vrot.slane %v1005_v54, 4  ;;  %v1009_v58 = vsel %vm849_vm6, %v1005_v54, %v1008_v51 }
 0x395   : > { %v987_v59 = vperm.slane %v981_v56, %v2349_v61  ;;  %v994_v60 = vrot.slane %v991_v55, 4  ;;  %v1017_v62 = vperm.slane %v1009_v58, %v2349_v61 }
 0x396   : > { %v1007_v63 = vsel %vm849_vm6, %v1006_v57, %v1000_v42 }
 0x397   : > { %v992_v0 = vrot.slane %v987_v59, 4  ;;  %v995_v1 = vsel %vm849_vm6, 0, %v994_v60  ;;  %v1013_v2 = vperm.slane %v1007_v63, %v2349_v61  ;;  %v1020_v3 = vrot.slane %v1017_v62, 4 }
 0x398   : > { %v1027_v4 = vrot.slane %v995_v1, 4  ;;  %v1022_v8 = vsel %vm849_vm6, %v994_v60, %v987_v59 }
 0x399   : > { %v993_v5 = vsel %vm849_vm6, 0, %v992_v0  ;;  %v1018_v6 = vrot.slane %v1013_v2, 4  ;;  %v1021_v7 = vsel %vm849_vm6, 0, %v1020_v3  ;;  %v1041_v13 = vsel %vm849_vm6, %v1020_v3, %v1013_v2 }
 0x39a   : > { %v1028_v9 = vsel %vm849_vm6, %v1027_v4, %v993_v5  ;;  %v1046_v10 = vrot.slane %v1021_v7, 4  ;;  %v1026_v15 = vperm.slane %v1022_v8, %v2345_v49  ;;  %v1045_v20 = vperm.slane %v1041_v13, %v2345_v49 }
 0x39b   : > { %v1019_v11 = vsel %vm849_vm6, 0, %v1018_v6  ;;  %v1032_v12 = vperm.slane %v1028_v9, %v2345_v49 }
 0x39c   : > { %v1047_v14 = vsel %vm849_vm6, %v1046_v10, %v1019_v11 }
 0x39d   : > { %v1033_v16 = vrot.slane %v1032_v12, 4  ;;  %v1051_v17 = vperm.slane %v1047_v14, %v2345_v49 }
 0x39f   : > { %v1034_v18 = vsel %vm849_vm6, %v1033_v16, %v1026_v15  ;;  %v1052_v21 = vrot.slane %v1051_v17, 4 }
 0x3a0   : > { %v1038_v22 = vperm.slane %v1034_v18, %v2349_v61 }
 0x3a1   : > { %v1053_v23 = vsel %vm849_vm6, %v1052_v21, %v1045_v20 }
 0x3a2   : > { %v1039_v25 = vrot.slane %v1038_v22, 4  ;;  %v1057_v26 = vperm.slane %v1053_v23, %v2349_v61  ;;  %v1064_v27 = vshrl.u32 %v1038_v22, 16 }
 0x3a4   : > { %v1040_v28 = vsel %vm849_vm6, 0, %v1039_v25  ;;  %v1058_v30 = vrot.slane %v1057_v26, 4  ;;  %v1062_v31 = vpack.i.b16 %v1057_v26, %v1038_v22  ;;  %v1065_v33 = vshrl.u32 %v1057_v26, 16 }
 0x3a5   : > { %v1072_v37 = vshrl.u32 %v1040_v28, 16 }
 0x3a6   : > { %v1059_v34 = vsel %vm849_vm6, 0, %v1058_v30  ;;  %v1066_v35 = vpack.i.b16 %v1065_v33, %v1064_v27  ;;  %1076 = vst.msk [vmem:[#allocation4] sm:$0xf] %vm945_vm7, %v1062_v31 }
 0x3a7   : > { %v1070_v36 = vpack.i.b16 %v1059_v34, %v1040_v28  ;;  %v1073_v39 = vshrl.u32 %v1059_v34, 16 }
 0x3a8   : > { %1077 = vst.msk [vmem:[#allocation4 + $0x4] sm:$0xf] %vm945_vm7, %v1066_v35 }
 0x3a9   : > { %v1074_v41 = vpack.i.b16 %v1073_v39, %v1072_v37  ;;  %1078 = vst.msk [vmem:[#allocation4 + $0x8] sm:$0xf] %vm945_vm7, %v1070_v36 }
 0x3ab   : > { %1079 = vst.msk [vmem:[#allocation4 + $0xc] sm:$0xf] %vm945_vm7, %v1074_v41 }
 0x3ad   : > { %v1380_v42 = vld [vmem:[#allocation4] sm:$0xf] }
 0x3ae   : > { %v1389_v43 = vsel %vm723_vm1, %v1380_v42, 0 }
 0x3af   : > { %1398 = vmatpush.bf16.msra.mxu0 %v1389_v43  ;;  %v1381_v44 = vld [vmem:[#allocation4 + $0x4] sm:$0xf] }
 0x3b0   : > { %v1408_v45 = vsel %vm723_vm1, %v1381_v44, 0  ;;  %v1382_v46 = vld [vmem:[#allocation4 + $0x8] sm:$0xf] }
 0x3b1   : > { %1417 = vmatpush.bf16.msra.mxu1 %v1408_v45  ;;  %v1427_v47 = vsel %vm723_vm1, %v1382_v46, 0 }
 0x3b2   : > { %1436 = vmatpush.bf16.msra.mxu2 %v1427_v47  ;;  %v1383_v48 = vld [vmem:[#allocation4 + $0xc] sm:$0xf] }
 0x3b3   : > { %v1446_v50 = vsel %vm723_vm1, %v1383_v48, 0 }
 0x3b4   : > { %1455 = vmatpush.bf16.msra.mxu3 %v1446_v50 }
 0x3ea   : > { %v1358_v40 = vpop.xlane.xlu0 %1357 }
 0x3eb   : > { %2071 = vrcp.f32 %v1358_v40 }
 0x3f1   : > { %v2072_v51 = vpop.eup %2071 }
 0x3f2   : > { %v1372_v52 = vmul.f32 %v2072_v51, %v2434_v19 }
 0x3f4   : > { %v1376_v53 = vpack.c.bf16 %v1372_v52, %v1372_v52 }
 0x3f5   : > { %v1367_v54 = vpop.xlane.xlu1 %1366 }
 0x3f6   : > { %2073 = vrcp.f32 %v1367_v54  ;;  %1949 = vmatmul.msk.bf16.vlgmr.msra.gmra.mxu0 %vm1255_vm8, %v1376_v53 }
 0x3fa   : > { %v1364_v55 = vpop.xlane.xlu2 %1363 }
 0x3fb   : > { %2075 = vrcp.f32 %v1364_v55 }
 0x3fc   : > { %v2074_v56 = vpop.eup %2073 }
 0x3fd   : > { %v1375_v57 = vmul.f32 %v2074_v56, %v2438_v29 }
 0x3ff   : > { %v1379_v58 = vpack.c.bf16 %v1375_v57, %v1375_v57 }
 0x401   : > { %v2076_v59 = vpop.eup %2075  ;;  %1952 = vmatmul.msk.bf16.vlgmr.msra.gmra.mxu3 %vm1255_vm8, %v1379_v58 }
 0x402   : > { %v1374_v60 = vmul.f32 %v2076_v59, %v2442_v32  ;;  %v1361_v62 = vpop.xlane.xlu2 %1360 }
 0x403   : > { %2077 = vrcp.f32 %v1361_v62 }
 0x404   : > { %v1378_v63 = vpack.c.bf16 %v1374_v60, %v1374_v60 }
 0x406   : > { %1951 = vmatmul.msk.bf16.vlgmr.msra.gmra.mxu2 %vm1255_vm8, %v1378_v63 }
 0x409   : > { %v2078_v19 = vpop.eup %2077 }
 0x40a   : > { %v1373_v0 = vmul.f32 %v2078_v19, %v2448_v38 }
 0x40c   : > { %v1377_v1 = vpack.c.bf16 %v1373_v0, %v1373_v0 }
 0x40e   : > { %1950 = vmatmul.msk.bf16.vlgmr.msra.gmra.mxu1 %vm1255_vm8, %v1377_v1 }
 0x473   : > { %v1400_v2 = vpop.f32.mrf.mxu0 }
 0x474   : > { %v1464_v4 = vrot.slane %v1400_v2, 4 }
 0x47b   : > { %v1402_v3 = vpop.f32.mrf.mxu0 }
 0x484   : > { %v1457_v29 = vpop.f32.mrf.mxu3 }
 0x485   : > { %v1474_v6 = vrot.slane %v1457_v29, 4 }
 0x489   : > { %v1438_v5 = vpop.f32.mrf.mxu2 }
 0x48a   : > { %v1461_v7 = vrot.slane %v1438_v5, 4  ;;  %v1465_v32 = vsel %vm849_vm6, %v1438_v5, %v1464_v4 }
 0x48b   : > { %v1473_v8 = vperm.slane %v1465_v32, %v2345_v49  ;;  %v1419_v9 = vpop.f32.mrf.mxu1 }
 0x48c   : > { %v1463_v10 = vsel %vm849_vm6, %v1461_v7, %v1400_v2  ;;  %v1475_v11 = vsel %vm849_vm6, %v1474_v6, %v1419_v9  ;;  %v1476_v38 = vrot.slane %v1419_v9, 4  ;;  %v1459_v12 = vpop.f32.mrf.mxu3 }
 0x48d   : > { %v1469_v13 = vperm.slane %v1463_v10, %v2345_v49  ;;  %v1481_v14 = vperm.slane %v1475_v11, %v2345_v49  ;;  %v1500_v17 = vrot.slane %v1473_v8, 4 }
 0x48e   : > { %v1477_v15 = vsel %vm849_vm6, %v1457_v29, %v1476_v38 }
 0x48f   : > { %v1488_v16 = vrot.slane %v1469_v13, 4  ;;  %v1485_v18 = vperm.slane %v1477_v15, %v2345_v49  ;;  %v1486_v20 = vrot.slane %v1481_v14, 4  ;;  %v2056_v15 = vld [vmem:[%s2620_s11] ss:$0 sm:$0xff] }
 0x491   : > { %v1487_v21 = vsel %vm849_vm6, %v1486_v20, %v1469_v13  ;;  %v1489_v22 = vsel %vm849_vm6, %v1481_v14, %v1488_v16  ;;  %v1498_v23 = vrot.slane %v1485_v18, 4  ;;  %v1501_v25 = vsel %vm849_vm6, %v1485_v18, %v1500_v17  ;;  %v1440_v26 = vpop.f32.mrf.mxu2 }
 0x492   : > { %v1493_v27 = vperm.slane %v1487_v21, %v2349_v61  ;;  %v1497_v28 = vperm.slane %v1489_v22, %v2349_v61  ;;  %v1509_v30 = vperm.slane %v1501_v25, %v2349_v61  ;;  %v1626_v17 = vunpack.c.l.bf16 %v2321_v24 }
 0x493   : > { %v1499_v31 = vsel %vm849_vm6, %v1498_v23, %v1473_v8  ;;  %v1421_v33 = vpop.f32.mrf.mxu1  ;;  %v1996_v8 = vld [vmem:[%s2619_s10] sm:$0xff]  ;;  %v2156_v23 = vmov 32.0  }
 0x494   : > { %v1505_v34 = vperm.slane %v1499_v31, %v2349_v61  ;;  %v1510_v35 = vrot.slane %v1493_v27, 4  ;;  %v1512_v36 = vrot.slane %v1497_v28, 4  ;;  %v1516_v37 = vrot.slane %v1509_v30, 4 }
 0x495   : > { %2079 = vrcp.f32 %v2156_v23 }
 0x496   : > { %v1513_v39 = vsel %vm849_vm6, 0.0, %v1512_v36  ;;  %v1514_v41 = vrot.slane %v1505_v34, 4  ;;  %v1517_v42 = vsel %vm849_vm6, 0.0, %v1516_v37  ;;  %v1518_v43 = vsel %vm849_vm6, %v1512_v36, %v1493_v27 }
 0x497   : > { %v1523_v44 = vrot.slane %v1513_v39, 4  ;;  %v1534_v45 = vrot.slane %v1517_v42, 4  ;;  %v1529_v46 = vsel %vm849_vm6, %v1516_v37, %v1505_v34  ;;  %v1511_v47 = vsel %vm849_vm6, 0.0, %v1510_v35  ;;  %v1999_v37 = vld [vmem:[%s2623_s14 + $0x8] sm:$0xff]  ;;  %v1998_v39 = vld [vmem:[%s2623_s14] sm:$0xff] }
 0x498   : > { %v1522_v48 = vperm.slane %v1518_v43, %v2345_v49  ;;  %v1515_v50 = vsel %vm849_vm6, 0.0, %v1514_v41  ;;  %v1533_v40 = vperm.slane %v1529_v46, %v2345_v49  ;;  %1697 = vmatpush.bf16.msrb.mxu1 %v1999_v37 }
 0x499   : > { %v1524_v51 = vsel %vm849_vm6, %v1523_v44, %v1511_v47  ;;  %v1535_v52 = vsel %vm849_vm6, %v1534_v45, %v1515_v50 }
 0x49a   : > { %v1528_v53 = vperm.slane %v1524_v51, %v2345_v49  ;;  %v1539_v54 = vperm.slane %v1535_v52, %v2345_v49  ;;  %v1542_v55 = vrot.slane %v1522_v48, 4  ;;  %v1554_v56 = vrot.slane %v1533_v40, 4  ;;  %v2058_v52 = vld [vmem:[%s2622_s13] ss:$0 sm:$0xff] }
 0x49b   : > { %v2080_v25 = vpop.eup %2079 }
 0x49c   : > { %v1543_v57 = vsel %vm849_vm6, %v1528_v53, %v1542_v55  ;;  %v1555_v58 = vsel %vm849_vm6, %v1539_v54, %v1554_v56  ;;  %v1540_v59 = vrot.slane %v1528_v53, 4  ;;  %v1552_v60 = vrot.slane %v1539_v54, 4  ;;  %1698 = vmatpush.bf16.msrb.mxu1 %v1998_v39 }
 0x49d   : > { %v1551_v62 = vperm.slane %v1543_v57, %v2349_v61  ;;  %v1563_v63 = vperm.slane %v1555_v58, %v2349_v61  ;;  %v1634_v26 = vmul.f32 32.0, %v2080_v25  ;;  %vm1638_vm11 = vweird.f32 %v2080_v25  ;;  %v2003_v57 = vld [vmem:[%s2625_s16 + $0x18] sm:$0xff]  ;;  %v2002_v58 = vld [vmem:[%s2625_s16 + $0x10] sm:$0xff] }
 0x49e   : > { %v1541_v19 = vsel %vm849_vm6, %v1540_v59, %v1522_v48  ;;  %v1553_v0 = vsel %vm849_vm6, %v1552_v60, %v1533_v40  ;;  %v2057_v40 = vld [vmem:[%s2621_s12] ss:$0 sm:$0xff]  ;;  %1758 = vmatpush.bf16.msrb.mxu2 %v2003_v57  ;;  %v2001_v59 = vld [vmem:[%s2625_s16 + $0x8] sm:$0xff]  ;;  %v2059_v60 = vld [vmem:[#allocation5] ss:$0 sm:$0xff] }
 0x49f   : > { %v1570_v1 = vrot.slane %v1551_v62, 4  ;;  %v1568_v2 = vrot.slane %v1563_v63, 4  ;;  %v1547_v49 = vperm.slane %v1541_v19, %v2349_v61  ;;  %v1559_v3 = vperm.slane %v1553_v0, %v2349_v61  ;;  %v1997_v61 = vld [vmem:[%s2619_s10 + $0x8] sm:$0xff] }
 0x4a0   : > { %1619 = vmatpush.bf16.msrb.mxu0 %v1997_v61  ;;  %v1635_v27 = vsub.f32 1.0, %v1634_v26  ;;  %v2060_v61 = vld [vmem:[%s2626_s17] ss:$0 sm:$0xff] }
 0x4a1   : > { %v1571_v29 = vsel %vm849_vm6, %v1563_v63, %v1570_v1  ;;  %v1569_v4 = vsel %vm849_vm6, %v1568_v2, %v1551_v62  ;;  %v1564_v5 = vrot.slane %v1559_v3, 4  ;;  %v1566_v6 = vrot.slane %v1547_v49, 4  ;;  %v2000_v62 = vld [vmem:[%s2625_s16] sm:$0xff] }
 0x4a2   : > { %1581 = vrot.lane.b32.xlu0 %v1571_v29, %s2153_s0  ;;  %1577 = vrot.lane.b32.xlu2 %v1569_v4, %s2154_s26  ;;  %v1636_v28 = vmul.f32 %v2080_v25, %v1635_v27 }
 0x4a3   : > { %v1567_v7 = vsel %vm849_vm6, %v1559_v3, %v1566_v6  ;;  %v1565_v32 = vsel %vm849_vm6, %v1564_v5, %v1547_v49  ;;  %1759 = vmatpush.bf16.msrb.mxu2 %v2002_v58 }
 0x4a4   : > { %1573 = vrot.lane.b32.xlu1 %v1567_v7, %s2155_s28  ;;  %1620 = vmatpush.bf16.msrb.mxu0 %v1996_v8  ;;  %v1637_v30 = vadd.f32 %v2080_v25, %v1636_v28  ;;  %v2061_v28 = vld [vmem:[%s2627_s18] ss:$0 sm:$0xff] }
 0x4a6   : > { %v2551_v31 = vsel %vm1638_vm11, %v2080_v25, %v1637_v30 }
 0x4a7   : > { %1760 = vmatpush.bf16.msrb.mxu2 %v2001_v59 }
 0x4ab   : > { %1761 = vmatpush.bf16.msrb.mxu2 %v2000_v62 }
 0x4fc   : > { %v1578_v10 = vpop.permute.xlu2 %1577 }
 0x514   : > { %v1582_v38 = vpop.permute.xlu0 %1581 }
 0x516   : > { %v1574_v9 = vpop.permute.xlu1 %1573 }
 0x517   : > { %v1584_v11 = vsel %vm1255_vm8, %v1565_v32, %v1574_v9 }
 0x518   : > { %v1586_v12 = vsel %vm1585_vm9, %v1584_v11, %v1578_v10 }
 0x519   : > { %v1588_v13 = vsel %vm1587_vm10, %v1586_v12, %v1582_v38 }
 0x51a   : > { %v1589_v14 = vpack.c.bf16 %v1588_v13, %v1588_v13 }
 0x51c   : > { %1961 = vmatmul.msk.bf16.vlgmr.msrb.gmra.mxu0 %vm768_vm5, %v1589_v14 }
 0x599   : > { %v1622_v16 = vpop.f32.mrf.mxu0 }
 0x59a   : > { %v1623_v18 = vadd.f32 %v2056_v15, %v1622_v16 }
 0x59c   : > { %v1627_v20 = vadd.f32 %v1626_v17, %v1623_v18 }
 0x59e   : > { %v1630_v21 = vsel %vm768_vm5, %v1627_v20, 0.0 }
 0x59f   : > { %1631 = vadd.xlane.f32.xlu1 %v1630_v21 }
 0x5a1   : > { %v1624_v22 = vpop.f32.mrf.mxu0 }
 0x612   : > { %v1632_v33 = vpop.xlane.xlu1 %1631 }
 0x613   : > { %v1640_v34 = vmul.f32 %v2551_v31, %v1632_v33 }
 0x615   : > { %v1641_v24 = vsub.f32 %v1627_v20, %v1640_v34 }
 0x617   : > { %v1642_v35 = vmul.f32 %v1641_v24, %v1641_v24 }
 0x619   : > { %v1643_v36 = vsel %vm768_vm5, %v1642_v35, 0.0 }
 0x61a   : > { %1644 = vadd.xlane.f32.xlu2 %v1643_v36 }
 0x68d   : > { %v1645_v41 = vpop.xlane.xlu2 %1644 }
 0x68e   : > { %v1646_v42 = vmul.f32 %v1645_v41, %v2551_v31 }
 0x690   : > { %v1647_v43 = vadd.f32 1e-12, %v1646_v42 }
 0x692   : > { %2081 = vrsqrt.f32 %v1647_v43  ;;  %vm1654_vm13 = vweird.f32 %v1647_v43 }
 0x698   : > { %v2082_v44 = vpop.eup %2081 }
 0x699   : > { %v1649_v45 = vmul.f32 %v2082_v44, %v1647_v43  ;;  %vm1655_vm12 = vweird.f32 %v2082_v44 }
 0x69a   : > { %vm1656_vm14 = vmor %vm1654_vm13, %vm1655_vm12 }
 0x69b   : > { %v1650_v46 = vmul.f32 %v2082_v44, %v1649_v45 }
 0x69d   : > { %v1651_v47 = vmul.f32 0.5, %v1650_v46 }
 0x69f   : > { %v1652_v48 = vsub.f32 1.5, %v1651_v47 }
 0x6a1   : > { %v1653_v50 = vmul.f32 %v2082_v44, %v1652_v48 }
 0x6a3   : > { %v1657_v51 = vsel %vm1656_vm14, %v2082_v44, %v1653_v50 }
 0x6a4   : > { %v1658_v53 = vmul.f32 %v1657_v51, %v1641_v24 }
 0x6a6   : > { %v1662_v54 = vmul.f32 %v2057_v40, %v1658_v53 }
 0x6a8   : > { %v1666_v55 = vadd.f32 %v2058_v52, %v1662_v54 }
 0x6aa   : > { %v1667_v56 = vpack.c.bf16 %v1666_v55, %v1666_v55 }
 0x6ac   : > { %1970 = vmatmul.msk.bf16.vlgmr.msrb.gmra.mxu1 %vm768_vm5, %v1667_v56 }
 0x729   : > { %v1700_v63 = vpop.f32.mrf.mxu1 }
 0x72a   : > { %v1701_v19 = vadd.f32 %v2059_v60, %v1700_v63 }
 0x72c   : > { %v1704_v0 = vmul.f32 %v1701_v19, %v1701_v19 }
 0x72e   : > { %v1705_v1 = vmul.f32 %v1704_v0, %v1701_v19 }
 0x730   : > { %v1706_v2 = vmul.f32 0.044715, %v1705_v1 }
 0x731   : > { %v1702_v49 = vpop.f32.mrf.mxu1 }
 0x732   : > { %v1707_v3 = vadd.f32 %v1706_v2, %v1701_v19 }
 0x734   : > { %v1708_v29 = vmul.f32 0.7978846, %v1707_v3 }
 0x736   : > { %2083 = vtanh.f32 %v1708_v29 }
 0x73c   : > { %v2084_v4 = vpop.eup %2083 }
 0x73d   : > { %v1710_v5 = vadd.f32 1.0, %v2084_v4 }
 0x73f   : > { %v1711_v6 = vmul.f32 0.5, %v1710_v5 }
 0x741   : > { %v1712_v7 = vmul.f32 %v1711_v6, %v1701_v19 }
 0x743   : > { %v1713_v32 = vpack.c.bf16 %v1712_v7, %v1712_v7 }
 0x745   : > { %1987 = vmatmul.msk.bf16.vlgmr.msrb.gmra.mxu2 %vm1750_vm15, %v1713_v32 }
 0x7c8   : > { %v1763_v8 = vpop.f32.mrf.mxu2 }
 0x7c9   : > { %v1764_v9 = vadd.f32 %v2060_v61, %v1763_v8 }
 0x7cb   : > { %v1767_v10 = vadd.f32 %v1764_v9, %v1666_v55 }
 0x7cd   : > { %v1770_v11 = vsel %vm768_vm5, %v1767_v10, 0.0 }
 0x7ce   : > { %1771 = vadd.xlane.f32.xlu0 %v1770_v11 }
 0x7d0   : > { %v1765_v38 = vpop.f32.mrf.mxu2 }
 0x841   : > { %v1772_v12 = vpop.xlane.xlu0 %1771 }
 0x842   : > { %v1773_v13 = vmul.f32 %v1772_v12, %v2551_v31 }
 0x844   : > { %v1774_v14 = vsub.f32 %v1767_v10, %v1773_v13 }
 0x846   : > { %v1775_v15 = vmul.f32 %v1774_v14, %v1774_v14 }
 0x848   : > { %v1776_v16 = vsel %vm768_vm5, %v1775_v15, 0.0 }
 0x849   : > { %1777 = vadd.xlane.f32.xlu1 %v1776_v16 }
 0x8bc   : > { %v1778_v17 = vpop.xlane.xlu1 %1777 }
 0x8bd   : > { %v1779_v18 = vmul.f32 %v1778_v17, %v2551_v31  ;;  %v2062_v31 = vld [vmem:[%s2628_s19] ss:$0 sm:$0xff] }
 0x8bf   : > { %v1780_v20 = vadd.f32 1e-12, %v1779_v18 }
 0x8c1   : > { %2085 = vrsqrt.f32 %v1780_v20  ;;  %vm1787_vm1 = vweird.f32 %v1780_v20 }
 0x8c7   : > { %v2086_v21 = vpop.eup %2085 }
 0x8c8   : > { %v1782_v22 = vmul.f32 %v2086_v21, %v1780_v20  ;;  %vm1788_vm0 = vweird.f32 %v2086_v21 }
 0x8c9   : > { %vm1789_vm2 = vmor %vm1787_vm1, %vm1788_vm0 }
 0x8ca   : > { %v1783_v23 = vmul.f32 %v2086_v21, %v1782_v22 }
 0x8cc   : > { %v1784_v25 = vmul.f32 0.5, %v1783_v23 }
 0x8ce   : > { %v1785_v26 = vsub.f32 1.5, %v1784_v25 }
 0x8d0   : > { %v1786_v27 = vmul.f32 %v2086_v21, %v1785_v26 }
 0x8d2   : > { %v1790_v30 = vsel %vm1789_vm2, %v2086_v21, %v1786_v27 }
 0x8d3   : > { %v1791_v33 = vmul.f32 %v1790_v30, %v1774_v14 }
 0x8d5   : > { %v1795_v34 = vmul.f32 %v2061_v28, %v1791_v33 }
 0x8d7   : > { %v1799_v24 = vadd.f32 %v2062_v31, %v1795_v34 }
 0x8d9   : > { %v1800_v35 = vpack.c.bf16 %v1799_v24, %v1799_v24 }
 0x8db   : > { %1802 = vst.msk [vmem:[%s687_s24] sm:$0xf] %vm746_vm4, %v1800_v35 }
 0x8dc PF: > { %s31_s23 = sadd.s32 1, %s2143_s23   ;;  %s2644_s1 = smov %s2139_s22 }
 0x8dd   : > { %p28_p8 = scmp.ge.s32.totalorder %s31_s23, 4   ;;  %s2645_s22 = smov %s2647_s2 }
 0x8df   :  { %30 = sbr.rel (!%p28_p8) target bundleno = 9 (0x9), region = 146 }
 0x8e4   :  { %1828 = vsyncpa [#allocation6], 1 }
 0x8e5   :  { %1830 = vsyncpa [#allocation6 + $0x1], 1 }

</bundles_post_ra>
